<compile_context>
chip_gen: v5e
topology: v5e:2x2
jax: 0.10.0
libtpu: 0.0.40
codegen_flags: <defaults>
</compile_context>

<pallas_src>
import functools

import jax
import jax.numpy as jnp
from jax.experimental import pallas as pl
from jax.experimental.pallas import tpu as pltpu


# ------------------------------ fused Pallas kernel ------------------------------
def _group_fused_kernel(x_ref, w1h0_ref, w1h1_ref, b1h0_ref, b1h1_ref,
                        w2h0_ref, w2h1_ref, b2h0_ref, b2h1_ref,
                        o_ref, ypad_ref, col_ref, *,
                        H, W, Ho, Wo, k, pad):
    """One batch image per grid step (stride == 1 path).

    x_ref    : (1, H*W, Cin)     bf16  channels-last input rows
    w1h{0,1} : (Cin, Cin)        bf16  1x1-conv weight halves (MFM split)
    b1h{0,1} : (1, Cin)          f32
    w2h{0,1} : (k*k*Cin, Cout)   bf16  kxk-conv weight halves, row = (di*k+dj)*Cin + c
    b2h{0,1} : (1, Cout)         f32
    o_ref    : (1, Cout, Ho*Wo)  f32   NCHW output (lane-dense last dim)
    ypad_ref : (Hp, Wp, Cin)     bf16  VMEM scratch: zero-padded conv_a output
    col_ref  : (Ho*Wo, k*k*Cin)  bf16  VMEM scratch: im2col tile (built once)
    """
    Cin = x_ref.shape[-1]
    Hp, Wp = ypad_ref.shape[0], ypad_ref.shape[1]

    # ---- conv_a: 1x1 conv + MFM (max over the two output-channel halves) ----
    x = x_ref[0]                                                     # (H*W, Cin) bf16
    y0 = jnp.dot(x, w1h0_ref[...], preferred_element_type=jnp.float32)
    y1 = jnp.dot(x, w1h1_ref[...], preferred_element_type=jnp.float32)
    y = jnp.maximum(y0 + b1h0_ref[...], y1 + b1h1_ref[...])          # (H*W, Cin) f32

    # ---- stage bf16 padded activation in VMEM; zero ONLY the pad border strips ----
    if pad > 0:
        zrow = jnp.zeros((pad, Wp, Cin), ypad_ref.dtype)
        zcol = jnp.zeros((Hp, pad, Cin), ypad_ref.dtype)
        ypad_ref[0:pad, :, :] = zrow                  # top pad rows
        ypad_ref[pad + H:, :, :] = zrow               # bottom pad rows
        ypad_ref[:, 0:pad, :] = zcol                  # left pad cols
        ypad_ref[:, pad + W:, :] = zcol               # right pad cols
    ypad_ref[pad:pad + H, pad:pad + W, :] = y.reshape(H, W, Cin).astype(jnp.bfloat16)

    # ---- build the im2col tile once: all k*k taps folded into the contraction ----
    for di in range(k):
        for dj in range(k):
            tap = di * k + dj
            win = ypad_ref[di:di + Ho, dj:dj + Wo, :]                # (Ho, Wo, Cin)
            col_ref[:, tap * Cin:(tap + 1) * Cin] = win.reshape(Ho * Wo, Cin)

    # ---- conv: one big matmul per MFM half (K = k*k*Cin), bias + max in f32 ----
    col = col_ref[...]                                               # (Ho*Wo, K) bf16
    z0 = jnp.dot(col, w2h0_ref[...], preferred_element_type=jnp.float32)
    z1 = jnp.dot(col, w2h1_ref[...], preferred_element_type=jnp.float32)
    out = jnp.maximum(z0 + b2h0_ref[...], z1 + b2h1_ref[...])        # (Ho*Wo, Cout) f32

    # Transposed store -> (Cout, Ho*Wo): lane-dense vst, output is already NCHW.
    o_ref[0] = out.T.astype(o_ref.dtype)


# --------------------------------- params / reference ----------------------------
def init_group_params(key, in_channels, out_channels, kernel_size):
    k1, k2, k3, k4 = jax.random.split(key, 4)
    # conv_a = mfm(Cin, Cin, 1, 1, 0): Conv2d(Cin, 2*Cin, 1)
    w1 = jax.random.normal(k1, (2 * in_channels, in_channels, 1, 1), jnp.float32) * 0.1
    b1 = jax.random.normal(k2, (2 * in_channels,), jnp.float32) * 0.1
    # conv = mfm(Cin, Cout, k, s, p): Conv2d(Cin, 2*Cout, k)
    w2 = jax.random.normal(k3, (2 * out_channels, in_channels,
                                kernel_size, kernel_size), jnp.float32) * 0.1
    b2 = jax.random.normal(k4, (2 * out_channels,), jnp.float32) * 0.1
    return {"w1": w1, "b1": b1, "w2": w2, "b2": b2}


def _ref_group(x_nchw, params, kernel_size, stride, padding,
               operand_dtype=jnp.float32):
    """Pure-JAX reference. operand_dtype=bfloat16 mirrors the kernel's operand
    rounding exactly (f32 accumulation); float32 gives the true module semantics."""
    def conv(x, w, b, s, p):
        y = jax.lax.conv_general_dilated(
            x.astype(operand_dtype), w.astype(operand_dtype),
            window_strides=(s, s), padding=[(p, p), (p, p)],
            dimension_numbers=("NCHW", "OIHW", "NCHW"),
            preferred_element_type=jnp.float32)
        return y + b.reshape(1, -1, 1, 1)

    def mfm(y, c):
        return jnp.maximum(y[:, :c], y[:, c:])

    Cin = params["w1"].shape[1]
    Cout = params["w2"].shape[0] // 2
    y = mfm(conv(x_nchw, params["w1"], params["b1"], 1, 0), Cin)
    return mfm(conv(y, params["w2"], params["b2"], stride, padding), Cout)


# --------------------------------- wrapper ---------------------------------------
@functools.partial(jax.jit, static_argnames=("kernel_size", "stride", "padding"))
def group_forward(x_nchw, params, kernel_size, stride, padding):
    """group.forward: NCHW f32 in -> NCHW f32 out (mfm 1x1 conv, then mfm kxk conv)."""
    N, Cin, H, W = x_nchw.shape
    Cout = params["w2"].shape[0] // 2
    k = kernel_size

    if stride != 1:
        # TODO(synk): stride > 1 is not kernelized (LightCNN group layers use stride=1);
        # fall back to the pure-JAX path to preserve module semantics.
        return _ref_group(x_nchw, params, kernel_size, stride, padding, jnp.float32)

    Ho = H + 2 * padding - k + 1
    Wo = W + 2 * padding - k + 1
    Hp, Wp = H + 2 * padding, W + 2 * padding
    K = k * k * Cin

    # NCHW -> (N, H*W, Cin) channels-last rows; matmul operands cast to bf16.
    x3 = (jnp.transpose(x_nchw, (0, 2, 3, 1))
          .reshape(N, H * W, Cin).astype(jnp.bfloat16))

    # conv_a (1x1) weights -> two (Cin_in, Cin_out) halves (MFM split done here).
    w1 = params["w1"][:, :, 0, 0]                        # (2*Cin, Cin)
    w1h0 = jnp.transpose(w1[:Cin]).astype(jnp.bfloat16)
    w1h1 = jnp.transpose(w1[Cin:]).astype(jnp.bfloat16)
    b1 = params["b1"].astype(jnp.float32)
    b1h0, b1h1 = b1[:Cin].reshape(1, Cin), b1[Cin:].reshape(1, Cin)

    # conv (kxk) weights -> two (k*k*Cin, Cout) halves; row = (di*k+dj)*Cin + c to
    # match the tap-major/channel-minor im2col column order built in-kernel.
    def cvt(wh):  # (Cout, Cin, kh, kw) -> (kh*kw*Cin, Cout)
        return jnp.transpose(wh, (2, 3, 1, 0)).reshape(K, Cout)

    w2 = params["w2"]
    w2h0 = cvt(w2[:Cout]).astype(jnp.bfloat16)
    w2h1 = cvt(w2[Cout:]).astype(jnp.bfloat16)
    b2 = params["b2"].astype(jnp.float32)
    b2h0, b2h1 = b2[:Cout].reshape(1, Cout), b2[Cout:].reshape(1, Cout)

    kernel = functools.partial(_group_fused_kernel, H=H, W=W, Ho=Ho, Wo=Wo,
                               k=k, pad=padding)

    # VMEM working set (double-buffered pipeline blocks + scratch) -> explicit limit.
    est = (2 * (H * W * Cin * 2)                   # input block x2, bf16
           + 2 * (Cout * Ho * Wo * 4)              # output block x2, f32
           + 2 * 2 * (Cin * Cin + K * Cout) * 2    # weight halves x2, bf16
           + Hp * Wp * Cin * 2                     # ypad scratch, bf16
           + Ho * Wo * K * 2)                      # im2col scratch, bf16
    vmem_limit = int(min(max(2 * est + (8 << 20), 32 << 20), 64 << 20))
    # TODO(synk): for very large images/channel counts add a row-block grid axis with a
    # (k-1) halo so the working set scales with the tile height (v7x has 64 MiB VMEM).

    out = pl.pallas_call(
        kernel,
        out_shape=jax.ShapeDtypeStruct((N, Cout, Ho * Wo), jnp.float32),
        grid_spec=pltpu.PrefetchScalarGridSpec(
            num_scalar_prefetch=0,
            grid=(N,),
            in_specs=[
                pl.BlockSpec((1, H * W, Cin), lambda b: (b, 0, 0)),
                pl.BlockSpec((Cin, Cin), lambda b: (0, 0)),
                pl.BlockSpec((Cin, Cin), lambda b: (0, 0)),
                pl.BlockSpec((1, Cin), lambda b: (0, 0)),
                pl.BlockSpec((1, Cin), lambda b: (0, 0)),
                pl.BlockSpec((K, Cout), lambda b: (0, 0)),
                pl.BlockSpec((K, Cout), lambda b: (0, 0)),
                pl.BlockSpec((1, Cout), lambda b: (0, 0)),
                pl.BlockSpec((1, Cout), lambda b: (0, 0)),
            ],
            out_specs=pl.BlockSpec((1, Cout, Ho * Wo), lambda b: (b, 0, 0)),
            scratch_shapes=[pltpu.VMEM((Hp, Wp, Cin), jnp.bfloat16),
                            pltpu.VMEM((Ho * Wo, K), jnp.bfloat16)],
        ),
        compiler_params=pltpu.CompilerParams(
            dimension_semantics=("parallel",),
            vmem_limit_bytes=vmem_limit),
    )(x3, w1h0, w1h1, b1h0, b1h1, w2h0, w2h1, b2h0, b2h1)

    return out.reshape(N, Cout, Ho, Wo)   # already NCHW; reshape is metadata-only


if __name__ == "__main__":
    key = jax.random.PRNGKey(0)
    kx, kp = jax.random.split(key)

    N, Cin, H, W = 2, 4, 16, 16
    Cout, ksize, stride, padding = 8, 3, 1, 1

    x = jax.random.normal(kx, (N, Cin, H, W), jnp.float32)
    params = init_group_params(kp, Cin, Cout, ksize)

    out = jax.block_until_ready(group_forward(x, params, ksize, stride, padding))
    assert out.shape == (N, Cout, H, W)

    # Tight check vs a reference using the exact same bf16 operand rounding.
    ref_bf16 = _ref_group(x, params, ksize, stride, padding, jnp.bfloat16)
    assert jnp.allclose(out, ref_bf16, rtol=2e-3, atol=2e-3), (
        float(jnp.max(jnp.abs(out - ref_bf16))))
    # Looser check vs true f32 semantics (bf16 matmul operands are an accepted tradeoff).
    ref_f32 = _ref_group(x, params, ksize, stride, padding, jnp.float32)
    assert jnp.allclose(out, ref_f32, rtol=1e-2, atol=1e-2), (
        float(jnp.max(jnp.abs(out - ref_f32))))

    print("KERNEL_OK")
</pallas_src>

<mosaic_0001>
module attributes {stable_mosaic.version = 11 : i64} {
  func.func @_group_fused_kernel(%arg0: i32, %arg1: memref<1x256x4xbf16, #tpu.memory_space<vmem>>, %arg2: memref<4x4xbf16, #tpu.memory_space<vmem>>, %arg3: memref<4x4xbf16, #tpu.memory_space<vmem>>, %arg4: memref<1x4xf32, #tpu.memory_space<vmem>>, %arg5: memref<1x4xf32, #tpu.memory_space<vmem>>, %arg6: memref<36x8xbf16, #tpu.memory_space<vmem>>, %arg7: memref<36x8xbf16, #tpu.memory_space<vmem>>, %arg8: memref<1x8xf32, #tpu.memory_space<vmem>>, %arg9: memref<1x8xf32, #tpu.memory_space<vmem>>, %arg10: memref<1x8x256xf32, #tpu.memory_space<vmem>>, %arg11: memref<18x18x4xbf16, #tpu.memory_space<vmem>>, %arg12: memref<256x36xbf16, #tpu.memory_space<vmem>>) attributes {dimension_semantics = [#tpu.dimension_semantics<parallel>], iteration_bounds = array<i64: 2>, scalar_prefetch = 0 : i64, scratch_operands = 2 : i64, tpu.core_type = #tpu.core_type<tc>, window_params = [{transform_indices = @transform_0, window_bounds = array<i64: 1, 256, 4>}, {pipeline_mode = #tpu.pipeline_mode<synchronous>, transform_indices = @transform_1, window_bounds = array<i64: 4, 4>}, {pipeline_mode = #tpu.pipeline_mode<synchronous>, transform_indices = @transform_2, window_bounds = array<i64: 4, 4>}, {pipeline_mode = #tpu.pipeline_mode<synchronous>, transform_indices = @transform_3, window_bounds = array<i64: 1, 4>}, {pipeline_mode = #tpu.pipeline_mode<synchronous>, transform_indices = @transform_4, window_bounds = array<i64: 1, 4>}, {pipeline_mode = #tpu.pipeline_mode<synchronous>, transform_indices = @transform_5, window_bounds = array<i64: 36, 8>}, {pipeline_mode = #tpu.pipeline_mode<synchronous>, transform_indices = @transform_6, window_bounds = array<i64: 36, 8>}, {pipeline_mode = #tpu.pipeline_mode<synchronous>, transform_indices = @transform_7, window_bounds = array<i64: 1, 8>}, {pipeline_mode = #tpu.pipeline_mode<synchronous>, transform_indices = @transform_8, window_bounds = array<i64: 1, 8>}, {transform_indices = @transform_9, window_bounds = array<i64: 1, 8, 256>}]} {
    %c0 = arith.constant 0 : index
    %c0_0 = arith.constant 0 : index
    %c0_1 = arith.constant 0 : index
    %0 = vector.load %arg1[%c0, %c0_0, %c0_1] : memref<1x256x4xbf16, #tpu.memory_space<vmem>>, vector<1x256x4xbf16>
    %1 = vector.shape_cast %0 : vector<1x256x4xbf16> to vector<256x4xbf16>
    %c0_2 = arith.constant 0 : index
    %c0_3 = arith.constant 0 : index
    %2 = vector.load %arg2[%c0_2, %c0_3] : memref<4x4xbf16, #tpu.memory_space<vmem>>, vector<4x4xbf16>
    %cst = arith.constant dense<0.000000e+00> : vector<256x4xf32>
    %3 = tpu.matmul %1, %2, %cst {dimension_numbers = #tpu.dot_dimension_numbers<[1], [0], [0], [1], [0, 0, 1, 1], [], []>} : vector<256x4xbf16>, vector<4x4xbf16>, vector<256x4xf32> -> vector<256x4xf32>
    %c0_4 = arith.constant 0 : index
    %c0_5 = arith.constant 0 : index
    %4 = vector.load %arg3[%c0_4, %c0_5] : memref<4x4xbf16, #tpu.memory_space<vmem>>, vector<4x4xbf16>
    %cst_6 = arith.constant dense<0.000000e+00> : vector<256x4xf32>
    %5 = tpu.matmul %1, %4, %cst_6 {dimension_numbers = #tpu.dot_dimension_numbers<[1], [0], [0], [1], [0, 0, 1, 1], [], []>} : vector<256x4xbf16>, vector<4x4xbf16>, vector<256x4xf32> -> vector<256x4xf32>
    %c0_7 = arith.constant 0 : index
    %c0_8 = arith.constant 0 : index
    %6 = vector.load %arg4[%c0_7, %c0_8] : memref<1x4xf32, #tpu.memory_space<vmem>>, vector<1x4xf32>
    %7 = vector.broadcast %6 : vector<1x4xf32> to vector<256x4xf32>
    %8 = arith.addf %3, %7 : vector<256x4xf32>
    %c0_9 = arith.constant 0 : index
    %c0_10 = arith.constant 0 : index
    %9 = vector.load %arg5[%c0_9, %c0_10] : memref<1x4xf32, #tpu.memory_space<vmem>>, vector<1x4xf32>
    %10 = vector.broadcast %9 : vector<1x4xf32> to vector<256x4xf32>
    %11 = arith.addf %5, %10 : vector<256x4xf32>
    %12 = arith.maximumf %8, %11 : vector<256x4xf32>
    %cst_11 = arith.constant 0.000000e+00 : bf16
    %13 = vector.broadcast %cst_11 : bf16 to vector<1x18x4xbf16>
    %cst_12 = arith.constant 0.000000e+00 : bf16
    %14 = vector.broadcast %cst_12 : bf16 to vector<18x1x4xbf16>
    %c0_13 = arith.constant 0 : index
    %c0_14 = arith.constant 0 : index
    %c0_15 = arith.constant 0 : index
    %15 = vector.load %arg11[%c0_13, %c0_14, %c0_15] : memref<18x18x4xbf16, #tpu.memory_space<vmem>>, vector<1x18x4xbf16>
    tpu.vector_store %arg11[%c0_13, %c0_14, %c0_15], %13 {strides = array<i32>} : memref<18x18x4xbf16, #tpu.memory_space<vmem>>, vector<1x18x4xbf16>,
    %c17 = arith.constant 17 : index
    %c0_16 = arith.constant 0 : index
    %c0_17 = arith.constant 0 : index
    %16 = vector.load %arg11[%c17, %c0_16, %c0_17] : memref<18x18x4xbf16, #tpu.memory_space<vmem>>, vector<1x18x4xbf16>
    tpu.vector_store %arg11[%c17, %c0_16, %c0_17], %13 {strides = array<i32>} : memref<18x18x4xbf16, #tpu.memory_space<vmem>>, vector<1x18x4xbf16>,
    %c0_18 = arith.constant 0 : index
    %c0_19 = arith.constant 0 : index
    %c0_20 = arith.constant 0 : index
    %17 = vector.load %arg11[%c0_18, %c0_19, %c0_20] : memref<18x18x4xbf16, #tpu.memory_space<vmem>>, vector<18x1x4xbf16>
    tpu.vector_store %arg11[%c0_18, %c0_19, %c0_20], %14 {strides = array<i32>} : memref<18x18x4xbf16, #tpu.memory_space<vmem>>, vector<18x1x4xbf16>,
    %c0_21 = arith.constant 0 : index
    %c17_22 = arith.constant 17 : index
    %c0_23 = arith.constant 0 : index
    %18 = vector.load %arg11[%c0_21, %c17_22, %c0_23] : memref<18x18x4xbf16, #tpu.memory_space<vmem>>, vector<18x1x4xbf16>
    tpu.vector_store %arg11[%c0_21, %c17_22, %c0_23], %14 {strides = array<i32>} : memref<18x18x4xbf16, #tpu.memory_space<vmem>>, vector<18x1x4xbf16>,
    %19 = vector.shape_cast %12 : vector<256x4xf32> to vector<16x16x4xf32>
    %20 = arith.truncf %19 : vector<16x16x4xf32> to vector<16x16x4xbf16>
    %c1 = arith.constant 1 : index
    %c1_24 = arith.constant 1 : index
    %c0_25 = arith.constant 0 : index
    %21 = vector.load %arg11[%c1, %c1_24, %c0_25] : memref<18x18x4xbf16, #tpu.memory_space<vmem>>, vector<16x16x4xbf16>
    tpu.vector_store %arg11[%c1, %c1_24, %c0_25], %20 {strides = array<i32>} : memref<18x18x4xbf16, #tpu.memory_space<vmem>>, vector<16x16x4xbf16>,
    %c0_26 = arith.constant 0 : index
    %c0_27 = arith.constant 0 : index
    %c0_28 = arith.constant 0 : index
    %22 = vector.load %arg11[%c0_26, %c0_27, %c0_28] : memref<18x18x4xbf16, #tpu.memory_space<vmem>>, vector<16x16x4xbf16>
    %23 = vector.shape_cast %22 : vector<16x16x4xbf16> to vector<256x4xbf16>
    %c0_29 = arith.constant 0 : index
    %c0_30 = arith.constant 0 : index
    %24 = vector.load %arg12[%c0_29, %c0_30] : memref<256x36xbf16, #tpu.memory_space<vmem>>, vector<256x4xbf16>
    tpu.vector_store %arg12[%c0_29, %c0_30], %23 {strides = array<i32>} : memref<256x36xbf16, #tpu.memory_space<vmem>>, vector<256x4xbf16>,
    %c0_31 = arith.constant 0 : index
    %c1_32 = arith.constant 1 : index
    %c0_33 = arith.constant 0 : index
    %25 = vector.load %arg11[%c0_31, %c1_32, %c0_33] : memref<18x18x4xbf16, #tpu.memory_space<vmem>>, vector<16x16x4xbf16>
    %26 = vector.shape_cast %25 : vector<16x16x4xbf16> to vector<256x4xbf16>
    %c0_34 = arith.constant 0 : index
    %c4 = arith.constant 4 : index
    %27 = vector.load %arg12[%c0_34, %c4] : memref<256x36xbf16, #tpu.memory_space<vmem>>, vector<256x4xbf16>
    tpu.vector_store %arg12[%c0_34, %c4], %26 {strides = array<i32>} : memref<256x36xbf16, #tpu.memory_space<vmem>>, vector<256x4xbf16>,
    %c0_35 = arith.constant 0 : index
    %c2 = arith.constant 2 : index
    %c0_36 = arith.constant 0 : index
    %28 = vector.load %arg11[%c0_35, %c2, %c0_36] : memref<18x18x4xbf16, #tpu.memory_space<vmem>>, vector<16x16x4xbf16>
    %29 = vector.shape_cast %28 : vector<16x16x4xbf16> to vector<256x4xbf16>
    %c0_37 = arith.constant 0 : index
    %c8 = arith.constant 8 : index
    %30 = vector.load %arg12[%c0_37, %c8] : memref<256x36xbf16, #tpu.memory_space<vmem>>, vector<256x4xbf16>
    tpu.vector_store %arg12[%c0_37, %c8], %29 {strides = array<i32>} : memref<256x36xbf16, #tpu.memory_space<vmem>>, vector<256x4xbf16>,
    %c1_38 = arith.constant 1 : index
    %c0_39 = arith.constant 0 : index
    %c0_40 = arith.constant 0 : index
    %31 = vector.load %arg11[%c1_38, %c0_39, %c0_40] : memref<18x18x4xbf16, #tpu.memory_space<vmem>>, vector<16x16x4xbf16>
    %32 = vector.shape_cast %31 : vector<16x16x4xbf16> to vector<256x4xbf16>
    %c0_41 = arith.constant 0 : index
    %c12 = arith.constant 12 : index
    %33 = vector.load %arg12[%c0_41, %c12] : memref<256x36xbf16, #tpu.memory_space<vmem>>, vector<256x4xbf16>
    tpu.vector_store %arg12[%c0_41, %c12], %32 {strides = array<i32>} : memref<256x36xbf16, #tpu.memory_space<vmem>>, vector<256x4xbf16>,
    %c1_42 = arith.constant 1 : index
    %c1_43 = arith.constant 1 : index
    %c0_44 = arith.constant 0 : index
    %34 = vector.load %arg11[%c1_42, %c1_43, %c0_44] : memref<18x18x4xbf16, #tpu.memory_space<vmem>>, vector<16x16x4xbf16>
    %35 = vector.shape_cast %34 : vector<16x16x4xbf16> to vector<256x4xbf16>
    %c0_45 = arith.constant 0 : index
    %c16 = arith.constant 16 : index
    %36 = vector.load %arg12[%c0_45, %c16] : memref<256x36xbf16, #tpu.memory_space<vmem>>, vector<256x4xbf16>
    tpu.vector_store %arg12[%c0_45, %c16], %35 {strides = array<i32>} : memref<256x36xbf16, #tpu.memory_space<vmem>>, vector<256x4xbf16>,
    %c1_46 = arith.constant 1 : index
    %c2_47 = arith.constant 2 : index
    %c0_48 = arith.constant 0 : index
    %37 = vector.load %arg11[%c1_46, %c2_47, %c0_48] : memref<18x18x4xbf16, #tpu.memory_space<vmem>>, vector<16x16x4xbf16>
    %38 = vector.shape_cast %37 : vector<16x16x4xbf16> to vector<256x4xbf16>
    %c0_49 = arith.constant 0 : index
    %c20 = arith.constant 20 : index
    %39 = vector.load %arg12[%c0_49, %c20] : memref<256x36xbf16, #tpu.memory_space<vmem>>, vector<256x4xbf16>
    tpu.vector_store %arg12[%c0_49, %c20], %38 {strides = array<i32>} : memref<256x36xbf16, #tpu.memory_space<vmem>>, vector<256x4xbf16>,
    %c2_50 = arith.constant 2 : index
    %c0_51 = arith.constant 0 : index
    %c0_52 = arith.constant 0 : index
    %40 = vector.load %arg11[%c2_50, %c0_51, %c0_52] : memref<18x18x4xbf16, #tpu.memory_space<vmem>>, vector<16x16x4xbf16>
    %41 = vector.shape_cast %40 : vector<16x16x4xbf16> to vector<256x4xbf16>
    %c0_53 = arith.constant 0 : index
    %c24 = arith.constant 24 : index
    %42 = vector.load %arg12[%c0_53, %c24] : memref<256x36xbf16, #tpu.memory_space<vmem>>, vector<256x4xbf16>
    tpu.vector_store %arg12[%c0_53, %c24], %41 {strides = array<i32>} : memref<256x36xbf16, #tpu.memory_space<vmem>>, vector<256x4xbf16>,
    %c2_54 = arith.constant 2 : index
    %c1_55 = arith.constant 1 : index
    %c0_56 = arith.constant 0 : index
    %43 = vector.load %arg11[%c2_54, %c1_55, %c0_56] : memref<18x18x4xbf16, #tpu.memory_space<vmem>>, vector<16x16x4xbf16>
    %44 = vector.shape_cast %43 : vector<16x16x4xbf16> to vector<256x4xbf16>
    %c0_57 = arith.constant 0 : index
    %c28 = arith.constant 28 : index
    %45 = vector.load %arg12[%c0_57, %c28] : memref<256x36xbf16, #tpu.memory_space<vmem>>, vector<256x4xbf16>
    tpu.vector_store %arg12[%c0_57, %c28], %44 {strides = array<i32>} : memref<256x36xbf16, #tpu.memory_space<vmem>>, vector<256x4xbf16>,
    %c2_58 = arith.constant 2 : index
    %c2_59 = arith.constant 2 : index
    %c0_60 = arith.constant 0 : index
    %46 = vector.load %arg11[%c2_58, %c2_59, %c0_60] : memref<18x18x4xbf16, #tpu.memory_space<vmem>>, vector<16x16x4xbf16>
    %47 = vector.shape_cast %46 : vector<16x16x4xbf16> to vector<256x4xbf16>
    %c0_61 = arith.constant 0 : index
    %c32 = arith.constant 32 : index
    %48 = vector.load %arg12[%c0_61, %c32] : memref<256x36xbf16, #tpu.memory_space<vmem>>, vector<256x4xbf16>
    tpu.vector_store %arg12[%c0_61, %c32], %47 {strides = array<i32>} : memref<256x36xbf16, #tpu.memory_space<vmem>>, vector<256x4xbf16>,
    %c0_62 = arith.constant 0 : index
    %c0_63 = arith.constant 0 : index
    %49 = vector.load %arg12[%c0_62, %c0_63] : memref<256x36xbf16, #tpu.memory_space<vmem>>, vector<256x36xbf16>
    %c0_64 = arith.constant 0 : index
    %c0_65 = arith.constant 0 : index
    %50 = vector.load %arg6[%c0_64, %c0_65] : memref<36x8xbf16, #tpu.memory_space<vmem>>, vector<36x8xbf16>
    %cst_66 = arith.constant dense<0.000000e+00> : vector<256x8xf32>
    %51 = tpu.matmul %49, %50, %cst_66 {dimension_numbers = #tpu.dot_dimension_numbers<[1], [0], [0], [1], [0, 0, 1, 1], [], []>} : vector<256x36xbf16>, vector<36x8xbf16>, vector<256x8xf32> -> vector<256x8xf32>
    %c0_67 = arith.constant 0 : index
    %c0_68 = arith.constant 0 : index
    %52 = vector.load %arg7[%c0_67, %c0_68] : memref<36x8xbf16, #tpu.memory_space<vmem>>, vector<36x8xbf16>
    %cst_69 = arith.constant dense<0.000000e+00> : vector<256x8xf32>
    %53 = tpu.matmul %49, %52, %cst_69 {dimension_numbers = #tpu.dot_dimension_numbers<[1], [0], [0], [1], [0, 0, 1, 1], [], []>} : vector<256x36xbf16>, vector<36x8xbf16>, vector<256x8xf32> -> vector<256x8xf32>
    %c0_70 = arith.constant 0 : index
    %c0_71 = arith.constant 0 : index
    %54 = vector.load %arg8[%c0_70, %c0_71] : memref<1x8xf32, #tpu.memory_space<vmem>>, vector<1x8xf32>
    %55 = vector.broadcast %54 : vector<1x8xf32> to vector<256x8xf32>
    %56 = arith.addf %51, %55 : vector<256x8xf32>
    %c0_72 = arith.constant 0 : index
    %c0_73 = arith.constant 0 : index
    %57 = vector.load %arg9[%c0_72, %c0_73] : memref<1x8xf32, #tpu.memory_space<vmem>>, vector<1x8xf32>
    %58 = vector.broadcast %57 : vector<1x8xf32> to vector<256x8xf32>
    %59 = arith.addf %53, %58 : vector<256x8xf32>
    %60 = arith.maximumf %56, %59 : vector<256x8xf32>
    %61 = tpu.transpose %60, [1, 0] : vector<256x8xf32> -> vector<8x256xf32>
    %c0_74 = arith.constant 0 : index
    %c0_75 = arith.constant 0 : index
    %c0_76 = arith.constant 0 : index
    %62 = vector.load %arg10[%c0_74, %c0_75, %c0_76] : memref<1x8x256xf32, #tpu.memory_space<vmem>>, vector<1x8x256xf32>
    %63 = vector.shape_cast %62 : vector<1x8x256xf32> to vector<8x256xf32>
    %64 = vector.shape_cast %61 : vector<8x256xf32> to vector<1x8x256xf32>
    tpu.vector_store %arg10[%c0_74, %c0_75, %c0_76], %64 {strides = array<i32>} : memref<1x8x256xf32, #tpu.memory_space<vmem>>, vector<1x8x256xf32>,
    return
  }
  func.func @transform_0(%arg0: i32) -> (i32, i32, i32) {
    %c0_i32 = arith.constant 0 : i32
    %c0_i32_0 = arith.constant 0 : i32
    %c0_i32_1 = arith.constant 0 : i32
    return %arg0, %c0_i32, %c0_i32_0 : i32, i32, i32
  }
  func.func @transform_1(%arg0: i32) -> (i32, i32) {
    %c0_i32 = arith.constant 0 : i32
    %c0_i32_0 = arith.constant 0 : i32
    %c0_i32_1 = arith.constant 0 : i32
    return %c0_i32, %c0_i32_0 : i32, i32
  }
  func.func @transform_2(%arg0: i32) -> (i32, i32) {
    %c0_i32 = arith.constant 0 : i32
    %c0_i32_0 = arith.constant 0 : i32
    %c0_i32_1 = arith.constant 0 : i32
    return %c0_i32, %c0_i32_0 : i32, i32
  }
  func.func @transform_3(%arg0: i32) -> (i32, i32) {
    %c0_i32 = arith.constant 0 : i32
    %c0_i32_0 = arith.constant 0 : i32
    %c0_i32_1 = arith.constant 0 : i32
    return %c0_i32, %c0_i32_0 : i32, i32
  }
  func.func @transform_4(%arg0: i32) -> (i32, i32) {
    %c0_i32 = arith.constant 0 : i32
    %c0_i32_0 = arith.constant 0 : i32
    %c0_i32_1 = arith.constant 0 : i32
    return %c0_i32, %c0_i32_0 : i32, i32
  }
  func.func @transform_5(%arg0: i32) -> (i32, i32) {
    %c0_i32 = arith.constant 0 : i32
    %c0_i32_0 = arith.constant 0 : i32
    %c0_i32_1 = arith.constant 0 : i32
    return %c0_i32, %c0_i32_0 : i32, i32
  }
  func.func @transform_6(%arg0: i32) -> (i32, i32) {
    %c0_i32 = arith.constant 0 : i32
    %c0_i32_0 = arith.constant 0 : i32
    %c0_i32_1 = arith.constant 0 : i32
    return %c0_i32, %c0_i32_0 : i32, i32
  }
  func.func @transform_7(%arg0: i32) -> (i32, i32) {
    %c0_i32 = arith.constant 0 : i32
    %c0_i32_0 = arith.constant 0 : i32
    %c0_i32_1 = arith.constant 0 : i32
    return %c0_i32, %c0_i32_0 : i32, i32
  }
  func.func @transform_8(%arg0: i32) -> (i32, i32) {
    %c0_i32 = arith.constant 0 : i32
    %c0_i32_0 = arith.constant 0 : i32
    %c0_i32_1 = arith.constant 0 : i32
    return %c0_i32, %c0_i32_0 : i32, i32
  }
  func.func @transform_9(%arg0: i32) -> (i32, i32, i32) {
    %c0_i32 = arith.constant 0 : i32
    %c0_i32_0 = arith.constant 0 : i32
    %c0_i32_1 = arith.constant 0 : i32
    return %arg0, %c0_i32, %c0_i32_0 : i32, i32, i32
  }
}

</mosaic_0001>

<bundles_post_ra>
// kernel: group_forward.1
= control target key start
LH: loop header
LB: loop body
LE: loop exit
PB: predicated region body
PF: predicated region fallthrough
CT: control target
= control target key end

     0   :  { %s5411_s30 = smov 0   ;;  %s7374_s0 = inlined_call_operand.vmem [shape: bf16[2,256,4], index: 0, kind: input, shape index: {}]   ;;  %s7375_s1 = inlined_call_operand.vmem [shape: bf16[4,4], index: 1, kind: input, shape index: {}]   ;;  %s7376_s2 = inlined_call_operand.vmem [shape: bf16[4,4], index: 2, kind: input, shape index: {}]   ;;  %s7377_s3 = inlined_call_operand.vmem [shape: f32[1,4], index: 3, kind: input, shape index: {}]   ;;  %s7378_s4 = inlined_call_operand.vmem [shape: f32[1,4], index: 4, kind: input, shape index: {}]   ;;  %s7379_s5 = inlined_call_operand.vmem [shape: bf16[36,8], index: 5, kind: input, shape index: {}]   ;;  %s7380_s6 = inlined_call_operand.vmem [shape: bf16[36,8], index: 6, kind: input, shape index: {}]   ;;  %s7381_s7 = inlined_call_operand.vmem [shape: f32[1,8], index: 7, kind: input, shape index: {}]   ;;  %s7382_s8 = inlined_call_operand.vmem [shape: f32[1,8], index: 8, kind: input, shape index: {}]   ;;  %s7383_s9 = inlined_call_operand.vmem [shape: f32[2,8,256], index: 9, kind: output, shape index: {}]  }
   0x1 LB: > { %s5010_s10 = sadd.s32 4294967295, %s5350_s30   ;;  %p5014_p0 = scmp.ge.s32.totalorder %s5350_s30, 1  ;;  %s5350_s30 = sphi %s5411_s30, %s19_s30  }
   0x2   : > { %p287_p1 = scmp.lt.s32.totalorder %s5350_s30, 3 }
   0x4   : > { %p288_p2 = pnand %p5014_p0, %p287_p1 }
   0x5   : > { %p323_p3 = scmp.lt.s32.totalorder (!%p288_p2), %s5010_s10, 1  ;;  %s5353_s19 = smov (!%p288_p2), 8  }
   0x6   : > { %291 = sbr.rel (%p288_p2) target bundleno = 1144 (0x478), region = 56  ;;  %s5354_s20 = smov (!%p288_p2), 4  }
   0x7   : > { %s5355_s25 = smov (!%p288_p2), 12   ;;  %s5356_s26 = smov (!%p288_p2), 16  }
   0x8   : > { %s5357_s27 = smov (!%p288_p2), 20   ;;  %s5358_s28 = smov (!%p288_p2), 24  }
   0x9   : > { %s5359_s29 = smov (!%p288_p2), 28   ;;  %s5360_s11 = smov (!%p288_p2), 32  }
   0xb   : > { %v366_v0 = vld [vmem:[%s7375_s1] sm:$0x3]  ;;  %vm501_vm0 = vcmask 1041408   ;;  %s7425_s10 = smov (!%p323_p3, %s5010_s10), 1  ;;  %vm452_vm1 = vcmask 31744   ;;  %vm722_vm2 = vcmask 27648  }
   0xc   : > { %v367_v1 = vld [vmem:[%s7376_s2] sm:$0x3]  ;;  %v503_v2 = vsel %vm501_vm0, %v366_v0, 0  ;;  %s5277_s15 = sshll.u32 %s7425_s10, 7  ;;  %vm725_vm3 = vcmask 24576   ;;  %v5352_v6 = vmov 0  }
   0xd   : > { %v599_v3 = vsel %vm501_vm0, %v367_v1, 0  ;;  %512 = vmatpush.bf16.msra.mxu0 %v503_v2  ;;  %s5433_s18 = scalar_lea.vmem %s7374_s0, %s5277_s15  ;;  %724 = vst.msk [vmem:[#allocation2 + $0x4] sm:$0xf] %vm722_vm2, %v5352_v6  ;;  %vm788_vm4 = vsmask.f32 7938  ;;  %vm2037_vm6 = vcmask 1042432  }
   0xe   : > { %608 = vmatpush.bf16.msra.mxu1 %v599_v3  ;;  %v5279_v4 = vld [vmem:[%s5433_s18] sm:$0xff]  ;;  %v5280_v5 = vld [vmem:[%s5433_s18 + $0x8] sm:$0xff]  ;;  %726 = vst.msk [vmem:[#allocation2 + $0x8] sm:$0x1] %vm725_vm3, %v5352_v6  ;;  %vm5449_vm5 = vmand %vm725_vm3, %vm788_vm4  ;;  %vm2038_vm7 = vcmask 1046532  }
   0xf   : > { %723 = vst.msk [vmem:[#allocation2] sm:$0xf] %vm722_vm2, %v5352_v6  ;;  %v5281_v11 = vld [vmem:[%s5433_s18 + $0x10] sm:$0xff]  ;;  %vm5458_vm8 = vmor %vm2037_vm6, %vm2038_vm7  ;;  %v5282_v18 = vld [vmem:[%s5433_s18 + $0x18] sm:$0xff]  ;;  %vm732_vm9 = vsmask.f32 256 }
  0x10   : > { %5083 = vmatmul.msk.bf16.vlgmr.msra.gmra.mxu0 %vm452_vm1, %v5279_v4  ;;  %728 = vst.msk [vmem:[#allocation2 + $0xcc] sm:$0xf] %vm722_vm2, %v5352_v6  ;;  %vm5470_vm10 = vmand %vm725_vm3, %vm732_vm9  ;;  %v5283_v28 = vld [vmem:[%s5433_s18 + $0x20] sm:$0xff]  ;;  %vm1425_vm11 = vsmask.f32 3328  ;;  %v5284_v52 = vld [vmem:[%s5433_s18 + $0x28] sm:$0xff] }
  0x11   : > { %5099 = vmatmul.msk.bf16.vlgmr.msra.gmra.mxu1 %vm452_vm1, %v5279_v4  ;;  %729 = vst.msk [vmem:[#allocation2 + $0xd0] sm:$0xf] %vm722_vm2, %v5352_v6  ;;  %vm1426_vm12 = vsmask.f32 7440  ;;  %v737_v33 = vld [vmem:[#allocation2 + $0xc] sm:$0x1]  ;;  %vm5519_vm14 = vmand %vm722_vm2, %vm788_vm4 }
  0x12   : > { %730 = vst.msk [vmem:[#allocation2 + $0xd4] sm:$0x1] %vm725_vm3, %v5352_v6  ;;  %vm5477_vm13 = vmor %vm1425_vm11, %vm1426_vm12  ;;  %v738_v36 = vsel %vm5470_vm10, 0, %v737_v33  ;;  %v793_v37 = vld [vmem:[#allocation2 + $0x14] sm:$0x1]  ;;  %vm1908_vm4 = vcmask 60448  }
  0x13   : > { %739 = vst [vmem:[#allocation2 + $0xc] sm:$0x1] %v738_v36  ;;  %v794_v39 = vsel %vm5449_vm5, 0, %v793_v37  ;;  %v740_v50 = vld [vmem:[#allocation2 + $0x18] sm:$0x1]  ;;  %vm2248_vm6 = vcmask 93248  }
  0x14   : > { %v1942_v10 = vld [vmem:[#allocation2 + $0x4] sm:$0xf]  ;;  %795 = vst [vmem:[#allocation2 + $0x14] sm:$0x1] %v794_v39  ;;  %v741_v51 = vsel %vm5470_vm10, 0, %v740_v50  ;;  %vm2441_vm7 = vcmask 126048  }
  0x15   : > { %v790_v8 = vld [vmem:[#allocation2 + $0x8] sm:$0x1]  ;;  %v2042_v12 = vrot.slane %v1942_v10, 5  ;;  %v1378_v19 = vld [vmem:[#allocation2 + $0x4] sm:$0xf]  ;;  %vm3339_vm11 = vcmask 191648  }
  0x16   : > { %v791_v9 = vsel %vm5449_vm5, 0, %v790_v8  ;;  %v1438_v20 = vshll.u32 %v1378_v19, 16  ;;  %v1442_v21 = vshrl.u32 %v1378_v19, 16  ;;  %v734_v32 = vld [vmem:[#allocation2] sm:$0x1]  ;;  %vm3533_vm12 = vcmask 224448  }
  0x17   : > { %792 = vst [vmem:[#allocation2 + $0x8] sm:$0x1] %v791_v9  ;;  %v2044_v13 = vrot.slane %v2042_v12, 4  ;;  %v735_v35 = vsel %vm5470_vm10, 0, %v734_v32  ;;  %v1941_v46 = vld [vmem:[#allocation2] sm:$0xe] }
  0x18   : > { %v1440_v22 = vrot.slane %v1438_v20, 5  ;;  %v1444_v23 = vrot.slane %v1442_v21, 4  ;;  %736 = vst [vmem:[#allocation2] sm:$0x1] %v735_v35  ;;  %v5115_v48 = vrot.slane %v1941_v46, 9 }
  0x19   : > { %742 = vst [vmem:[#allocation2 + $0x18] sm:$0x1] %v741_v51  ;;  %v5504_v53 = vld [vmem:[%s7377_s3] ss:$0 sm:$0xff]  ;;  %vm876_vm15 = vsmask.f32 4368 }
  0x1a   : > { %v1445_v25 = vor.u32 %v1444_v23, %v1440_v22  ;;  %v2043_v49 = vsel %vm5458_vm8, %v5115_v48, %v2042_v12  ;;  %v5509_v54 = vld [vmem:[%s7378_s4] ss:$0 sm:$0xff]  ;;  %v1201_v8 = vld [vmem:[#allocation2 + $0xc] sm:$0xf]  ;;  %vm5530_vm3 = vmor %vm732_vm9, %vm876_vm15  ;;  %vm3002_vm9 = vcmask 158848   ;;  %vm7384_vm15 = vcmask 257248  }
  0x1b   : > { %2152 = vrot.lane.b32.xlu2 %v2043_v49, %s5353_s19  ;;  %v796_v55 = vld [vmem:[#allocation2 + $0x20] sm:$0x1]  ;;  %v799_v51 = vld [vmem:[#allocation2 + $0x2c] sm:$0x1] }
  0x1c   : > { %v1446_v29 = vrot.slane %v1445_v25, 4  ;;  %v797_v56 = vsel %vm5449_vm5, 0, %v796_v55  ;;  %v7141_v15 = vld [vmem:[%s7382_s8] ss:$0 sm:$0xff] }
  0x1d   : > { %798 = vst [vmem:[#allocation2 + $0x20] sm:$0x1] %v797_v56  ;;  %v800_v56 = vsel %vm5449_vm5, 0, %v799_v51 }
  0x1e   : > { %v1943_v14 = vld [vmem:[#allocation2 + $0x8] sm:$0x1]  ;;  %801 = vst [vmem:[#allocation2 + $0x2c] sm:$0x1] %v800_v56 }
  0x1f   : > { %v2045_v16 = vrot.slane %v1943_v14, 5  ;;  %v1379_v24 = vld [vmem:[#allocation2 + $0x8] sm:$0x1]  ;;  %v1377_v38 = vld [vmem:[#allocation2] sm:$0xf] }
  0x20   : > { %5084 = vmatmul.msk.bf16.gmra.mxu0 %vm452_vm1, %v5280_v5  ;;  %v1448_v26 = vshll.u32 %v1379_v24, 16  ;;  %v1429_v40 = vshrl.u32 %v1377_v38, 16  ;;  %v1432_v41 = vshll.u32 %v1377_v38, 16  ;;  %v1205_v24 = vld [vmem:[#allocation2 + $0x14] sm:$0x1] }
  0x21   : > { %5100 = vmatmul.msk.bf16.gmra.mxu1 %vm452_vm1, %v5280_v5  ;;  %v2046_v17 = vsel %vm5458_vm8, %v2044_v13, %v2045_v16  ;;  %v743_v13 = vld [vmem:[#allocation2 + $0x24] sm:$0x1] }
  0x22   : > { %2154 = vrot.lane.b32.xlu0 %v2046_v17, %s5353_s19  ;;  %v1450_v30 = vrot.slane %v1448_v26, 5  ;;  %v1431_v42 = vrot.slane %v1429_v40, 4  ;;  %v1434_v43 = vrot.slane %v1432_v41, 5  ;;  %v744_v16 = vsel %vm5470_vm10, 0, %v743_v13  ;;  %v1208_v41 = vld [vmem:[#allocation2 + $0x18] sm:$0xf] }
  0x23   : > { %745 = vst [vmem:[#allocation2 + $0x24] sm:$0x1] %v744_v16 }
  0x24   : > { %v1451_v34 = vsel %vm5477_vm13, %v1446_v29, %v1450_v30  ;;  %v1435_v44 = vor.u32 %v1434_v43, %v1431_v42  ;;  %v5285_v30 = vld [vmem:[%s5433_s18 + $0x30] sm:$0xff] }
  0x26   : > { %v1436_v45 = vrot.slane %v1435_v44, 4 }
  0x28   : > { %v1441_v47 = vsel %vm5477_vm13, %v1436_v45, %v1440_v22 }
  0x2a   : > { %1814 = vrot.lane.b32.xlu0 %v1451_v34, %s5354_s20 }
  0x30   : > { %5085 = vmatmul.msk.bf16.gmra.mxu0 %vm452_vm1, %v5281_v11 }
  0x31   : > { %5101 = vmatmul.msk.bf16.gmra.mxu1 %vm452_vm1, %v5281_v11 }
  0x32   : > { %1812 = vrot.lane.b32.xlu0 %v1441_v47, %s5354_s20 }
  0x40   : > { %5086 = vmatmul.msk.bf16.gmra.mxu0 %vm452_vm1, %v5282_v18 }
  0x41   : > { %5102 = vmatmul.msk.bf16.gmra.mxu1 %vm452_vm1, %v5282_v18 }
  0x50   : > { %5087 = vmatmul.msk.bf16.gmra.mxu0 %vm452_vm1, %v5283_v28 }
  0x51   : > { %5103 = vmatmul.msk.bf16.gmra.mxu1 %vm452_vm1, %v5283_v28 }
  0x60   : > { %5088 = vmatmul.msk.bf16.gmra.mxu0 %vm452_vm1, %v5284_v52 }
  0x61   : > { %5104 = vmatmul.msk.bf16.gmra.mxu1 %vm452_vm1, %v5284_v52 }
  0x70   : > { %5089 = vmatmul.msk.bf16.gmra.mxu0 %vm452_vm1, %v5285_v30 }
  0x71   : > { %5105 = vmatmul.msk.bf16.gmra.mxu1 %vm452_vm1, %v5285_v30 }
  0x8d   : > { %v514_v57 = vpop.f32.mrf.mxu0 }
  0x8e   : > { %v610_v58 = vpop.f32.mrf.mxu1  ;;  %v515_v59 = vadd.f32 %v5504_v53, %v514_v57 }
  0x8f   : > { %v611_v60 = vadd.f32 %v5509_v54, %v610_v58 }
  0x91   : > { %v690_v61 = vmax.f32 %v515_v59, %v611_v60 }
  0x93   : > { %v844_v62 = vpack.c.bf16 %v690_v61, %v690_v61 }
  0x95   : > { %v879_v63 = vshrl.u32 %v844_v62, 16  ;;  %v516_v0 = vpop.f32.mrf.mxu0  ;;  %v882_v3 = vshll.u32 %v844_v62, 16 }
  0x96   : > { %v612_v1 = vpop.f32.mrf.mxu1  ;;  %v517_v4 = vadd.f32 %v5504_v53, %v516_v0 }
  0x97   : > { %v881_v2 = vrot.slane %v879_v63, 7  ;;  %v613_v5 = vadd.f32 %v5509_v54, %v612_v1 }
  0x99   : > { %v884_v9 = vor.u32 %v882_v3, %v881_v2  ;;  %v691_v10 = vmax.f32 %v517_v4, %v613_v5  ;;  %v885_v25 = vrot.slane %v881_v2, 4 }
  0x9b   : > { %v1202_v11 = vsel %vm5519_vm14, %v884_v9, %v1201_v8  ;;  %v845_v12 = vpack.c.bf16 %v691_v10, %v691_v10 }
  0x9c   : > { %1203 = vst [vmem:[#allocation2 + $0xc] sm:$0xf] %v1202_v11 }
  0x9d   : > { %v887_v14 = vshrl.u32 %v845_v12, 16  ;;  %v519_v17 = vpop.f32.mrf.mxu0  ;;  %v890_v20 = vshll.u32 %v845_v12, 16 }
  0x9e   : > { %v615_v18 = vpop.f32.mrf.mxu1  ;;  %v520_v21 = vadd.f32 %v5504_v53, %v519_v17 }
  0x9f   : > { %v889_v19 = vrot.slane %v887_v14, 7  ;;  %v616_v22 = vadd.f32 %v5509_v54, %v615_v18 }
  0xa1   : > { %v892_v26 = vor.u32 %v890_v20, %v889_v19  ;;  %v894_v28 = vrot.slane %v889_v19, 4  ;;  %v692_v29 = vmax.f32 %v520_v21, %v616_v22 }
  0xa3   : > { %v893_v32 = vsel %vm5530_vm3, %v885_v25, %v892_v26  ;;  %v1206_v33 = vsel %vm5470_vm10, %v894_v28, %v1205_v24  ;;  %v846_v34 = vpack.c.bf16 %v692_v29, %v692_v29  ;;  %v2281_v35 = vld [vmem:[#allocation2 + $0xc] sm:$0xf]  ;;  %v1212_v26 = vld [vmem:[#allocation2 + $0x20] sm:$0x1] }
  0xa4   : > { %v2474_v36 = vld [vmem:[#allocation2 + $0xc] sm:$0xf]  ;;  %1204 = vst.msk [vmem:[#allocation2 + $0x10] sm:$0xf] %vm722_vm2, %v893_v32  ;;  %2345 = vrot.lane.b32.xlu1 %v2281_v35, %s5355_s25 }
  0xa5   : > { %v2523_v37 = vshrl.u32 %v2474_v36, 16  ;;  %v2526_v38 = vshll.u32 %v2474_v36, 16  ;;  %1207 = vst [vmem:[#allocation2 + $0x14] sm:$0x1] %v1206_v33  ;;  %v896_v39 = vshrl.u32 %v846_v34, 16  ;;  %v899_v40 = vshll.u32 %v846_v34, 16  ;;  %v521_v42 = vpop.f32.mrf.mxu0 }
  0xa6   : > { %v617_v43 = vpop.f32.mrf.mxu1  ;;  %v1380_v46 = vld [vmem:[#allocation2 + $0xc] sm:$0xf]  ;;  %v522_v48 = vadd.f32 %v5504_v53, %v521_v42 }
  0xa7   : > { %v2525_v44 = vrot.slane %v2523_v37, 4  ;;  %v2528_v45 = vrot.slane %v2526_v38, 5  ;;  %v898_v47 = vrot.slane %v896_v39, 7  ;;  %v618_v49 = vadd.f32 %v5509_v54, %v617_v43  ;;  %v1944_v50 = vld [vmem:[#allocation2 + $0xc] sm:$0xe] }
  0xa8   : > { %v1453_v52 = vshrl.u32 %v1380_v46, 16  ;;  %v1456_v55 = vshll.u32 %v1380_v46, 16  ;;  %v1315_v57 = vld [vmem:[#allocation2 + $0xc] sm:$0xf]  ;;  %v5116_v60 = vrot.slane %v1944_v50, 9 }
  0xa9   : > { %v901_v58 = vor.u32 %v899_v40, %v898_v47  ;;  %v693_v59 = vmax.f32 %v522_v48, %v618_v49  ;;  %v2529_v61 = vor.u32 %v2528_v45, %v2525_v44  ;;  %1347 = vst.msk [vmem:[#allocation3 + $0x8] sm:$0xf] %vm722_vm2, %v1315_v57  ;;  %v902_v13 = vrot.slane %v898_v47, 4  ;;  %v3035_v18 = vld [vmem:[#allocation2 + $0xc] sm:$0xe] }
  0xaa   : > { %v1455_v5 = vrot.slane %v1453_v52, 4  ;;  %v1458_v8 = vrot.slane %v1456_v55, 5  ;;  %v5131_v33 = vrot.slane %v3035_v18, 9 }
  0xab   : > { %v1209_v62 = vsel %vm5519_vm14, %v901_v58, %v1208_v41  ;;  %v847_v63 = vpack.c.bf16 %v693_v59, %v693_v59  ;;  %v2282_v0 = vld [vmem:[#allocation2 + $0x10] sm:$0xf]  ;;  %v2530_v16 = vrot.slane %v2529_v61, 4 }
  0xac   : > { %v1945_v1 = vld [vmem:[#allocation2 + $0x10] sm:$0xf]  ;;  %1210 = vst [vmem:[#allocation2 + $0x18] sm:$0xf] %v1209_v62  ;;  %2347 = vrot.lane.b32.xlu2 %v2282_v0, %s5355_s25  ;;  %v1459_v29 = vor.u32 %v1458_v8, %v1455_v5  ;;  %v3037_v35 = vld [vmem:[#allocation2 + $0x14] sm:$0x1] }
  0xad   : > { %v5550_v2 = vld [vmem:[#allocation2 + $0x10] sm:$0xf]  ;;  %v2049_v3 = vrot.slane %v1945_v1, 5  ;;  %v904_v9 = vshrl.u32 %v847_v63, 16  ;;  %v907_v10 = vshll.u32 %v847_v63, 16  ;;  %v524_v19 = vpop.f32.mrf.mxu0  ;;  %v3136_v48 = vrot.slane %v3037_v35, 5 }
  0xae   : > { %v2532_v4 = vshll.u32 %v5550_v2, 16  ;;  %v3036_v11 = vld [vmem:[#allocation2 + $0x10] sm:$0xf]  ;;  %v620_v20 = vpop.f32.mrf.mxu1  ;;  %v525_v36 = vadd.f32 %v5504_v53, %v524_v19  ;;  %v2536_v41 = vshrl.u32 %v5550_v2, 16  ;;  %v1460_v44 = vrot.slane %v1459_v29, 4  ;;  %v5286_v1 = vld [vmem:[%s5433_s18 + $0x38] sm:$0xff] }
  0xaf   : > { %v1381_v12 = vld [vmem:[#allocation2 + $0x10] sm:$0xf]  ;;  %v2050_v14 = vsel %vm5458_vm8, %v5116_v60, %v2049_v3  ;;  %v906_v21 = vrot.slane %v904_v9, 7  ;;  %v3133_v22 = vrot.slane %v3036_v11, 5  ;;  %v621_v37 = vadd.f32 %v5509_v54, %v620_v20  ;;  %v1382_v49 = vld [vmem:[#allocation2 + $0x14] sm:$0x1]  ;;  %5090 = vmatmul.msk.bf16.gmra.mxu0 %vm452_vm1, %v5286_v1  ;;  %5106 = vmatmul.msk.bf16.gmra.mxu1 %vm452_vm1, %v5286_v1 }
  0xb0   : > { %v5556_v17 = vrot.slane %v2532_v4, 5  ;;  %2156 = vrot.lane.b32.xlu1 %v2050_v14, %s5353_s19  ;;  %v1462_v24 = vshll.u32 %v1381_v12, 16  ;;  %v1466_v25 = vshrl.u32 %v1381_v12, 16  ;;  %v1946_v52 = vld [vmem:[#allocation2 + $0x14] sm:$0x1]  ;;  %v2051_v61 = vrot.slane %v2049_v3, 4 }
  0xb1   : > { %v909_v30 = vor.u32 %v907_v10, %v906_v21  ;;  %v911_v32 = vrot.slane %v906_v21, 4  ;;  %v3134_v42 = vsel %vm5458_vm8, %v5131_v33, %v3133_v22  ;;  %v3135_v45 = vrot.slane %v3133_v22, 4  ;;  %v1316_v60 = vld [vmem:[#allocation2 + $0x10] sm:$0xf]  ;;  %v1215_v19 = vld [vmem:[#allocation2 + $0x24] sm:$0xf] }
  0xb2   : > { %v2535_v28 = vsel %vm5477_vm13, %v2530_v16, %v5556_v17  ;;  %v1464_v34 = vrot.slane %v1462_v24, 5  ;;  %v1468_v38 = vrot.slane %v1466_v25, 4  ;;  %v694_v46 = vmax.f32 %v525_v36, %v621_v37  ;;  %1348 = vst.msk [vmem:[#allocation3 + $0xc] sm:$0xf] %vm722_vm2, %v1316_v60  ;;  %v2476_v33 = vld [vmem:[#allocation2 + $0x14] sm:$0x1] }
  0xb3   : > { %2906 = vrot.lane.b32.xlu0 %v2535_v28, %s5356_s26  ;;  %v910_v39 = vsel %vm5530_vm3, %v902_v13, %v909_v30  ;;  %v1213_v40 = vsel %vm5470_vm10, %v911_v32, %v1212_v26  ;;  %v1383_v43 = vld [vmem:[#allocation2 + $0x18] sm:$0xf]  ;;  %v3137_v2 = vsel %vm5458_vm8, %v3135_v45, %v3136_v48  ;;  %v1472_v8 = vshll.u32 %v1382_v49, 16 }
  0xb4   : > { %1211 = vst.msk [vmem:[#allocation2 + $0x1c] sm:$0xf] %vm722_vm2, %v910_v39  ;;  %3243 = vrot.lane.b32.xlu2 %v3134_v42, %s5357_s27  ;;  %v1477_v47 = vshrl.u32 %v1383_v43, 16  ;;  %v1480_v50 = vshll.u32 %v1383_v43, 16  ;;  %v1465_v51 = vsel %vm5477_vm13, %v1460_v44, %v1464_v34  ;;  %v848_v55 = vpack.c.bf16 %v694_v46, %v694_v46  ;;  %v2477_v9 = vld [vmem:[#allocation2 + $0x18] sm:$0xf] }
  0xb5   : > { %1214 = vst [vmem:[#allocation2 + $0x20] sm:$0x1] %v1213_v40  ;;  %v1469_v56 = vor.u32 %v1468_v38, %v1464_v34  ;;  %v526_v58 = vpop.f32.mrf.mxu0  ;;  %v2052_v10 = vrot.slane %v1946_v52, 5  ;;  %v1317_v3 = vld [vmem:[#allocation2 + $0x18] sm:$0xf]  ;;  %v2538_v16 = vrot.slane %v2536_v41, 4 }
  0xb6   : > { %v1479_v57 = vrot.slane %v1477_v47, 4  ;;  %v622_v59 = vpop.f32.mrf.mxu1  ;;  %v1482_v62 = vrot.slane %v1480_v50, 5  ;;  %v527_v63 = vadd.f32 %v5504_v53, %v526_v58  ;;  %v913_v4 = vshrl.u32 %v848_v55, 16  ;;  %1349 = vst.msk [vmem:[#allocation3 + $0x10] sm:$0xf] %vm722_vm2, %v1317_v3 }
  0xb7   : > { %v623_v0 = vadd.f32 %v5509_v54, %v622_v59  ;;  %v916_v5 = vshll.u32 %v848_v55, 16  ;;  %v1470_v14 = vrot.slane %v1469_v56, 4  ;;  %v2053_v18 = vsel %vm5458_vm8, %v2051_v61, %v2052_v10  ;;  %v2283_v36 = vld [vmem:[#allocation2 + $0x18] sm:$0xf]  ;;  %v1219_v43 = vld [vmem:[#allocation2 + $0x2c] sm:$0x1] }
  0xb8   : > { %1816 = vrot.lane.b32.xlu1 %v1465_v51, %s5354_s20  ;;  %v1483_v11 = vor.u32 %v1482_v62, %v1479_v57  ;;  %v915_v13 = vrot.slane %v913_v4, 7  ;;  %v2547_v22 = vshrl.u32 %v2477_v9, 16  ;;  %v2550_v24 = vshll.u32 %v2477_v9, 16  ;;  %v3373_v58 = vld [vmem:[#allocation2 + $0x18] sm:$0xf] }
  0xb9   : > { %v695_v12 = vmax.f32 %v527_v63, %v623_v0  ;;  %v1474_v26 = vrot.slane %v1472_v8, 5  ;;  %v2539_v38 = vor.u32 %v2538_v16, %v5556_v17  ;;  %v2542_v44 = vshll.u32 %v2476_v33, 16  ;;  %v3566_v60 = vld [vmem:[#allocation2 + $0x18] sm:$0xf] }
  0xba   : > { %v918_v25 = vor.u32 %v916_v5, %v915_v13  ;;  %v1484_v29 = vrot.slane %v1483_v11, 4  ;;  %v919_v39 = vrot.slane %v915_v13, 4  ;;  %v2549_v41 = vrot.slane %v2547_v22, 4  ;;  %v1947_v62 = vld [vmem:[#allocation2 + $0x18] sm:$0xe] }
  0xbb   : > { %3245 = vrot.lane.b32.xlu0 %v3137_v2, %s5357_s27  ;;  %v5589_v20 = vld [vmem:[#allocation2 + $0x1c] sm:$0xf]  ;;  %v849_v21 = vpack.c.bf16 %v695_v12, %v695_v12  ;;  %v1475_v35 = vsel %vm5477_vm13, %v1470_v14, %v1474_v26  ;;  %v2552_v42 = vrot.slane %v2550_v24, 5  ;;  %v2540_v48 = vrot.slane %v2539_v38, 4  ;;  %v3038_v38 = vld [vmem:[#allocation2 + $0x18] sm:$0xe] }
  0xbc   : > { %2158 = vrot.lane.b32.xlu2 %v2053_v18, %s5353_s19  ;;  %v1486_v28 = vshll.u32 %v5589_v20, 16  ;;  %v1216_v34 = vsel %vm5519_vm14, %v918_v25, %v1215_v19  ;;  %v2478_v49 = vld [vmem:[#allocation2 + $0x1c] sm:$0xf]  ;;  %v2544_v52 = vrot.slane %v2542_v44, 5  ;;  %v3040_v1 = vld [vmem:[#allocation2 + $0x20] sm:$0x1] }
  0xbd   : > { %v921_v30 = vshrl.u32 %v849_v21, 16  ;;  %v924_v32 = vshll.u32 %v849_v21, 16  ;;  %1217 = vst [vmem:[#allocation2 + $0x24] sm:$0xf] %v1216_v34  ;;  %v2553_v51 = vor.u32 %v2552_v42, %v2549_v41  ;;  %v2556_v55 = vshll.u32 %v2478_v49, 16  ;;  %v529_v16 = vpop.f32.mrf.mxu0  ;;  %v5287_v18 = vld [vmem:[%s5433_s18 + $0x40] sm:$0xff] }
  0xbe   : > { %v5597_v37 = vrot.slane %v1486_v28, 5  ;;  %v2545_v56 = vsel %vm5477_vm13, %v2540_v48, %v2544_v52  ;;  %v5614_v59 = vld [vmem:[#allocation2 + $0x1c] sm:$0xf]  ;;  %v3615_v4 = vshrl.u32 %v3566_v60, 16  ;;  %v3618_v5 = vshll.u32 %v3566_v60, 16  ;;  %v625_v19 = vpop.f32.mrf.mxu1 }
  0xbf   : > { %v923_v40 = vrot.slane %v921_v30, 7  ;;  %v2554_v57 = vrot.slane %v2553_v51, 4  ;;  %v5617_v61 = vrot.slane %v2556_v55, 5  ;;  %v5619_v63 = vld [vmem:[#allocation2 + $0x1c] sm:$0xf]  ;;  %v3140_v2 = vrot.slane %v5614_v59, 5  ;;  %5091 = vmatmul.msk.bf16.gmra.mxu0 %vm452_vm1, %v5287_v18  ;;  %5107 = vmatmul.msk.bf16.gmra.mxu1 %vm452_vm1, %v5287_v18 }
  0xc0   : > { %1818 = vrot.lane.b32.xlu1 %v1475_v35, %s5354_s20  ;;  %v1489_v45 = vsel %vm5477_vm13, %v1484_v29, %v5597_v37  ;;  %v5117_v8 = vrot.slane %v1947_v62, 9  ;;  %v2056_v9 = vrot.slane %v5619_v63, 5  ;;  %v2560_v10 = vshrl.u32 %v2478_v49, 16  ;;  %v2284_v11 = vld [vmem:[#allocation2 + $0x1c] sm:$0xf] }
  0xc1   : > { %v926_v46 = vor.u32 %v924_v32, %v923_v40  ;;  %v928_v47 = vrot.slane %v923_v40, 4  ;;  %v2559_v0 = vsel %vm5477_vm13, %v2554_v57, %v5617_v61  ;;  %v3143_v12 = vrot.slane %v3040_v1, 5  ;;  %v746_v21 = vld [vmem:[#allocation2 + $0x30] sm:$0x1]  ;;  %v3567_v28 = vld [vmem:[#allocation2 + $0x1c] sm:$0xf]  ;;  %v2155_v1 = vpop.permute.xlu0 %2154 }
  0xc2   : > { %v3142_v3 = vrot.slane %v3140_v2, 4  ;;  %v3617_v13 = vrot.slane %v3615_v4, 4  ;;  %v3620_v14 = vrot.slane %v3618_v5, 5  ;;  %v2057_v22 = vsel %vm5458_vm8, %v5117_v8, %v2056_v9  ;;  %v2479_v34 = vld [vmem:[#allocation2 + $0x20] sm:$0x1] }
  0xc3   : > { %2349 = vrot.lane.b32.xlu0 %v2283_v36, %s5355_s25  ;;  %v927_v17 = vsel %vm5530_vm3, %v919_v39, %v926_v46  ;;  %v1220_v50 = vsel %vm5470_vm10, %v928_v47, %v1219_v43  ;;  %v530_v24 = vadd.f32 %v5504_v53, %v529_v16  ;;  %v626_v25 = vadd.f32 %v5509_v54, %v625_v19  ;;  %v3374_v39 = vld [vmem:[#allocation2 + $0x1c] sm:$0xf]  ;;  %v802_v49 = vld [vmem:[#allocation2 + $0x38] sm:$0x1]  ;;  %v4129_v60 = vld [vmem:[#allocation2 + $0x20] sm:$0x1] }
  0xc4   : > { %1820 = vrot.lane.b32.xlu2 %v1489_v45, %s5354_s20  ;;  %1218 = vst.msk [vmem:[#allocation2 + $0x28] sm:$0xf] %vm722_vm2, %v927_v17  ;;  %v747_v26 = vsel %vm5470_vm10, 0, %v746_v21  ;;  %v3144_v30 = vsel %vm5458_vm8, %v3142_v3, %v3143_v12  ;;  %v3621_v32 = vor.u32 %v3620_v14, %v3617_v13  ;;  %v2562_v33 = vrot.slane %v2560_v10, 4  ;;  %v3375_v40 = vld [vmem:[#allocation2 + $0x24] sm:$0xf] }
  0xc5   : > { %1221 = vst [vmem:[#allocation2 + $0x2c] sm:$0x1] %v1220_v50  ;;  %v696_v29 = vmax.f32 %v530_v24, %v626_v25  ;;  %v3624_v36 = vshll.u32 %v3567_v28, 16  ;;  %v3628_v44 = vshrl.u32 %v3567_v28, 16  ;;  %v2566_v46 = vshll.u32 %v2479_v34, 16  ;;  %v531_v47 = vpop.f32.mrf.mxu0 }
  0xc6   : > { %748 = vst [vmem:[#allocation2 + $0x30] sm:$0x1] %v747_v26  ;;  %v3622_v43 = vrot.slane %v3621_v32, 4  ;;  %v2563_v45 = vor.u32 %v2562_v33, %v5617_v61  ;;  %v627_v48 = vpop.f32.mrf.mxu1  ;;  %v5647_v17 = vld [vmem:[#allocation2 + $0x1c] sm:$0xf]  ;;  %v532_v51 = vadd.f32 %v5504_v53, %v531_v47  ;;  %v803_v55 = vsel %vm5449_vm5, 0, %v802_v49 }
  0xc7   : > { %v850_v35 = vpack.c.bf16 %v696_v29, %v696_v29  ;;  %v628_v52 = vadd.f32 %v5509_v54, %v627_v48  ;;  %804 = vst [vmem:[#allocation2 + $0x38] sm:$0x1] %v803_v55  ;;  %v3568_v61 = vld [vmem:[#allocation2 + $0x20] sm:$0x1]  ;;  %v4225_v5 = vrot.slane %v5647_v17, 5  ;;  %v3630_v8 = vrot.slane %v3628_v44, 4 }
  0xc8   : > { %2908 = vrot.lane.b32.xlu1 %v2545_v56, %s5356_s26  ;;  %v3626_v56 = vrot.slane %v3624_v36, 5  ;;  %v1318_v10 = vld [vmem:[#allocation2 + $0x1c] sm:$0xf]  ;;  %v2564_v12 = vrot.slane %v2563_v45, 4  ;;  %v2568_v3 = vrot.slane %v2566_v46, 5  ;;  %v4228_v25 = vrot.slane %v4129_v60, 5 }
  0xc9   : > { %v930_v41 = vshrl.u32 %v850_v35, 16  ;;  %v933_v42 = vshll.u32 %v850_v35, 16  ;;  %1350 = vst.msk [vmem:[#allocation3 + $0x14] sm:$0xf] %vm722_vm2, %v1318_v10  ;;  %v4127_v19 = vld [vmem:[#allocation2 + $0x18] sm:$0xe] }
  0xca   : > { %v3627_v4 = vsel %vm5477_vm13, %v3622_v43, %v3626_v56  ;;  %v4227_v24 = vrot.slane %v4225_v5, 4  ;;  %v3634_v26 = vshll.u32 %v3568_v61, 16  ;;  %v2569_v28 = vsel %vm5477_vm13, %v2564_v12, %v2568_v3  ;;  %v1314_v32 = vld [vmem:[#allocation2 + $0x4] sm:$0xf]  ;;  %v5288_v33 = vld [vmem:[%s5433_s18 + $0x48] sm:$0xff] }
  0xcb   : > { %3437 = vrot.lane.b32.xlu0 %v3373_v58, %s5358_s28  ;;  %v932_v50 = vrot.slane %v930_v41, 7  ;;  %v5132_v58 = vrot.slane %v3038_v38, 9  ;;  %v1320_v16 = vld [vmem:[#allocation2 + $0x28] sm:$0xf]  ;;  %v3631_v59 = vor.u32 %v3630_v8, %v3626_v56  ;;  %v5147_v34 = vrot.slane %v4127_v19, 9 }
  0xcc   : > { %2910 = vrot.lane.b32.xlu2 %v2559_v0, %s5356_s26  ;;  %v697_v0 = vmax.f32 %v532_v51, %v628_v52  ;;  %1352 = vst.msk [vmem:[#allocation3 + $0x1c] sm:$0xf] %vm722_vm2, %v1320_v16  ;;  %v1490_v38 = vshrl.u32 %v5589_v20, 16  ;;  %v1815_v20 = vpop.permute.xlu0 %1814  ;;  %v1949_v45 = vld [vmem:[#allocation2 + $0x20] sm:$0x1]  ;;  %v2058_v49 = vrot.slane %v2056_v9, 4 }
  0xcd   : > { %v1222_v57 = vld [vmem:[#allocation2 + $0x30] sm:$0xf]  ;;  %v935_v62 = vor.u32 %v933_v42, %v932_v50  ;;  %v3141_v18 = vsel %vm5458_vm8, %v5132_v58, %v3140_v2  ;;  %v936_v29 = vrot.slane %v932_v50, 4  ;;  %1346 = vst.msk [vmem:[#allocation3 + $0x4] sm:$0xf] %vm722_vm2, %v1314_v32  ;;  %v3632_v41 = vrot.slane %v3631_v59, 4 }
  0xce   : > { %v851_v14 = vpack.c.bf16 %v697_v0, %v697_v0  ;;  %v1226_v2 = vld [vmem:[#allocation2 + $0x38] sm:$0x1]  ;;  %v4226_v44 = vsel %vm5458_vm8, %v5147_v34, %v4225_v5  ;;  %v1492_v46 = vrot.slane %v1490_v38, 4  ;;  %1910 = vst.msk [vmem:[#allocation3 + $0x4] sm:$0xf] %vm1908_vm4, %v1815_v20  ;;  %v2059_v17 = vrot.slane %v1949_v45, 5  ;;  %v630_v58 = vpop.f32.mrf.mxu1 }
  0xcf   : > { %v1223_v13 = vsel %vm5519_vm14, %v935_v62, %v1222_v57  ;;  %5092 = vmatmul.msk.bf16.gmra.mxu0 %vm452_vm1, %v5288_v33  ;;  %5108 = vmatmul.msk.bf16.gmra.mxu1 %vm452_vm1, %v5288_v33  ;;  %v1385_v48 = vld [vmem:[#allocation2 + $0x20] sm:$0x1]  ;;  %2250 = vst.msk [vmem:[#allocation3 + $0x4] sm:$0xf] %vm2248_vm6, %v2155_v1  ;;  %v2285_v50 = vld [vmem:[#allocation2 + $0x24] sm:$0xf]  ;;  %v534_v57 = vpop.f32.mrf.mxu0 }
  0xd0   : > { %2351 = vrot.lane.b32.xlu1 %v2284_v11, %s5355_s25  ;;  %v1319_v11 = vld [vmem:[#allocation2 + $0x24] sm:$0xf]  ;;  %1224 = vst [vmem:[#allocation2 + $0x30] sm:$0xf] %v1223_v13  ;;  %v938_v21 = vshrl.u32 %v851_v14, 16  ;;  %v1493_v51 = vor.u32 %v1492_v46, %v5597_v37  ;;  %v1496_v52 = vshll.u32 %v1385_v48, 16  ;;  %v2060_v61 = vsel %vm5458_vm8, %v2058_v49, %v2059_v17 }
  0xd1   : > { %1351 = vst.msk [vmem:[#allocation3 + $0x18] sm:$0xf] %vm722_vm2, %v1319_v11  ;;  %v749_v55 = vld [vmem:[#allocation2 + $0x3c] sm:$0x1]  ;;  %v1386_v56 = vld [vmem:[#allocation2 + $0x24] sm:$0xf]  ;;  %v535_v9 = vadd.f32 %v5504_v53, %v534_v57  ;;  %v631_v37 = vadd.f32 %v5509_v54, %v630_v58 }
  0xd2   : > { %v750_v60 = vsel %vm5470_vm10, 0, %v749_v55  ;;  %v3041_v62 = vld [vmem:[#allocation2 + $0x24] sm:$0xe]  ;;  %v1494_v0 = vrot.slane %v1493_v51, 4  ;;  %v1498_v1 = vrot.slane %v1496_v52, 5  ;;  %v1501_v11 = vshrl.u32 %v1386_v56, 16 }
  0xd3   : > { %2160 = vrot.lane.b32.xlu0 %v2057_v22, %s5353_s19  ;;  %v941_v22 = vshll.u32 %v851_v14, 16  ;;  %v5700_v63 = vld [vmem:[#allocation2 + $0x24] sm:$0xe]  ;;  %751 = vst [vmem:[#allocation2 + $0x3c] sm:$0x1] %v750_v60  ;;  %v1504_v12 = vshll.u32 %v1386_v56, 16  ;;  %v698_v3 = vmax.f32 %v535_v9, %v631_v37 }
  0xd4   : > { %3249 = vrot.lane.b32.xlu2 %v3144_v30, %s5357_s27  ;;  %v940_v30 = vrot.slane %v938_v21, 7  ;;  %v3569_v5 = vld [vmem:[#allocation2 + $0x24] sm:$0xf]  ;;  %v2286_v8 = vld [vmem:[#allocation2 + $0x28] sm:$0xf]  ;;  %v5133_v13 = vrot.slane %v3041_v62, 9  ;;  %v1813_v38 = vpop.permute.xlu0 %1812 }
  0xd5   : > { %v5707_v10 = vld [vmem:[#allocation2 + $0x28] sm:$0xf]  ;;  %v1313_v14 = vld [vmem:[#allocation2] sm:$0xf]  ;;  %v2480_v19 = vld [vmem:[#allocation2 + $0x24] sm:$0xf]  ;;  %v852_v21 = vpack.c.bf16 %v698_v3, %v698_v3 }
  0xd6   : > { %v943_v35 = vor.u32 %v941_v22, %v940_v30  ;;  %v945_v36 = vrot.slane %v940_v30, 4  ;;  %1345 = vst.msk [vmem:[#allocation3] sm:$0xf] %vm722_vm2, %v1313_v14  ;;  %v1499_v22 = vsel %vm5477_vm13, %v1494_v0, %v1498_v1  ;;  %v4130_v59 = vld [vmem:[#allocation2 + $0x24] sm:$0xe]  ;;  %v1506_v30 = vrot.slane %v1504_v12, 5  ;;  %v632_v45 = vpop.f32.mrf.mxu1 }
  0xd7   : > { %v950_v32 = vshll.u32 %v852_v21, 16  ;;  %v805_v33 = vld [vmem:[#allocation2 + $0x44] sm:$0x1]  ;;  %v5717_v34 = vld [vmem:[#allocation2 + $0x28] sm:$0xf]  ;;  %v633_v48 = vadd.f32 %v5509_v54, %v632_v45  ;;  %v5289_v49 = vld [vmem:[%s5433_s18 + $0x50] sm:$0xff] }
  0xd8   : > { %3439 = vrot.lane.b32.xlu1 %v3374_v39, %s5358_s28  ;;  %v4229_v39 = vsel %vm5458_vm8, %v4227_v24, %v4228_v25  ;;  %v944_v42 = vsel %vm5530_vm3, %v936_v29, %v943_v35  ;;  %v1227_v43 = vsel %vm5470_vm10, %v945_v36, %v1226_v2  ;;  %v5118_v24 = vrot.slane %v5700_v63, 9  ;;  %v5719_v35 = vld [vmem:[#allocation2 + $0x28] sm:$0xf]  ;;  %1909 = vst.msk [vmem:[#allocation3] sm:$0xf] %vm1908_vm4, %v1813_v38 }
  0xd9   : > { %1225 = vst.msk [vmem:[#allocation2 + $0x34] sm:$0xf] %vm722_vm2, %v944_v42  ;;  %v2063_v25 = vrot.slane %v5707_v10, 5  ;;  %v1503_v29 = vrot.slane %v1501_v11, 4  ;;  %v947_v2 = vshrl.u32 %v852_v21, 16  ;;  %v2571_v36 = vshrl.u32 %v2480_v19, 16 }
  0xda   : > { %1228 = vst [vmem:[#allocation2 + $0x38] sm:$0x1] %v1227_v43  ;;  %v2574_v43 = vshll.u32 %v2480_v19, 16  ;;  %v5148_v52 = vrot.slane %v4130_v59, 9  ;;  %v4232_v55 = vrot.slane %v5717_v34, 5  ;;  %v1510_v57 = vshll.u32 %v5719_v35, 16 }
  0xdb   : > { %3441 = vrot.lane.b32.xlu0 %v3375_v40, %s5358_s28  ;;  %v3636_v40 = vrot.slane %v3634_v26, 5  ;;  %v3642_v26 = vshll.u32 %v3569_v5, 16  ;;  %v949_v20 = vrot.slane %v947_v2, 7  ;;  %v3570_v58 = vld [vmem:[#allocation2 + $0x28] sm:$0xf]  ;;  %v2573_v60 = vrot.slane %v2571_v36, 4 }
  0xdc   : > { %3998 = vrot.lane.b32.xlu2 %v3627_v4, %s5359_s29  ;;  %v5705_v4 = vld [vmem:[#allocation2 + $0x28] sm:$0xf]  ;;  %v2064_v63 = vsel %vm5458_vm8, %v5118_v24, %v2063_v25  ;;  %v3648_v1 = vshll.u32 %v3570_v58, 16  ;;  %v4233_v12 = vsel %vm5458_vm8, %v5148_v52, %v4232_v55  ;;  %v5747_v3 = vrot.slane %v1510_v57, 5  ;;  %v1952_v19 = vld [vmem:[#allocation2 + $0x2c] sm:$0x1] }
  0xdd   : > { %v3637_v47 = vsel %vm5477_vm13, %v3632_v41, %v3636_v40  ;;  %v3147_v16 = vrot.slane %v5705_v4, 5  ;;  %v806_v40 = vsel %vm5449_vm5, 0, %v805_v33  ;;  %v2153_v41 = vpop.permute.xlu2 %2152  ;;  %v3644_v46 = vrot.slane %v3642_v26, 5  ;;  %v4132_v38 = vld [vmem:[#allocation2 + $0x2c] sm:$0x1] }
  0xde   : > { %2249 = vst.msk [vmem:[#allocation3] sm:$0xf] %vm2248_vm6, %v2153_v41  ;;  %v952_v51 = vor.u32 %v950_v32, %v949_v20  ;;  %v953_v21 = vrot.slane %v949_v20, 4  ;;  %v3650_v59 = vrot.slane %v3648_v1, 5  ;;  %v2065_v33 = vrot.slane %v2063_v25, 4  ;;  %v635_v57 = vpop.f32.mrf.mxu1 }
  0xdf   : > { %v3148_v17 = vsel %vm5458_vm8, %v5133_v13, %v3147_v16  ;;  %807 = vst [vmem:[#allocation2 + $0x44] sm:$0x1] %v806_v40  ;;  %5093 = vmatmul.msk.bf16.gmra.mxu0 %vm452_vm1, %v5289_v49  ;;  %5109 = vmatmul.msk.bf16.gmra.mxu1 %vm452_vm1, %v5289_v49  ;;  %v2066_v34 = vrot.slane %v1952_v19, 5  ;;  %v752_v10 = vld [vmem:[#allocation2 + $0x48] sm:$0x1] }
  0xe0   : > { %3247 = vrot.lane.b32.xlu1 %v3141_v18, %s5357_s27  ;;  %v3639_v18 = vshrl.u32 %v3569_v5, 16  ;;  %v2481_v5 = vld [vmem:[#allocation2 + $0x28] sm:$0xf]  ;;  %v2483_v25 = vld [vmem:[#allocation2 + $0x30] sm:$0xf]  ;;  %v753_v20 = vsel %vm5470_vm10, 0, %v752_v10 }
  0xe1   : > { %v2580_v26 = vshll.u32 %v2481_v5, 16  ;;  %v2584_v32 = vshrl.u32 %v2481_v5, 16  ;;  %754 = vst [vmem:[#allocation2 + $0x48] sm:$0x1] %v753_v20  ;;  %v2067_v49 = vsel %vm5458_vm8, %v2065_v33, %v2066_v34  ;;  %v5798_v33 = vld [vmem:[%s7377_s3] ss:$0 sm:$0xff] }
  0xe2   : > { %v3641_v42 = vrot.slane %v3639_v18, 4  ;;  %v3652_v18 = vshrl.u32 %v3570_v58, 16  ;;  %v2595_v58 = vshrl.u32 %v2483_v25, 16 }
  0xe3   : > { %2912 = vrot.lane.b32.xlu0 %v2569_v28, %s5356_s26  ;;  %v3376_v28 = vld [vmem:[#allocation2 + $0x28] sm:$0xf]  ;;  %v2586_v52 = vrot.slane %v2584_v32, 4 }
  0xe4   : > { %4337 = vrot.lane.b32.xlu2 %v4229_v39, %s5360_s11  ;;  %v536_v39 = vpop.f32.mrf.mxu0  ;;  %v3645_v9 = vor.u32 %v3644_v46, %v3641_v42  ;;  %v3654_v40 = vrot.slane %v3652_v18, 4  ;;  %v4234_v46 = vrot.slane %v4232_v55, 4  ;;  %v1514_v18 = vshrl.u32 %v5719_v35, 16 }
  0xe6   : > { %v3646_v14 = vrot.slane %v3645_v9, 4 }
  0xe8   : > { %4335 = vrot.lane.b32.xlu1 %v4226_v44, %s5360_s11  ;;  %v537_v44 = vadd.f32 %v5504_v53, %v536_v39  ;;  %v3651_v36 = vsel %vm5477_vm13, %v3646_v14, %v3650_v59  ;;  %v3571_v39 = vld [vmem:[#allocation2 + $0x2c] sm:$0x1]  ;;  %v808_v14 = vld [vmem:[#allocation2 + $0x50] sm:$0x1] }
  0xe9   : > { %v809_v4 = vsel %vm5449_vm5, 0, %v808_v14 }
  0xea   : > { %v699_v56 = vmax.f32 %v537_v44, %v633_v48  ;;  %v3043_v48 = vld [vmem:[#allocation2 + $0x2c] sm:$0x1]  ;;  %810 = vst [vmem:[#allocation2 + $0x50] sm:$0x1] %v809_v4  ;;  %v1390_v4 = vld [vmem:[#allocation2 + $0x34] sm:$0xf] }
  0xeb   : > { %4000 = vrot.lane.b32.xlu0 %v3637_v47, %s5359_s29  ;;  %v1229_v47 = vld [vmem:[#allocation2 + $0x3c] sm:$0xf] }
  0xec   : > { %2353 = vrot.lane.b32.xlu2 %v2285_v50, %s5355_s25  ;;  %v1507_v50 = vor.u32 %v1506_v30, %v1503_v29  ;;  %v1230_v62 = vsel %vm5519_vm14, %v952_v51, %v1229_v47  ;;  %v853_v37 = vpack.c.bf16 %v699_v56, %v699_v56  ;;  %v4235_v47 = vrot.slane %v4132_v38, 5  ;;  %v2482_v51 = vld [vmem:[#allocation2 + $0x2c] sm:$0x1]  ;;  %v539_v56 = vpop.f32.mrf.mxu0 }
  0xed   : > { %1231 = vst [vmem:[#allocation2 + $0x3c] sm:$0xf] %v1230_v62  ;;  %v540_v55 = vadd.f32 %v5504_v53, %v539_v56  ;;  %v1321_v62 = vld [vmem:[#allocation2 + $0x30] sm:$0xf] }
  0xee   : > { %v1508_v0 = vrot.slane %v1507_v50, 4  ;;  %v958_v11 = vshll.u32 %v853_v37, 16  ;;  %v3658_v50 = vshll.u32 %v3571_v39, 16  ;;  %1353 = vst.msk [vmem:[#allocation3 + $0x20] sm:$0xf] %vm722_vm2, %v1321_v62  ;;  %v4236_v9 = vsel %vm5458_vm8, %v4234_v46, %v4235_v47 }
  0xef   : > { %v1516_v39 = vrot.slane %v1514_v18, 4 }
  0xf0   : > { %2162 = vrot.lane.b32.xlu1 %v2060_v61, %s5353_s19  ;;  %v2576_v61 = vrot.slane %v2574_v43, 5  ;;  %v1513_v24 = vsel %vm5477_vm13, %v1508_v0, %v5747_v3  ;;  %v2582_v43 = vrot.slane %v2580_v26, 5  ;;  %v3150_v0 = vrot.slane %v3043_v48, 5  ;;  %v5817_v48 = vld [vmem:[#allocation2 + $0x34] sm:$0xf] }
  0xf1   : > { %v3660_v53 = vrot.slane %v3658_v50, 5  ;;  %v1517_v46 = vor.u32 %v1516_v39, %v5747_v3  ;;  %v2287_v50 = vld [vmem:[#allocation2 + $0x30] sm:$0xf] }
  0xf2   : > { %v2577_v13 = vor.u32 %v2576_v61, %v2573_v60  ;;  %v2598_v60 = vshll.u32 %v2483_v25, 16  ;;  %v636_v61 = vadd.f32 %v5509_v54, %v635_v57  ;;  %v2590_v54 = vshll.u32 %v2482_v51, 16  ;;  %v1389_v57 = vld [vmem:[#allocation2 + $0x30] sm:$0xf] }
  0xf3   : > { %2355 = vrot.lane.b32.xlu0 %v2286_v8, %s5355_s25  ;;  %v955_v8 = vshrl.u32 %v853_v37, 16  ;;  %v3149_v37 = vrot.slane %v3147_v16, 4 }
  0xf4   : > { %1822 = vrot.lane.b32.xlu2 %v1499_v22, %s5354_s20  ;;  %v2578_v2 = vrot.slane %v2577_v13, 4  ;;  %v700_v1 = vmax.f32 %v540_v55, %v636_v61  ;;  %v541_v35 = vpop.f32.mrf.mxu0  ;;  %v1518_v61 = vrot.slane %v1517_v46, 4 }
  0xf5   : > { %v957_v22 = vrot.slane %v955_v8, 7  ;;  %v2587_v8 = vor.u32 %v2586_v52, %v2582_v43  ;;  %v3151_v19 = vsel %vm5458_vm8, %v3149_v37, %v3150_v0  ;;  %v542_v34 = vadd.f32 %v5798_v33, %v541_v35  ;;  %v3044_v37 = vld [vmem:[#allocation2 + $0x30] sm:$0xe]  ;;  %v755_v35 = vld [vmem:[#allocation2 + $0x54] sm:$0x1] }
  0xf6   : > { %v2583_v45 = vsel %vm5477_vm13, %v2578_v2, %v2582_v43  ;;  %v854_v13 = vpack.c.bf16 %v700_v1, %v700_v1  ;;  %v1525_v0 = vshrl.u32 %v1389_v57, 16  ;;  %v1528_v1 = vshll.u32 %v1389_v57, 16 }
  0xf7   : > { %v960_v29 = vor.u32 %v958_v11, %v957_v22  ;;  %v962_v30 = vrot.slane %v957_v22, 4  ;;  %v2597_v11 = vrot.slane %v2595_v58, 4  ;;  %v2588_v26 = vrot.slane %v2587_v8, 4  ;;  %v2288_v8 = vld [vmem:[#allocation2 + $0x34] sm:$0xf] }
  0xf8   : > { %3443 = vrot.lane.b32.xlu1 %v3376_v28, %s5358_s28  ;;  %v1233_v28 = vld [vmem:[#allocation2 + $0x44] sm:$0x1]  ;;  %v967_v22 = vshll.u32 %v854_v13, 16  ;;  %v3154_v58 = vrot.slane %v5817_v48, 5  ;;  %v5134_v18 = vrot.slane %v3044_v37, 9 }
  0xf9   : > { %v961_v41 = vsel %vm5530_vm3, %v953_v21, %v960_v29  ;;  %v1234_v42 = vsel %vm5470_vm10, %v962_v30, %v1233_v28  ;;  %v964_v21 = vshrl.u32 %v854_v13, 16  ;;  %v2592_v28 = vrot.slane %v2590_v54, 5  ;;  %v637_v29 = vpop.f32.mrf.mxu1  ;;  %v5290_v30 = vld [vmem:[%s5433_s18 + $0x58] sm:$0xff] }
  0xfa   : > { %1232 = vst.msk [vmem:[#allocation2 + $0x40] sm:$0xf] %vm722_vm2, %v961_v41  ;;  %5094 = vmatmul.msk.bf16.gmra.mxu0 %vm452_vm1, %v5290_v30  ;;  %5110 = vmatmul.msk.bf16.gmra.mxu1 %vm452_vm1, %v5290_v30  ;;  %v3156_v54 = vrot.slane %v3154_v58, 4  ;;  %v1538_v30 = vshrl.u32 %v1390_v4, 16  ;;  %v2486_v37 = vld [vmem:[#allocation2 + $0x3c] sm:$0xf] }
  0xfb   : > { %3251 = vrot.lane.b32.xlu0 %v3148_v17, %s5357_s27  ;;  %1235 = vst [vmem:[#allocation2 + $0x44] sm:$0x1] %v1234_v42  ;;  %v3655_v17 = vor.u32 %v3654_v40, %v3650_v59  ;;  %v5792_v59 = vld [vmem:[#allocation2 + $0x34] sm:$0xf]  ;;  %v966_v32 = vrot.slane %v964_v21, 7  ;;  %v2593_v25 = vsel %vm5477_vm13, %v2588_v26, %v2592_v28  ;;  %v1530_v26 = vrot.slane %v1528_v1, 5 }
  0xfc   : > { %2164 = vrot.lane.b32.xlu2 %v2064_v63, %s5353_s19  ;;  %v1322_v63 = vld [vmem:[#allocation2 + $0x34] sm:$0xf]  ;;  %v1236_v40 = vld [vmem:[#allocation2 + $0x48] sm:$0xf]  ;;  %v2604_v41 = vshll.u32 %v5792_v59, 16  ;;  %v2608_v14 = vshrl.u32 %v5792_v59, 16 }
  0xfd   : > { %1354 = vst.msk [vmem:[#allocation3 + $0x24] sm:$0xf] %vm722_vm2, %v1322_v63  ;;  %v3656_v5 = vrot.slane %v3655_v17, 4  ;;  %v1388_v42 = vld [vmem:[#allocation2 + $0x2c] sm:$0x1]  ;;  %v969_v43 = vor.u32 %v967_v22, %v966_v32  ;;  %v1540_v48 = vrot.slane %v1538_v30, 4 }
  0xfe   : > { %v1520_v47 = vshll.u32 %v1388_v42, 16  ;;  %v5821_v51 = vrot.slane %v2604_v41, 5  ;;  %v3046_v63 = vld [vmem:[#allocation2 + $0x38] sm:$0x1]  ;;  %v1953_v22 = vld [vmem:[#allocation2 + $0x30] sm:$0xe] }
  0xff   : > { %v5841_v28 = vld [vmem:[#allocation2 + $0x34] sm:$0xf]  ;;  %v5119_v39 = vrot.slane %v1953_v22, 9  ;;  %v2622_v22 = vshll.u32 %v2486_v37, 16 }
 0x100   : > { %4339 = vrot.lane.b32.xlu1 %v4233_v12, %s5360_s11  ;;  %v2600_v12 = vrot.slane %v2598_v60, 5  ;;  %v970_v60 = vrot.slane %v966_v32, 4  ;;  %v1522_v62 = vrot.slane %v1520_v47, 5  ;;  %v2070_v42 = vrot.slane %v5841_v28, 5 }
 0x101   : > { %v640_v32 = vpop.f32.mrf.mxu1  ;;  %v1324_v46 = vld [vmem:[#allocation2 + $0x40] sm:$0xf] }
 0x102   : > { %v2601_v2 = vor.u32 %v2600_v12, %v2597_v11  ;;  %v3157_v11 = vrot.slane %v3046_v63, 5  ;;  %v1523_v21 = vsel %vm5477_vm13, %v1518_v61, %v1522_v62  ;;  %v2071_v57 = vsel %vm5458_vm8, %v5119_v39, %v2070_v42  ;;  %1356 = vst.msk [vmem:[#allocation3 + $0x2c] sm:$0xf] %vm722_vm2, %v1324_v46  ;;  %v811_v62 = vld [vmem:[#allocation2 + $0x5c] sm:$0x1] }
 0x103   : > { %1824 = vrot.lane.b32.xlu0 %v1513_v24, %s5354_s20  ;;  %v3661_v24 = vsel %vm5477_vm13, %v3656_v5, %v3660_v53 }
 0x104   : > { %4002 = vrot.lane.b32.xlu2 %v3651_v36, %s5359_s29  ;;  %v5804_v36 = vld [vmem:[%s7378_s4] ss:$0 sm:$0xff]  ;;  %v2602_v20 = vrot.slane %v2601_v2, 4  ;;  %v3158_v59 = vsel %vm5458_vm8, %v3156_v54, %v3157_v11  ;;  %v544_v2 = vpop.f32.mrf.mxu0  ;;  %v1323_v11 = vld [vmem:[#allocation2 + $0x3c] sm:$0xf] }
 0x105   : > { %v638_v38 = vadd.f32 %v5804_v36, %v637_v29  ;;  %v1534_v29 = vshll.u32 %v1390_v4, 16  ;;  %v641_v41 = vadd.f32 %v5804_v36, %v640_v32  ;;  %1355 = vst.msk [vmem:[#allocation3 + $0x28] sm:$0xf] %vm722_vm2, %v1323_v11 }
 0x106   : > { %v2348_v44 = vpop.permute.xlu2 %2347  ;;  %v2607_v3 = vsel %vm5477_vm13, %v2602_v20, %v5821_v51  ;;  %v3155_v20 = vsel %vm5458_vm8, %v5134_v18, %v3154_v58 }
 0x107   : > { %2443 = vst.msk [vmem:[#allocation3 + $0x4] sm:$0xf] %vm2441_vm7, %v2348_v44  ;;  %v701_v10 = vmax.f32 %v542_v34, %v638_v38  ;;  %v1237_v44 = vsel %vm5519_vm14, %v969_v43, %v1236_v40  ;;  %v756_v34 = vsel %vm5470_vm10, 0, %v755_v35  ;;  %v545_v40 = vadd.f32 %v5798_v33, %v544_v2 }
 0x108   : > { %2914 = vrot.lane.b32.xlu1 %v2583_v45, %s5356_s26  ;;  %1238 = vst [vmem:[#allocation2 + $0x48] sm:$0xf] %v1237_v44  ;;  %v2485_v44 = vld [vmem:[#allocation2 + $0x38] sm:$0x1]  ;;  %v1536_v47 = vrot.slane %v1534_v29, 5 }
 0x109   : > { %v855_v45 = vpack.c.bf16 %v701_v10, %v701_v10  ;;  %757 = vst [vmem:[#allocation2 + $0x54] sm:$0x1] %v756_v34  ;;  %v2610_v10 = vrot.slane %v2608_v14, 4  ;;  %v642_v1 = vpop.f32.mrf.mxu1  ;;  %v2487_v29 = vld [vmem:[#allocation2 + $0x40] sm:$0xf] }
 0x10a   : > { %v1541_v63 = vor.u32 %v1540_v48, %v1536_v47  ;;  %v643_v54 = vadd.f32 %v5804_v36, %v642_v1  ;;  %v2632_v46 = vshrl.u32 %v2487_v29, 16  ;;  %v758_v1 = vld [vmem:[#allocation2 + $0x60] sm:$0x1] }
 0x10b   : > { %2166 = vrot.lane.b32.xlu0 %v2067_v49, %s5353_s19  ;;  %v972_v52 = vshrl.u32 %v855_v45, 16  ;;  %v975_v56 = vshll.u32 %v855_v45, 16  ;;  %v702_v45 = vmax.f32 %v545_v40, %v641_v41  ;;  %v1956_v40 = vld [vmem:[#allocation2 + $0x3c] sm:$0xe] }
 0x10c   : > { %4341 = vrot.lane.b32.xlu2 %v4236_v9, %s5360_s11  ;;  %v1240_v9 = vld [vmem:[#allocation2 + $0x50] sm:$0x1]  ;;  %v1542_v35 = vrot.slane %v1541_v63, 4  ;;  %v3048_v63 = vld [vmem:[#allocation2 + $0x40] sm:$0xf] }
 0x10d   : > { %v974_v55 = vrot.slane %v972_v52, 7  ;;  %v856_v52 = vpack.c.bf16 %v702_v45, %v702_v45  ;;  %v2628_v45 = vshll.u32 %v2487_v29, 16 }
 0x10e   : > { %v5785_v16 = vpop.permute.xlu2 %3243 }
 0x10f   : > { %v977_v5 = vor.u32 %v975_v56, %v974_v55  ;;  %v979_v53 = vrot.slane %v974_v55, 4  ;;  %v2614_v55 = vshll.u32 %v2485_v44, 16  ;;  %v984_v61 = vshll.u32 %v856_v52, 16  ;;  %v5896_v44 = vld [vmem:[#allocation2 + $0x40] sm:$0xf] }
 0x110   : > { %3253 = vrot.lane.b32.xlu1 %v3151_v19, %s5357_s27  ;;  %v1243_v18 = vld [vmem:[#allocation2 + $0x54] sm:$0xf] }
 0x111   : > { %v978_v12 = vsel %vm5530_vm3, %v970_v60, %v977_v5  ;;  %v1241_v13 = vsel %vm5470_vm10, %v979_v53, %v1240_v9  ;;  %v2611_v60 = vor.u32 %v2610_v10, %v5821_v51  ;;  %v812_v51 = vsel %vm5449_vm5, 0, %v811_v62  ;;  %v3047_v62 = vld [vmem:[#allocation2 + $0x3c] sm:$0xe] }
 0x112   : > { %1239 = vst.msk [vmem:[#allocation2 + $0x4c] sm:$0xf] %vm722_vm2, %v978_v12  ;;  %v2616_v14 = vrot.slane %v2614_v55, 5 }
 0x113   : > { %4004 = vrot.lane.b32.xlu0 %v3661_v24, %s5359_s29  ;;  %v1527_v24 = vrot.slane %v1525_v0, 4  ;;  %1242 = vst [vmem:[#allocation2 + $0x50] sm:$0x1] %v1241_v13  ;;  %v546_v0 = vpop.f32.mrf.mxu0  ;;  %v2612_v13 = vrot.slane %v2611_v60, 4 }
 0x114   : > { %2916 = vrot.lane.b32.xlu2 %v2593_v25, %s5356_s26  ;;  %813 = vst [vmem:[#allocation2 + $0x5c] sm:$0x1] %v812_v51 }
 0x115   : > { %v1531_v43 = vor.u32 %v1530_v26, %v1527_v24  ;;  %v2617_v34 = vsel %vm5477_vm13, %v2612_v13, %v2616_v14 }
 0x116   : > { %v5819_v49 = vpop.permute.xlu2 %2158  ;;  %v2346_v17 = vpop.permute.xlu1 %2345 }
 0x117   : > { %2442 = vst.msk [vmem:[#allocation3] sm:$0xf] %vm2441_vm7, %v2346_v17  ;;  %v5291_v17 = vld [vmem:[%s5433_s18 + $0x60] sm:$0xff]  ;;  %v1532_v58 = vrot.slane %v1531_v43, 4  ;;  %v2624_v43 = vrot.slane %v2622_v22, 5 }
 0x118   : > { %2357 = vrot.lane.b32.xlu1 %v2287_v50, %s5355_s25  ;;  %v1391_v50 = vld [vmem:[#allocation2 + $0x38] sm:$0x1]  ;;  %5095 = vmatmul.msk.bf16.gmra.mxu0 %vm452_vm1, %v5291_v17 }
 0x119   : > { %5111 = vmatmul.msk.bf16.gmra.mxu1 %vm452_vm1, %v5291_v17  ;;  %v1544_v9 = vshll.u32 %v1391_v50, 16  ;;  %v1537_v12 = vsel %vm5477_vm13, %v1532_v58, %v1536_v47  ;;  %v5120_v17 = vrot.slane %v1956_v40, 9  ;;  %v1392_v58 = vld [vmem:[#allocation2 + $0x3c] sm:$0xf]  ;;  %v3049_v40 = vld [vmem:[#allocation2 + $0x44] sm:$0x1] }
 0x11b   : > { %2918 = vrot.lane.b32.xlu0 %v2607_v3, %s5356_s26  ;;  %v2289_v3 = vld [vmem:[#allocation2 + $0x3c] sm:$0xf] }
 0x11c   : > { %2359 = vrot.lane.b32.xlu2 %v2288_v8, %s5355_s25  ;;  %v547_v8 = vadd.f32 %v5798_v33, %v546_v0  ;;  %v1247_v50 = vld [vmem:[#allocation2 + $0x5c] sm:$0x1] }
 0x11e   : > { %v1821_v19 = vpop.permute.xlu2 %1820  ;;  %v703_v26 = vmax.f32 %v547_v8, %v643_v54  ;;  %v759_v54 = vsel %vm5470_vm10, 0, %v758_v1 }
 0x11f   : > { %1913 = vst.msk [vmem:[#allocation3 + $0x10] sm:$0xf] %vm1908_vm4, %v1821_v19  ;;  %v1955_v19 = vld [vmem:[#allocation2 + $0x38] sm:$0x1] }
 0x120   : > { %1826 = vrot.lane.b32.xlu1 %v1523_v21, %s5354_s20  ;;  %v2619_v21 = vshrl.u32 %v2486_v37, 16  ;;  %v857_v2 = vpack.c.bf16 %v703_v26, %v703_v26  ;;  %v2073_v39 = vrot.slane %v1955_v19, 5  ;;  %760 = vst [vmem:[#allocation2 + $0x60] sm:$0x1] %v759_v54  ;;  %v3161_v26 = vrot.slane %v3048_v63, 5 }
 0x121   : > { %v2489_v54 = vld [vmem:[#allocation2 + $0x48] sm:$0xf] }
 0x122   : > { %v2157_v38 = vpop.permute.xlu1 %2156  ;;  %v2621_v41 = vrot.slane %v2619_v21, 4  ;;  %v989_v10 = vshrl.u32 %v857_v2, 16  ;;  %v5292_v21 = vld [vmem:[%s5433_s18 + $0x68] sm:$0xff] }
 0x123   : > { %3257 = vrot.lane.b32.xlu0 %v3158_v59, %s5357_s27  ;;  %v1546_v59 = vrot.slane %v1544_v9, 5  ;;  %v2634_v9 = vrot.slane %v2632_v46, 4 }
 0x124   : > { %3255 = vrot.lane.b32.xlu2 %v3155_v20, %s5357_s27  ;;  %v991_v47 = vrot.slane %v989_v10, 7 }
 0x125   : > { %v2907_v25 = vpop.permute.xlu0 %2906  ;;  %v1547_v20 = vsel %vm5477_vm13, %v1542_v35, %v1546_v59  ;;  %v1393_v35 = vld [vmem:[#allocation2 + $0x40] sm:$0xf] }
 0x126   : > { %3003 = vst.msk [vmem:[#allocation3] sm:$0xf] %vm3002_vm9, %v2907_v25  ;;  %v5858_v56 = vpop.permute.xlu2 %2910  ;;  %v992_v25 = vshll.u32 %v857_v2, 16  ;;  %v996_v55 = vrot.slane %v991_v47, 4  ;;  %v1558_v10 = vshll.u32 %v1393_v35, 16 }
 0x127   : > { %3340 = vst.msk [vmem:[#allocation3] sm:$0xf] %vm3339_vm11, %v5785_v16  ;;  %v981_v16 = vshrl.u32 %v856_v52, 16  ;;  %v1250_v63 = vld [vmem:[#allocation2 + $0x60] sm:$0xf] }
 0x128   : > { %2168 = vrot.lane.b32.xlu1 %v2071_v57, %s5353_s19  ;;  %v2077_v57 = vrot.slane %v5896_v44, 5  ;;  %v994_v60 = vor.u32 %v992_v25, %v991_v47  ;;  %v1248_v0 = vsel %vm5470_vm10, %v996_v55, %v1247_v50  ;;  %5096 = vmatmul.msk.bf16.gmra.mxu0 %vm452_vm1, %v5292_v21  ;;  %v1562_v50 = vshrl.u32 %v1393_v35, 16 }
 0x129   : > { %v5872_v53 = vrot.slane %v981_v16, 7  ;;  %v2290_v16 = vld [vmem:[#allocation2 + $0x40] sm:$0xf]  ;;  %1249 = vst [vmem:[#allocation2 + $0x5c] sm:$0x1] %v1248_v0  ;;  %5112 = vmatmul.msk.bf16.gmra.mxu1 %vm452_vm1, %v5292_v21  ;;  %v5957_v1 = vrot.slane %v1558_v10, 5 }
 0x12a   : > { %v1817_v5 = vpop.permute.xlu1 %1816  ;;  %v2078_v13 = vsel %vm5458_vm8, %v5120_v17, %v2077_v57  ;;  %v3164_v17 = vrot.slane %v3049_v40, 5  ;;  %v1395_v21 = vld [vmem:[#allocation2 + $0x48] sm:$0xf]  ;;  %v5311_v40 = vld [vmem:[%s7379_s5] sm:$0xff] }
 0x12b   : > { %2361 = vrot.lane.b32.xlu0 %v2289_v3, %s5355_s25  ;;  %1911 = vst.msk [vmem:[#allocation3 + $0x8] sm:$0xf] %vm1908_vm4, %v1817_v5  ;;  %v986_v24 = vor.u32 %v984_v61, %v5872_v53  ;;  %v2625_v3 = vor.u32 %v2624_v43, %v2621_v41  ;;  %v2630_v61 = vrot.slane %v2628_v45, 5  ;;  %v1549_v5 = vshrl.u32 %v1392_v58, 16 }
 0x12c   : > { %2251 = vst.msk [vmem:[#allocation3 + $0x8] sm:$0xf] %vm2248_vm6, %v2157_v38  ;;  %1828 = vrot.lane.b32.xlu2 %v1537_v12, %s5354_s20  ;;  %v2072_v38 = vrot.slane %v2070_v42, 4  ;;  %v987_v42 = vrot.slane %v5872_v53, 4  ;;  %v1552_v53 = vshll.u32 %v1392_v58, 16  ;;  %v549_v8 = vpop.f32.mrf.mxu0  ;;  %v645_v12 = vpop.f32.mrf.mxu1  ;;  %v1573_v10 = vshrl.u32 %v1395_v21, 16 }
 0x12d   : > { %v5880_v4 = vpop.permute.xlu0 %3245  ;;  %v1244_v30 = vsel %vm5519_vm14, %v986_v24, %v1243_v18  ;;  %v550_v11 = vadd.f32 %v5798_v33, %v549_v8  ;;  %v2635_v14 = vor.u32 %v2634_v9, %v2630_v61  ;;  %v646_v19 = vadd.f32 %v5804_v36, %v645_v12  ;;  %v814_v58 = vld [vmem:[#allocation2 + $0x68] sm:$0x1] }
 0x12e   : > { %v5887_v32 = vpop.permute.xlu2 %3249  ;;  %1245 = vst [vmem:[#allocation2 + $0x54] sm:$0xf] %v1244_v30  ;;  %v2074_v48 = vsel %vm5458_vm8, %v2072_v38, %v2073_v39  ;;  %v995_v37 = vsel %vm5530_vm3, %v987_v42, %v994_v60  ;;  %v5135_v24 = vrot.slane %v3047_v62, 9  ;;  %v1551_v59 = vrot.slane %v1549_v5, 4  ;;  %v4505_v42 = vld [vmem:[%s7380_s6 + $0x10] sm:$0x3] }
 0x12f   : > { %1246 = vst.msk [vmem:[#allocation2 + $0x58] sm:$0xf] %vm722_vm2, %v995_v37  ;;  %v1554_v29 = vrot.slane %v1552_v53, 5  ;;  %v704_v30 = vmax.f32 %v550_v11, %v646_v19  ;;  %v2636_v38 = vrot.slane %v2635_v14, 4  ;;  %v815_v37 = vsel %vm5449_vm5, 0, %v814_v58  ;;  %v5312_v12 = vld [vmem:[%s7379_s5 + $0x8] sm:$0xff] }
 0x130   : > { %2920 = vrot.lane.b32.xlu1 %v2617_v34, %s5356_s26  ;;  %v3162_v43 = vsel %vm5458_vm8, %v5135_v24, %v3161_v26  ;;  %816 = vst [vmem:[#allocation2 + $0x68] sm:$0x1] %v815_v37  ;;  %v5969_v14 = vrot.slane %v1562_v50, 4  ;;  %v5314_v19 = vld [vmem:[%s7380_s6 + $0x8] sm:$0xff] }
 0x131   : > { %v858_v41 = vpack.c.bf16 %v704_v30, %v704_v30  ;;  %v1325_v24 = vld [vmem:[#allocation2 + $0x48] sm:$0xf]  ;;  %v2643_v30 = vshrl.u32 %v2489_v54, 16 }
 0x132   : > { %v1819_v28 = vpop.permute.xlu1 %1818  ;;  %1357 = vst.msk [vmem:[#allocation3 + $0x30] sm:$0xf] %vm722_vm2, %v1325_v24  ;;  %v2291_v50 = vld [vmem:[#allocation2 + $0x48] sm:$0xf] }
 0x133   : > { %1830 = vrot.lane.b32.xlu0 %v1547_v20, %s5354_s20  ;;  %1912 = vst.msk [vmem:[#allocation3 + $0xc] sm:$0xf] %vm1908_vm4, %v1819_v28  ;;  %v1555_v20 = vor.u32 %v1554_v29, %v1551_v59  ;;  %v998_v45 = vshrl.u32 %v858_v41, 16  ;;  %v1001_v46 = vshll.u32 %v858_v41, 16  ;;  %v2292_v59 = vld [vmem:[#allocation2 + $0x4c] sm:$0xf] }
 0x134   : > { %2252 = vst.msk [vmem:[#allocation3 + $0xc] sm:$0xf] %vm2248_vm6, %v5819_v49  ;;  %2170 = vrot.lane.b32.xlu2 %v2074_v48, %s5353_s19  ;;  %v2488_v49 = vld [vmem:[#allocation2 + $0x44] sm:$0x1]  ;;  %v551_v47 = vpop.f32.mrf.mxu0  ;;  %v3163_v48 = vrot.slane %v3161_v26, 4 }
 0x135   : > { %v2350_v52 = vpop.permute.xlu0 %2349  ;;  %v2638_v18 = vshll.u32 %v2488_v49, 16  ;;  %v5949_v55 = vrot.slane %v998_v45, 7  ;;  %v1556_v0 = vrot.slane %v1555_v20, 4  ;;  %v1394_v29 = vld [vmem:[#allocation2 + $0x44] sm:$0x1] }
 0x136   : > { %2444 = vst.msk [vmem:[#allocation3 + $0x8] sm:$0xf] %vm2441_vm7, %v2350_v52  ;;  %v3999_v51 = vpop.permute.xlu2 %3998  ;;  %v4759_v52 = vunpack.c.l.b16 %v4505_v42  ;;  %v3165_v8 = vsel %vm5458_vm8, %v3163_v48, %v3164_v17  ;;  %v5313_v20 = vld [vmem:[%s7380_s6] sm:$0xff]  ;;  %v2645_v42 = vrot.slane %v2643_v30, 4 }
 0x137   : > { %3005 = vst.msk [vmem:[#allocation3 + $0x8] sm:$0xf] %vm3002_vm9, %v5858_v56  ;;  %v2626_v56 = vrot.slane %v2625_v3, 4  ;;  %v2640_v39 = vrot.slane %v2638_v18, 5  ;;  %v647_v3 = vpop.f32.mrf.mxu1  ;;  %v1561_v35 = vsel %vm5477_vm13, %v1556_v0, %v5957_v1  ;;  %v1004_v45 = vrot.slane %v5949_v55, 4 }
 0x138   : > { %2363 = vrot.lane.b32.xlu1 %v2290_v16, %s5355_s25  ;;  %v4762_v9 = vpack.c.b16 %v4759_v52, %v4759_v52  ;;  %v648_v49 = vadd.f32 %v5804_v36, %v647_v3  ;;  %v1254_v48 = vld [vmem:[#allocation2 + $0x68] sm:$0x1]  ;;  %v1565_v52 = vor.u32 %v5969_v14, %v5957_v1  ;;  %v1568_v3 = vshll.u32 %v1394_v29, 16  ;;  %v1960_v29 = vld [vmem:[#allocation2 + $0x4c] sm:$0xf] }
 0x139   : > { %v2631_v34 = vsel %vm5477_vm13, %v2626_v56, %v2630_v61  ;;  %v2641_v60 = vsel %vm5477_vm13, %v2636_v38, %v2640_v39  ;;  %v552_v61 = vadd.f32 %v5798_v33, %v551_v47 }
 0x13a   : > { %v2909_v22 = vpop.permute.xlu1 %2908  ;;  %v4766_v56 = vsel %vm501_vm0, %v4762_v9, 0  ;;  %v2490_v9 = vld [vmem:[#allocation2 + $0x4c] sm:$0xf] }
 0x13b   : > { %2172 = vrot.lane.b32.xlu0 %v2078_v13, %s5353_s19  ;;  %3004 = vst.msk [vmem:[#allocation3 + $0x4] sm:$0xf] %vm3002_vm9, %v2909_v22  ;;  %v705_v11 = vmax.f32 %v552_v61, %v648_v49  ;;  %v1958_v13 = vld [vmem:[#allocation2 + $0x44] sm:$0x1]  ;;  %4773 = vmatpush.bf16.msra.mxu3 %v4766_v56  ;;  %v1575_v61 = vrot.slane %v1573_v10, 4  ;;  %v1570_v56 = vrot.slane %v1568_v3, 5 }
 0x13c   : > { %3341 = vst.msk [vmem:[#allocation3 + $0x4] sm:$0xf] %vm3339_vm11, %v5880_v4  ;;  %2922 = vrot.lane.b32.xlu2 %v2631_v34, %s5356_s26  ;;  %v4500_v4 = vld [vmem:[%s7379_s5 + $0x10] sm:$0x3]  ;;  %v2079_v34 = vrot.slane %v2077_v57, 4  ;;  %v2080_v41 = vrot.slane %v1958_v13, 5 }
 0x13d   : > { %v3438_v2 = vpop.permute.xlu0 %3437  ;;  %v4599_v28 = vunpack.c.l.b16 %v4500_v4  ;;  %v859_v22 = vpack.c.bf16 %v705_v11, %v705_v11  ;;  %v1576_v4 = vshll.u32 %v1395_v21, 16  ;;  %v5991_v57 = vld [vmem:[#allocation2 + $0x4c] sm:$0xf]  ;;  %v5293_v13 = vld [vmem:[%s5433_s18 + $0x70] sm:$0xff] }
 0x13e   : > { %3534 = vst.msk [vmem:[#allocation3] sm:$0xf] %vm3533_vm12, %v3438_v2  ;;  %v5941_v25 = vpop.permute.xlu2 %4337  ;;  %v2646_v2 = vshll.u32 %v2489_v54, 16  ;;  %v2081_v1 = vsel %vm5458_vm8, %v2079_v34, %v2080_v41  ;;  %v1566_v54 = vrot.slane %v1565_v52, 4  ;;  %5097 = vmatmul.msk.bf16.gmra.mxu0 %vm452_vm1, %v5293_v13  ;;  %5113 = vmatmul.msk.bf16.gmra.mxu1 %vm452_vm1, %v5293_v13 }
 0x13f   : > { %4095 = vst.msk [vmem:[#allocation3] sm:$0xf] %vm7384_vm15, %v3999_v51  ;;  %v4602_v16 = vpack.c.b16 %v4599_v28, %v4599_v28  ;;  %v1003_v51 = vor.u32 %v1001_v46, %v5949_v55  ;;  %v1006_v38 = vshrl.u32 %v859_v22, 16  ;;  %v1009_v39 = vshll.u32 %v859_v22, 16  ;;  %4774 = vmatpush.bf16.msra.mxu3 %v5314_v19  ;;  %v1326_v28 = vld [vmem:[#allocation2 + $0x4c] sm:$0xf] }
 0x140   : > { %3259 = vrot.lane.b32.xlu1 %v3162_v43, %s5357_s27  ;;  %v3050_v43 = vld [vmem:[#allocation2 + $0x48] sm:$0xe]  ;;  %v2648_v47 = vrot.slane %v2646_v2, 5  ;;  %1358 = vst.msk [vmem:[#allocation3 + $0x34] sm:$0xf] %vm722_vm2, %v1326_v28  ;;  %v1571_v34 = vsel %vm5477_vm13, %v1566_v54, %v1570_v56 }
 0x141   : > { %v4655_v5 = vsel %vm501_vm0, %v4602_v16, 0  ;;  %v1251_v18 = vsel %vm5519_vm14, %v1003_v51, %v1250_v63  ;;  %v1008_v46 = vrot.slane %v1006_v38, 7  ;;  %v5136_v55 = vrot.slane %v3050_v43, 9  ;;  %v761_v63 = vld [vmem:[#allocation2 + $0x6c] sm:$0x1] }
 0x142   : > { %v2352_v62 = vpop.permute.xlu1 %2351  ;;  %4662 = vmatpush.bf16.msra.mxu2 %v4655_v5  ;;  %1252 = vst [vmem:[#allocation2 + $0x60] sm:$0xf] %v1251_v18  ;;  %v3168_v16 = vrot.slane %v5991_v57, 5  ;;  %v2649_v51 = vor.u32 %v2648_v47, %v2645_v42  ;;  %v6006_v5 = vld [vmem:[#allocation2 + $0x4c] sm:$0xf]  ;;  %v2652_v18 = vshll.u32 %v2490_v9, 16 }
 0x143   : > { %2924 = vrot.lane.b32.xlu0 %v2641_v60, %s5356_s26  ;;  %2445 = vst.msk [vmem:[#allocation3 + $0xc] sm:$0xf] %vm2441_vm7, %v2352_v62  ;;  %v1011_v58 = vor.u32 %v1009_v39, %v1008_v46  ;;  %v1013_v60 = vrot.slane %v1008_v46, 4  ;;  %v1578_v62 = vrot.slane %v1576_v4, 5  ;;  %4775 = vmatpush.bf16.msra.mxu3 %v5313_v20  ;;  %v1582_v24 = vshll.u32 %v6006_v5, 16 }
 0x144   : > { %3261 = vrot.lane.b32.xlu2 %v3165_v8, %s5357_s27  ;;  %v762_v8 = vsel %vm5470_vm10, 0, %v761_v63  ;;  %v3169_v14 = vsel %vm5458_vm8, %v5136_v55, %v3168_v16  ;;  %v2654_v38 = vrot.slane %v2652_v18, 5  ;;  %vm4431_vm0 = vcmask 290048   ;;  %v817_v47 = vld [vmem:[#allocation2 + $0x74] sm:$0x1] }
 0x145   : > { %v2161_v53 = vpop.permute.xlu0 %2160  ;;  %v1012_v49 = vsel %vm5530_vm3, %v1004_v45, %v1011_v58  ;;  %v1255_v37 = vsel %vm5470_vm10, %v1013_v60, %v1254_v48  ;;  %v1579_v19 = vor.u32 %v1578_v62, %v1575_v61  ;;  %763 = vst [vmem:[#allocation2 + $0x6c] sm:$0x1] %v762_v8  ;;  %v6032_v43 = vrot.slane %v1582_v24, 5  ;;  %v3052_v48 = vld [vmem:[#allocation2 + $0x50] sm:$0x1] }
 0x146   : > { %2253 = vst.msk [vmem:[#allocation3 + $0x10] sm:$0xf] %vm2248_vm6, %v2161_v53  ;;  %v2354_v26 = vpop.permute.xlu2 %2353  ;;  %4663 = vmatpush.bf16.msra.mxu2 %v5312_v12  ;;  %v554_v53 = vpop.f32.mrf.mxu0  ;;  %v2084_v4 = vrot.slane %v1960_v29, 5  ;;  %v818_v3 = vsel %vm5449_vm5, 0, %v817_v47  ;;  %v2491_v60 = vld [vmem:[#allocation2 + $0x50] sm:$0x1] }
 0x147   : > { %2446 = vst.msk [vmem:[#allocation3 + $0x10] sm:$0xf] %vm2441_vm7, %v2354_v26  ;;  %v555_v11 = vadd.f32 %v5798_v33, %v554_v53  ;;  %v650_v12 = vpop.f32.mrf.mxu1  ;;  %v1959_v26 = vld [vmem:[#allocation2 + $0x48] sm:$0xe]  ;;  %v1580_v39 = vrot.slane %v1579_v19, 4  ;;  %v1586_v62 = vshrl.u32 %v6006_v5, 16 }
 0x148   : > { %1832 = vrot.lane.b32.xlu1 %v1561_v35, %s5354_s20  ;;  %1253 = vst.msk [vmem:[#allocation2 + $0x64] sm:$0xf] %vm722_vm2, %v1012_v49  ;;  %v651_v21 = vadd.f32 %v5804_v36, %v650_v12  ;;  %v2650_v35 = vrot.slane %v2649_v51, 4  ;;  %v5121_v10 = vrot.slane %v1959_v26, 9  ;;  %v1961_v49 = vld [vmem:[#allocation2 + $0x50] sm:$0x1] }
 0x149   : > { %1256 = vst [vmem:[#allocation2 + $0x68] sm:$0x1] %v1255_v37  ;;  %v1585_v58 = vsel %vm5477_vm13, %v1580_v39, %v6032_v43  ;;  %v2662_v5 = vshll.u32 %v2491_v60, 16  ;;  %v2086_v12 = vrot.slane %v2084_v4, 4  ;;  %v2087_v13 = vrot.slane %v1961_v49, 5 }
 0x14a   : > { %v3440_v44 = vpop.permute.xlu1 %3439  ;;  %4664 = vmatpush.bf16.msra.mxu2 %v5311_v40  ;;  %v706_v30 = vmax.f32 %v555_v11, %v651_v21  ;;  %v2492_v40 = vld [vmem:[#allocation2 + $0x54] sm:$0xf]  ;;  %819 = vst [vmem:[#allocation2 + $0x74] sm:$0x1] %v818_v3  ;;  %v1397_v18 = vld [vmem:[#allocation2 + $0x50] sm:$0x1] }
 0x14b   : > { %2367 = vrot.lane.b32.xlu0 %v2292_v59, %s5355_s25  ;;  %3535 = vst.msk [vmem:[#allocation3 + $0x4] sm:$0xf] %vm3533_vm12, %v3440_v44  ;;  %v2656_v59 = vshrl.u32 %v2490_v9, 16  ;;  %v2655_v44 = vsel %vm5477_vm13, %v2650_v35, %v2654_v38  ;;  %v2085_v9 = vsel %vm5458_vm8, %v5121_v10, %v2084_v4  ;;  %v1327_v26 = vld [vmem:[#allocation2 + $0x54] sm:$0xf] }
 0x14c   : > { %2365 = vrot.lane.b32.xlu2 %v2291_v50, %s5355_s25  ;;  %v860_v41 = vpack.c.bf16 %v706_v30, %v706_v30  ;;  %v1257_v37 = vld [vmem:[#allocation2 + $0x6c] sm:$0xf]  ;;  %v1588_v30 = vrot.slane %v1586_v62, 4  ;;  %1359 = vst.msk [vmem:[#allocation3 + $0x38] sm:$0xf] %vm722_vm2, %v1327_v26 }
 0x14d   : > { %v3442_v17 = vpop.permute.xlu0 %3441  ;;  %v2658_v45 = vrot.slane %v2656_v59, 4  ;;  %v2664_v59 = vrot.slane %v2662_v5, 5  ;;  %v6109_v26 = vld [vmem:[#allocation2 + $0x58] sm:$0xf] }
 0x14e   : > { %v1823_v0 = vpop.permute.xlu2 %1822  ;;  %v1015_v46 = vshrl.u32 %v860_v41, 16  ;;  %v1018_v28 = vshll.u32 %v860_v41, 16  ;;  %v556_v42 = vpop.f32.mrf.mxu0  ;;  %v764_v41 = vld [vmem:[#allocation2 + $0x78] sm:$0x1] }
 0x14f   : > { %1914 = vst.msk [vmem:[#allocation3 + $0x14] sm:$0xf] %vm1908_vm4, %v1823_v0  ;;  %v557_v50 = vadd.f32 %v5798_v33, %v556_v42  ;;  %v652_v52 = vpop.f32.mrf.mxu1  ;;  %v3170_v0 = vrot.slane %v3168_v16, 4  ;;  %v2659_v54 = vor.u32 %v2658_v45, %v2654_v38  ;;  %v6062_v16 = vld [vmem:[#allocation2 + $0x58] sm:$0xf] }
 0x150   : > { %2174 = vrot.lane.b32.xlu1 %v2081_v1, %s5353_s19  ;;  %v6045_v55 = vrot.slane %v1015_v46, 7  ;;  %v653_v61 = vadd.f32 %v5804_v36, %v652_v52  ;;  %v3171_v1 = vrot.slane %v3052_v48, 5  ;;  %v765_v46 = vsel %vm5470_vm10, 0, %v764_v41 }
 0x151   : > { %v2660_v35 = vrot.slane %v2659_v54, 4  ;;  %v1261_v4 = vld [vmem:[#allocation2 + $0x74] sm:$0x1]  ;;  %766 = vst [vmem:[#allocation2 + $0x78] sm:$0x1] %v765_v46 }
 0x152   : > { %v3248_v22 = vpop.permute.xlu1 %3247  ;;  %v1020_v51 = vor.u32 %v1018_v28, %v6045_v55  ;;  %v707_v53 = vmax.f32 %v557_v50, %v653_v61  ;;  %v3172_v21 = vsel %vm5458_vm8, %v3170_v0, %v3171_v1  ;;  %v1592_v28 = vshll.u32 %v1397_v18, 16  ;;  %v1399_v61 = vld [vmem:[#allocation2 + $0x58] sm:$0xf] }
 0x153   : > { %3263 = vrot.lane.b32.xlu0 %v3169_v14, %s5357_s27  ;;  %3342 = vst.msk [vmem:[#allocation3 + $0x8] sm:$0xf] %vm3339_vm11, %v3248_v22  ;;  %v1589_v50 = vor.u32 %v1588_v30, %v6032_v43  ;;  %v1398_v43 = vld [vmem:[#allocation2 + $0x54] sm:$0xf]  ;;  %v1610_v54 = vshrl.u32 %v1399_v61, 16 }
 0x154   : > { %3536 = vst.msk [vmem:[#allocation3 + $0x8] sm:$0xf] %vm3533_vm12, %v3442_v17  ;;  %1834 = vrot.lane.b32.xlu2 %v1571_v34, %s5354_s20  ;;  %v2667_v17 = vshrl.u32 %v2492_v40, 16  ;;  %v1258_v14 = vsel %vm5519_vm14, %v1020_v51, %v1257_v37  ;;  %v861_v57 = vpack.c.bf16 %v707_v53, %v707_v53  ;;  %v1021_v34 = vrot.slane %v6045_v55, 4  ;;  %v5294_v53 = vld [vmem:[%s5433_s18 + $0x78] sm:$0xff] }
 0x155   : > { %v2913_v2 = vpop.permute.xlu0 %2912  ;;  %1259 = vst [vmem:[#allocation2 + $0x6c] sm:$0xf] %v1258_v14  ;;  %v1594_v49 = vrot.slane %v1592_v28, 5  ;;  %v1590_v0 = vrot.slane %v1589_v50, 4  ;;  %v1597_v5 = vshrl.u32 %v1398_v43, 16  ;;  %5098 = vmatmul.msk.bf16.gmra.mxu0 %vm452_vm1, %v5294_v53  ;;  %5114 = vmatmul.msk.bf16.gmra.mxu1 %vm452_vm1, %v5294_v53  ;;  %vm7397_vm1 = vcmask 257248  }
 0x156   : > { %3006 = vst.msk [vmem:[#allocation3 + $0xc] sm:$0xf] %vm3002_vm9, %v2913_v2  ;;  %v6034_v20 = vpop.permute.xlu2 %2164  ;;  %v2669_v56 = vrot.slane %v2667_v17, 4  ;;  %v1023_v22 = vshrl.u32 %v861_v57, 16  ;;  %v1026_v24 = vshll.u32 %v861_v57, 16  ;;  %v2676_v2 = vshll.u32 %v6062_v16, 16  ;;  %v559_v39 = vpop.f32.mrf.mxu0 }
 0x157   : > { %3343 = vst.msk [vmem:[#allocation3 + $0xc] sm:$0xf] %vm3339_vm11, %v5887_v32  ;;  %v2670_v32 = vshll.u32 %v2492_v40, 16  ;;  %v655_v40 = vpop.f32.mrf.mxu1  ;;  %v2665_v17 = vsel %vm5477_vm13, %v2660_v35, %v2664_v59  ;;  %v3053_v57 = vld [vmem:[#allocation2 + $0x54] sm:$0xe] }
 0x158   : > { %2926 = vrot.lane.b32.xlu1 %v2655_v44, %s5356_s26  ;;  %v1025_v38 = vrot.slane %v1023_v22, 7  ;;  %v560_v44 = vadd.f32 %v5798_v33, %v559_v39  ;;  %v656_v45 = vadd.f32 %v5804_v36, %v655_v40  ;;  %v1264_v35 = vld [vmem:[#allocation2 + $0x78] sm:$0xf]  ;;  %v3175_v39 = vrot.slane %v6109_v26, 5  ;;  %v1400_v40 = vld [vmem:[#allocation2 + $0x5c] sm:$0x1] }
 0x159   : > { %v2672_v11 = vrot.slane %v2670_v32, 5  ;;  %v6127_v28 = vld [vmem:[#allocation2 + $0x58] sm:$0xf] }
 0x15a   : > { %v4336_v63 = vpop.permute.xlu1 %4335  ;;  %v1028_v42 = vor.u32 %v1026_v24, %v1025_v38  ;;  %v1030_v47 = vrot.slane %v1025_v38, 4  ;;  %v708_v52 = vmax.f32 %v560_v44, %v656_v45  ;;  %v1328_v24 = vld [vmem:[#allocation2 + $0x58] sm:$0xf]  ;;  %v5137_v38 = vrot.slane %v3053_v57, 9  ;;  %v1962_v44 = vld [vmem:[#allocation2 + $0x54] sm:$0xe] }
 0x15b   : > { %1836 = vrot.lane.b32.xlu0 %v1585_v58, %s5354_s20  ;;  %4432 = vst.msk [vmem:[#allocation3] sm:$0xf] %vm4431_vm0, %v4336_v63  ;;  %v2673_v29 = vor.u32 %v2672_v11, %v2669_v56  ;;  %v6084_v58 = vrot.slane %v2676_v2, 5  ;;  %v1600_v56 = vshll.u32 %v1398_v43, 16  ;;  %v1612_v2 = vrot.slane %v1610_v54, 4 }
 0x15c   : > { %2176 = vrot.lane.b32.xlu2 %v2085_v9, %s5353_s19  ;;  %v1029_v60 = vsel %vm5530_vm3, %v1021_v34, %v1028_v42  ;;  %v1262_v55 = vsel %vm5470_vm10, %v1030_v47, %v1261_v4  ;;  %v862_v62 = vpack.c.bf16 %v708_v52, %v708_v52  ;;  %v2293_v9 = vld [vmem:[#allocation2 + $0x54] sm:$0xf]  ;;  %1360 = vst.msk [vmem:[#allocation3 + $0x3c] sm:$0xf] %vm722_vm2, %v1328_v24  ;;  %v2295_v34 = vld [vmem:[#allocation2 + $0x60] sm:$0xf] }
 0x15d   : > { %v4001_v8 = vpop.permute.xlu0 %4000  ;;  %v2674_v32 = vrot.slane %v2673_v29, 4  ;;  %1260 = vst.msk [vmem:[#allocation2 + $0x70] sm:$0xf] %vm722_vm2, %v1029_v60  ;;  %v2294_v29 = vld [vmem:[#allocation2 + $0x58] sm:$0xf]  ;;  %v1599_v45 = vrot.slane %v1597_v5, 4 }
 0x15e   : > { %4096 = vst.msk [vmem:[#allocation3 + $0x4] sm:$0xf] %vm7384_vm15, %v4001_v8  ;;  %v4003_v19 = vpop.permute.xlu2 %4002  ;;  %v1032_v1 = vshrl.u32 %v862_v62, 16  ;;  %v1035_v51 = vshll.u32 %v862_v62, 16  ;;  %v1606_v8 = vshll.u32 %v1399_v61, 16  ;;  %v561_v11 = vpop.f32.mrf.mxu0  ;;  %v1602_v46 = vrot.slane %v1600_v56, 5 }
 0x15f   : > { %4433 = vst.msk [vmem:[#allocation3 + $0x4] sm:$0xf] %vm4431_vm0, %v5941_v25  ;;  %v2088_v25 = vsel %vm5458_vm8, %v2086_v12, %v2087_v13  ;;  %v2679_v37 = vsel %vm5477_vm13, %v2674_v32, %v6084_v58  ;;  %v657_v12 = vpop.f32.mrf.mxu1  ;;  %v820_v13 = vld [vmem:[#allocation2 + $0x80] sm:$0x1]  ;;  %v1330_v32 = vld [vmem:[#allocation2 + $0x64] sm:$0xf] }
 0x160   : > { %4097 = vst.msk [vmem:[#allocation3 + $0x8] sm:$0xf] %vm7384_vm15, %v4003_v19  ;;  %3265 = vrot.lane.b32.xlu1 %v3172_v21, %s5357_s27  ;;  %vm4605_vm15 = vcmask 293888   ;;  %v6101_v18 = vrot.slane %v1032_v1, 7  ;;  %v562_v19 = vadd.f32 %v5798_v33, %v561_v11  ;;  %v658_v21 = vadd.f32 %v5804_v36, %v657_v12  ;;  %v2494_v52 = vld [vmem:[#allocation2 + $0x5c] sm:$0x1] }
 0x161   : > { %1263 = vst [vmem:[#allocation2 + $0x74] sm:$0x1] %v1262_v55  ;;  %v821_v22 = vsel %vm5449_vm5, 0, %v820_v13  ;;  %v2680_v33 = vshrl.u32 %v6062_v16, 16  ;;  %v6117_v36 = vrot.slane %v1606_v8, 5  ;;  %v1595_v16 = vsel %vm5477_vm13, %v1590_v0, %v1594_v49 }
 0x162   : > { %v2163_v10 = vpop.permute.xlu1 %2162  ;;  %v1037_v30 = vor.u32 %v1035_v51, %v6101_v18  ;;  %822 = vst [vmem:[#allocation2 + $0x80] sm:$0x1] %v821_v22  ;;  %v1038_v60 = vrot.slane %v6101_v18, 4  ;;  %v5122_v61 = vrot.slane %v1962_v44, 9  ;;  %v2091_v43 = vrot.slane %v6127_v28, 5 }
 0x163   : > { %2178 = vrot.lane.b32.xlu0 %v2088_v25, %s5353_s19  ;;  %2254 = vst.msk [vmem:[#allocation3 + $0x14] sm:$0xf] %vm2248_vm6, %v2163_v10  ;;  %v709_v25 = vmax.f32 %v562_v19, %v658_v21  ;;  %v1603_v62 = vor.u32 %v1602_v46, %v1599_v45  ;;  %v2686_v8 = vshll.u32 %v2494_v52, 16  ;;  %v2496_v11 = vld [vmem:[#allocation2 + $0x64] sm:$0xf] }
 0x164   : > { %2928 = vrot.lane.b32.xlu2 %v2665_v17, %s5356_s26  ;;  %v1265_v41 = vsel %vm5519_vm14, %v1037_v30, %v1264_v35  ;;  %v1616_v17 = vshll.u32 %v1400_v40, 16  ;;  %1362 = vst.msk [vmem:[#allocation3 + $0x44] sm:$0xf] %vm722_vm2, %v1330_v32  ;;  %v767_v12 = vld [vmem:[#allocation2 + $0x84] sm:$0x1]  ;;  %v2700_v30 = vshll.u32 %v2496_v11, 16 }
 0x165   : > { %v2356_v48 = vpop.permute.xlu0 %2355  ;;  %v863_v10 = vpack.c.bf16 %v709_v25, %v709_v25  ;;  %1266 = vst [vmem:[#allocation2 + $0x78] sm:$0xf] %v1265_v41  ;;  %v1604_v57 = vrot.slane %v1603_v62, 4  ;;  %v1965_v19 = vld [vmem:[#allocation2 + $0x60] sm:$0xe]  ;;  %v2704_v25 = vshrl.u32 %v2496_v11, 16 }
 0x166   : > { %2447 = vst.msk [vmem:[#allocation3 + $0x14] sm:$0xf] %vm2441_vm7, %v2356_v48  ;;  %v5295_v3 = vld [vmem:[#allocation3] sm:$0xff]  ;;  %v6091_v63 = vpop.permute.xlu2 %4341  ;;  %v1613_v48 = vor.u32 %v1612_v2, %v6117_v36  ;;  %v1618_v53 = vrot.slane %v1616_v17, 5  ;;  %v564_v18 = vpop.f32.mrf.mxu0  ;;  %v6156_v21 = vld [vmem:[#allocation2 + $0x64] sm:$0xf] }
 0x167   : > { %5235 = vmatmul.msk.bf16.vlgmr.msra.gmra.mxu2 %vm4605_vm15, %v5295_v3  ;;  %5259 = vmatmul.msk.bf16.vlgmr.msra.gmra.mxu3 %vm4605_vm15, %v5295_v3  ;;  %v1040_v42 = vshrl.u32 %v863_v10, 16  ;;  %v1043_v47 = vshll.u32 %v863_v10, 16  ;;  %v2682_v3 = vrot.slane %v2680_v33, 4  ;;  %v6161_v22 = vld [vmem:[%s7377_s3] ss:$0 sm:$0xff]  ;;  %v660_v35 = vpop.f32.mrf.mxu1  ;;  %v2688_v41 = vrot.slane %v2686_v8, 5 }
 0x168   : > { %2369 = vrot.lane.b32.xlu1 %v2293_v9, %s5355_s25  ;;  %v1614_v51 = vrot.slane %v1613_v48, 4  ;;  %v565_v24 = vadd.f32 %v6161_v22, %v564_v18  ;;  %v2495_v33 = vld [vmem:[#allocation2 + $0x60] sm:$0xf]  ;;  %v1609_v10 = vsel %vm5477_vm13, %v1604_v57, %v6117_v36  ;;  %v5123_v46 = vrot.slane %v1965_v19, 9 }
 0x169   : > { %v1042_v55 = vrot.slane %v1040_v42, 7  ;;  %v1268_v9 = vld [vmem:[#allocation2 + $0x80] sm:$0x1]  ;;  %v2683_v54 = vor.u32 %v2682_v3, %v6084_v58  ;;  %v2098_v28 = vrot.slane %v6156_v21, 5  ;;  %v2691_v42 = vshrl.u32 %v2495_v33, 16 }
 0x16a   : > { %v3444_v14 = vpop.permute.xlu1 %3443  ;;  %v1329_v58 = vld [vmem:[#allocation2 + $0x60] sm:$0xf]  ;;  %v2093_v48 = vrot.slane %v2091_v43, 4  ;;  %v6184_v17 = vrot.slane %v2700_v30, 5  ;;  %v2706_v32 = vrot.slane %v2704_v25, 4 }
 0x16b   : > { %2930 = vrot.lane.b32.xlu0 %v2679_v37, %s5356_s26  ;;  %3537 = vst.msk [vmem:[#allocation3 + $0xc] sm:$0xf] %vm3533_vm12, %v3444_v14  ;;  %v3176_v37 = vsel %vm5458_vm8, %v5137_v38, %v3175_v39  ;;  %v1045_v0 = vor.u32 %v1043_v47, %v1042_v55  ;;  %v1047_v1 = vrot.slane %v1042_v55, 4  ;;  %v2092_v14 = vsel %vm5458_vm8, %v5122_v61, %v2091_v43  ;;  %v6169_v2 = vld [vmem:[%s7378_s4] ss:$0 sm:$0xff] }
 0x16c   : > { %2371 = vrot.lane.b32.xlu2 %v2294_v29, %s5355_s25  ;;  %v1619_v29 = vsel %vm5477_vm13, %v1614_v51, %v1618_v53  ;;  %v2684_v40 = vrot.slane %v2683_v54, 4  ;;  %1361 = vst.msk [vmem:[#allocation3 + $0x40] sm:$0xf] %vm722_vm2, %v1329_v58  ;;  %v2694_v47 = vshll.u32 %v2495_v33, 16  ;;  %v2497_v3 = vld [vmem:[#allocation2 + $0x68] sm:$0x1]  ;;  %v2707_v8 = vor.u32 %v2706_v32, %v6184_v17 }
 0x16d   : > { %v6112_v59 = vpop.permute.xlu0 %3251  ;;  %v1046_v5 = vsel %vm5530_vm3, %v1038_v60, %v1045_v0  ;;  %v1269_v56 = vsel %vm5470_vm10, %v1047_v1, %v1268_v9  ;;  %v823_v60 = vld [vmem:[#allocation2 + $0x8c] sm:$0x1]  ;;  %v2693_v0 = vrot.slane %v2691_v42, 4  ;;  %v2710_v54 = vshll.u32 %v2497_v3, 16 }
 0x16e   : > { %v2917_v4 = vpop.permute.xlu2 %2916  ;;  %1267 = vst.msk [vmem:[#allocation2 + $0x7c] sm:$0xf] %vm722_vm2, %v1046_v5  ;;  %v824_v43 = vsel %vm5449_vm5, 0, %v823_v60  ;;  %v2696_v1 = vrot.slane %v2694_v47, 5  ;;  %v1404_v25 = vld [vmem:[#allocation2 + $0x6c] sm:$0xf] }
 0x16f   : > { %3008 = vst.msk [vmem:[#allocation3 + $0x14] sm:$0xf] %vm3002_vm9, %v2917_v4  ;;  %v1964_v4 = vld [vmem:[#allocation2 + $0x5c] sm:$0x1]  ;;  %v662_v53 = vpop.f32.mrf.mxu1 }
 0x170   : > { %1838 = vrot.lane.b32.xlu1 %v1595_v16, %s5354_s20  ;;  %1270 = vst [vmem:[#allocation2 + $0x80] sm:$0x1] %v1269_v56  ;;  %v1401_v16 = vld [vmem:[#allocation2 + $0x60] sm:$0xf]  ;;  %v2094_v52 = vrot.slane %v1964_v4, 5  ;;  %v663_v56 = vadd.f32 %v6169_v2, %v662_v53 }
 0x171   : > { %v1624_v61 = vshll.u32 %v1401_v16, 16  ;;  %825 = vst [vmem:[#allocation2 + $0x8c] sm:$0x1] %v824_v43  ;;  %v2498_v43 = vld [vmem:[#allocation2 + $0x6c] sm:$0xf] }
 0x172   : > { %v4340_v50 = vpop.permute.xlu1 %4339  ;;  %v2095_v19 = vsel %vm5458_vm8, %v2093_v48, %v2094_v52 }
 0x173   : > { %2373 = vrot.lane.b32.xlu0 %v2295_v34, %s5355_s25  ;;  %4434 = vst.msk [vmem:[#allocation3 + $0x8] sm:$0xf] %vm4431_vm0, %v4340_v50  ;;  %v661_v34 = vadd.f32 %v6169_v2, %v660_v35  ;;  %v2689_v50 = vsel %vm5477_vm13, %v2684_v40, %v2688_v41  ;;  %v1626_v57 = vrot.slane %v1624_v61, 5  ;;  %v2708_v35 = vrot.slane %v2707_v8, 4  ;;  %v2296_v40 = vld [vmem:[#allocation2 + $0x64] sm:$0xf] }
 0x174   : > { %3267 = vrot.lane.b32.xlu2 %v3176_v37, %s5357_s27  ;;  %v2099_v37 = vsel %vm5458_vm8, %v5123_v46, %v2098_v28  ;;  %v1648_v46 = vshll.u32 %v1404_v25, 16  ;;  %v770_v8 = vld [vmem:[#allocation2 + $0x90] sm:$0x1] }
 0x175   : > { %v1825_v49 = vpop.permute.xlu0 %1824  ;;  %v710_v44 = vmax.f32 %v565_v24, %v661_v34  ;;  %v2697_v24 = vor.u32 %v2696_v1, %v2693_v0  ;;  %v1402_v34 = vld [vmem:[#allocation2 + $0x64] sm:$0xf]  ;;  %v1967_v1 = vld [vmem:[#allocation2 + $0x68] sm:$0x1] }
 0x176   : > { %1915 = vst.msk [vmem:[#allocation3 + $0x18] sm:$0xf] %vm1908_vm4, %v1825_v49  ;;  %v6148_v13 = vpop.permute.xlu2 %2359  ;;  %v566_v49 = vpop.f32.mrf.mxu0  ;;  %v1630_v47 = vshll.u32 %v1402_v34, 16 }
 0x177   : > { %2255 = vst.msk [vmem:[#allocation3 + $0x18] sm:$0xf] %vm2248_vm6, %v6034_v20  ;;  %v768_v20 = vsel %vm5470_vm10, 0, %v767_v12  ;;  %v864_v36 = vpack.c.bf16 %v710_v44, %v710_v44  ;;  %v567_v51 = vadd.f32 %v6161_v22, %v566_v49  ;;  %v1645_v44 = vshrl.u32 %v1404_v25, 16  ;;  %v1403_v49 = vld [vmem:[#allocation2 + $0x68] sm:$0x1] }
 0x178   : > { %2180 = vrot.lane.b32.xlu1 %v2092_v14, %s5353_s19  ;;  %769 = vst [vmem:[#allocation2 + $0x84] sm:$0x1] %v768_v20  ;;  %v2101_v25 = vrot.slane %v1967_v1, 5 }
 0x179   : > { %v1049_v62 = vshrl.u32 %v864_v36, 16  ;;  %v1052_v9 = vshll.u32 %v864_v36, 16  ;;  %v711_v20 = vmax.f32 %v567_v51, %v663_v56  ;;  %v1634_v36 = vshrl.u32 %v1402_v34, 16 }
 0x17a   : > { %v2915_v38 = vpop.permute.xlu1 %2914 }
 0x17b   : > { %1842 = vrot.lane.b32.xlu0 %v1619_v29, %s5354_s20  ;;  %3007 = vst.msk [vmem:[#allocation3 + $0x10] sm:$0xf] %vm3002_vm9, %v2915_v38  ;;  %v1051_v5 = vrot.slane %v1049_v62, 7  ;;  %v2712_v29 = vrot.slane %v2710_v54, 5  ;;  %v865_v33 = vpack.c.bf16 %v711_v20, %v711_v20  ;;  %v1647_v62 = vrot.slane %v1645_v44, 4 }
 0x17c   : > { %3344 = vst.msk [vmem:[#allocation3 + $0x10] sm:$0xf] %vm3339_vm11, %v6112_v59  ;;  %1840 = vrot.lane.b32.xlu2 %v1609_v10, %s5354_s20  ;;  %v1621_v59 = vshrl.u32 %v1401_v16, 16  ;;  %v2698_v16 = vrot.slane %v2697_v24, 4  ;;  %v1636_v54 = vrot.slane %v1634_v36, 4  ;;  %v1640_v20 = vshll.u32 %v1403_v49, 16 }
 0x17d   : > { %v6180_v45 = vpop.permute.xlu0 %2166  ;;  %v1054_v18 = vor.u32 %v1052_v9, %v1051_v5  ;;  %v1057_v10 = vshrl.u32 %v865_v33, 16  ;;  %v1060_v4 = vshll.u32 %v865_v33, 16  ;;  %v2713_v42 = vsel %vm5477_vm13, %v2708_v35, %v2712_v29  ;;  %v2298_v24 = vld [vmem:[#allocation2 + $0x70] sm:$0xf]  ;;  %v2501_v44 = vld [vmem:[#allocation2 + $0x78] sm:$0xf] }
 0x17e   : > { %v6188_v55 = vpop.permute.xlu2 %3255  ;;  %v1623_v14 = vrot.slane %v1621_v59, 4  ;;  %v1055_v48 = vrot.slane %v1051_v5, 4  ;;  %v2703_v61 = vsel %vm5477_vm13, %v2698_v16, %v6184_v17  ;;  %v1650_v9 = vrot.slane %v1648_v46, 5  ;;  %v6227_v17 = vld [vmem:[#allocation2 + $0x70] sm:$0xf] }
 0x17f   : > { %v1271_v12 = vld [vmem:[#allocation2 + $0x84] sm:$0xf]  ;;  %v771_v5 = vsel %vm5470_vm10, 0, %v770_v8  ;;  %v1654_v33 = vshll.u32 %v6227_v17, 16  ;;  %v1642_v21 = vrot.slane %v1640_v20, 5 }
 0x180   : > { %2932 = vrot.lane.b32.xlu1 %v2689_v50, %s5356_s26  ;;  %v1272_v30 = vsel %vm5519_vm14, %v1054_v18, %v1271_v12  ;;  %v1627_v41 = vor.u32 %v1626_v57, %v1623_v14  ;;  %v1275_v50 = vld [vmem:[#allocation2 + $0x8c] sm:$0x1]  ;;  %v2715_v12 = vshrl.u32 %v2498_v43, 16  ;;  %v2718_v14 = vshll.u32 %v2498_v43, 16  ;;  %772 = vst [vmem:[#allocation2 + $0x90] sm:$0x1] %v771_v5 }
 0x181   : > { %1273 = vst [vmem:[#allocation2 + $0x84] sm:$0xf] %v1272_v30  ;;  %v1331_v57 = vld [vmem:[#allocation2 + $0x6c] sm:$0xf]  ;;  %v1651_v18 = vor.u32 %v1650_v9, %v1647_v62  ;;  %v2100_v30 = vrot.slane %v2098_v28, 4 }
 0x182   : > { %v3254_v11 = vpop.permute.xlu1 %3253  ;;  %v1628_v52 = vrot.slane %v1627_v41, 4  ;;  %1363 = vst.msk [vmem:[#allocation3 + $0x48] sm:$0xf] %vm722_vm2, %v1331_v57  ;;  %v2499_v28 = vld [vmem:[#allocation2 + $0x70] sm:$0xf] }
 0x183   : > { %2184 = vrot.lane.b32.xlu0 %v2099_v37, %s5353_s19  ;;  %3345 = vst.msk [vmem:[#allocation3 + $0x14] sm:$0xf] %vm3339_vm11, %v3254_v11  ;;  %v1632_v37 = vrot.slane %v1630_v47, 5  ;;  %v1652_v16 = vrot.slane %v1651_v18, 4  ;;  %v6256_v47 = vrot.slane %v1654_v33, 5 }
 0x184   : > { %2182 = vrot.lane.b32.xlu2 %v2095_v19, %s5353_s19  ;;  %v665_v19 = vpop.f32.mrf.mxu1 }
 0x185   : > { %v4005_v58 = vpop.permute.xlu0 %4004  ;;  %v1633_v11 = vsel %vm5477_vm13, %v1628_v52, %v1632_v37  ;;  %v666_v35 = vadd.f32 %v6169_v2, %v665_v19  ;;  %v1637_v34 = vor.u32 %v1636_v54, %v1632_v37  ;;  %v1657_v49 = vsel %vm5477_vm13, %v1652_v16, %v6256_v47  ;;  %v1968_v19 = vld [vmem:[#allocation2 + $0x6c] sm:$0xe]  ;;  %v773_v16 = vld [vmem:[#allocation2 + $0x9c] sm:$0x1] }
 0x186   : > { %4098 = vst.msk [vmem:[#allocation3 + $0xc] sm:$0xf] %vm7397_vm1, %v4005_v58  ;;  %v1829_v38 = vpop.permute.xlu2 %1828 }
 0x187   : > { %4435 = vst.msk [vmem:[#allocation3 + $0xc] sm:$0xf] %vm4431_vm0, %v6091_v63  ;;  %v1059_v63 = vrot.slane %v1057_v10, 7  ;;  %v1278_v8 = vld [vmem:[#allocation2 + $0x90] sm:$0xf] }
 0x188   : > { %1917 = vst.msk [vmem:[#allocation3 + $0x20] sm:$0xf] %vm1908_vm4, %v1829_v38  ;;  %2375 = vrot.lane.b32.xlu1 %v2296_v40, %s5355_s25  ;;  %v2717_v38 = vrot.slane %v2715_v12, 4  ;;  %v2720_v40 = vrot.slane %v2718_v14, 5 }
 0x189   : > { %v1062_v3 = vor.u32 %v1060_v4, %v1059_v63  ;;  %v1064_v59 = vrot.slane %v1059_v63, 4  ;;  %v2297_v4 = vld [vmem:[#allocation2 + $0x6c] sm:$0xf]  ;;  %v826_v63 = vld [vmem:[#allocation2 + $0x98] sm:$0x1] }
 0x18a   : > { %v2358_v32 = vpop.permute.xlu1 %2357  ;;  %v2721_v36 = vor.u32 %v2720_v40, %v2717_v38 }
 0x18b   : > { %2936 = vrot.lane.b32.xlu0 %v2713_v42, %s5356_s26  ;;  %2448 = vst.msk [vmem:[#allocation3 + $0x18] sm:$0xf] %vm2441_vm7, %v2358_v32  ;;  %v1063_v51 = vsel %vm5530_vm3, %v1055_v48, %v1062_v3  ;;  %v1276_v53 = vsel %vm5470_vm10, %v1064_v59, %v1275_v50  ;;  %v2102_v42 = vsel %vm5458_vm8, %v2100_v30, %v2101_v25  ;;  %v1638_v48 = vrot.slane %v1637_v34, 4  ;;  %v6283_v34 = vld [vmem:[#allocation2 + $0x7c] sm:$0xf] }
 0x18c   : > { %2934 = vrot.lane.b32.xlu2 %v2703_v61, %s5356_s26  ;;  %1274 = vst.msk [vmem:[#allocation2 + $0x88] sm:$0xf] %vm722_vm2, %v1063_v51  ;;  %v2724_v59 = vshll.u32 %v2499_v28, 16  ;;  %v2742_v61 = vshll.u32 %v2501_v44, 16  ;;  %v667_v9 = vpop.f32.mrf.mxu1  ;;  %v2728_v51 = vshrl.u32 %v2499_v28, 16  ;;  %v2722_v54 = vrot.slane %v2721_v36, 4 }
 0x18d   : > { %v2919_v60 = vpop.permute.xlu0 %2918  ;;  %1277 = vst [vmem:[#allocation2 + $0x8c] sm:$0x1] %v1276_v53  ;;  %v1970_v53 = vld [vmem:[#allocation2 + $0x74] sm:$0x1]  ;;  %v1643_v14 = vsel %vm5477_vm13, %v1638_v48, %v1642_v21  ;;  %v2748_v48 = vshll.u32 %v6283_v34, 16 }
 0x18e   : > { %3009 = vst.msk [vmem:[#allocation3 + $0x18] sm:$0xf] %vm3002_vm9, %v2919_v60  ;;  %v5296_v0 = vld [vmem:[#allocation3 + $0x8] sm:$0xff]  ;;  %v6231_v56 = vpop.permute.xlu2 %2170  ;;  %v2739_v60 = vshrl.u32 %v2501_v44, 16  ;;  %v2744_v18 = vrot.slane %v2742_v61, 5  ;;  %v2730_v30 = vrot.slane %v2728_v51, 4 }
 0x18f   : > { %3346 = vst.msk [vmem:[#allocation3 + $0x18] sm:$0xf] %vm3339_vm11, %v6188_v55  ;;  %5236 = vmatmul.msk.bf16.gmra.mxu2 %vm4605_vm15, %v5296_v0  ;;  %5260 = vmatmul.msk.bf16.gmra.mxu3 %vm4605_vm15, %v5296_v0  ;;  %v569_v55 = vpop.f32.mrf.mxu0  ;;  %v668_v0 = vadd.f32 %v6169_v2, %v667_v9  ;;  %v2500_v21 = vld [vmem:[#allocation2 + $0x74] sm:$0x1]  ;;  %v1407_v51 = vld [vmem:[#allocation2 + $0x78] sm:$0xf] }
 0x190   : > { %1844 = vrot.lane.b32.xlu1 %v1633_v11, %s5354_s20  ;;  %v570_v58 = vadd.f32 %v6161_v22, %v569_v55  ;;  %v2726_v55 = vrot.slane %v2724_v59, 5  ;;  %v2741_v57 = vrot.slane %v2739_v60, 4  ;;  %v1406_v36 = vld [vmem:[#allocation2 + $0x74] sm:$0x1]  ;;  %v2734_v60 = vshll.u32 %v2500_v21, 16 }
 0x192   : > { %v1827_v29 = vpop.permute.xlu1 %1826  ;;  %v712_v41 = vmax.f32 %v570_v58, %v666_v35  ;;  %v2108_v58 = vrot.slane %v1970_v53, 5  ;;  %v2727_v33 = vsel %vm5477_vm13, %v2722_v54, %v2726_v55  ;;  %v2299_v54 = vld [vmem:[#allocation2 + $0x78] sm:$0xf] }
 0x193   : > { %2379 = vrot.lane.b32.xlu0 %v2298_v24, %s5355_s25  ;;  %1916 = vst.msk [vmem:[#allocation3 + $0x1c] sm:$0xf] %vm1908_vm4, %v1827_v29  ;;  %v1658_v29 = vshrl.u32 %v6227_v17, 16 }
 0x194   : > { %2256 = vst.msk [vmem:[#allocation3 + $0x1c] sm:$0xf] %vm2248_vm6, %v6180_v45  ;;  %2377 = vrot.lane.b32.xlu2 %v2297_v4, %s5355_s25  ;;  %v866_v46 = vpack.c.bf16 %v712_v41, %v712_v41  ;;  %v6258_v45 = vld [vmem:[#allocation2 + $0x70] sm:$0xf]  ;;  %v5124_v41 = vrot.slane %v1968_v19, 9  ;;  %v2745_v4 = vor.u32 %v2744_v18, %v2741_v57  ;;  %v1669_v57 = vshrl.u32 %v1407_v51, 16 }
 0x195   : > { %v6249_v10 = vpop.permute.xlu0 %3257  ;;  %2449 = vst.msk [vmem:[#allocation3 + $0x1c] sm:$0xf] %vm2441_vm7, %v6148_v13  ;;  %v827_v13 = vsel %vm5449_vm5, 0, %v826_v63  ;;  %v2105_v43 = vrot.slane %v6258_v45, 5  ;;  %v1660_v45 = vrot.slane %v1658_v29, 4  ;;  %v1672_v18 = vshll.u32 %v1407_v51, 16 }
 0x196   : > { %v2923_v32 = vpop.permute.xlu2 %2922  ;;  %v1066_v50 = vshrl.u32 %v866_v46, 16  ;;  %v1069_v52 = vshll.u32 %v866_v46, 16  ;;  %828 = vst [vmem:[#allocation2 + $0x98] sm:$0x1] %v827_v13  ;;  %v774_v46 = vsel %vm5470_vm10, 0, %v773_v16  ;;  %v2746_v59 = vrot.slane %v2745_v4, 4 }
 0x197   : > { %v571_v3 = vpop.f32.mrf.mxu0  ;;  %v2107_v20 = vrot.slane %v2105_v43, 4  ;;  %775 = vst [vmem:[#allocation2 + $0x9c] sm:$0x1] %v774_v46  ;;  %v2106_v13 = vsel %vm5458_vm8, %v5124_v41, %v2105_v43  ;;  %v6306_v43 = vrot.slane %v2748_v48, 5  ;;  %v1972_v41 = vld [vmem:[#allocation2 + $0x7c] sm:$0xf] }
 0x198   : > { %2186 = vrot.lane.b32.xlu1 %v2102_v42, %s5353_s19  ;;  %v572_v62 = vadd.f32 %v6161_v22, %v571_v3  ;;  %v1068_v37 = vrot.slane %v1066_v50, 7  ;;  %v1332_v48 = vld [vmem:[#allocation2 + $0x70] sm:$0xf] }
 0x199   : > { %v2109_v17 = vsel %vm5458_vm8, %v2107_v20, %v2108_v58  ;;  %v2752_v58 = vshrl.u32 %v6283_v34, 16  ;;  %1364 = vst.msk [vmem:[#allocation3 + $0x4c] sm:$0xf] %vm722_vm2, %v1332_v48 }
 0x19a   : > { %v2169_v1 = vpop.permute.xlu1 %2168  ;;  %v1071_v5 = vor.u32 %v1069_v52, %v1068_v37  ;;  %v713_v11 = vmax.f32 %v572_v62, %v668_v0  ;;  %v1072_v28 = vrot.slane %v1068_v37, 4  ;;  %v670_v37 = vpop.f32.mrf.mxu1  ;;  %v1661_v0 = vor.u32 %v1660_v45, %v6256_v47  ;;  %v2301_v45 = vld [vmem:[#allocation2 + $0x84] sm:$0xf] }
 0x19b   : > { %1848 = vrot.lane.b32.xlu0 %v1657_v49, %s5354_s20  ;;  %2257 = vst.msk [vmem:[#allocation3 + $0x20] sm:$0xf] %vm2248_vm6, %v2169_v1  ;;  %v1408_v49 = vld [vmem:[#allocation2 + $0x7c] sm:$0xf]  ;;  %v1664_v1 = vshll.u32 %v1406_v36, 16  ;;  %v671_v53 = vadd.f32 %v6169_v2, %v670_v37 }
 0x19c   : > { %1846 = vrot.lane.b32.xlu2 %v1643_v14, %s5354_s20  ;;  %v1279_v24 = vsel %vm5519_vm14, %v1071_v5, %v1278_v8  ;;  %v867_v35 = vpack.c.bf16 %v713_v11, %v713_v11  ;;  %v2736_v11 = vrot.slane %v2734_v60, 5  ;;  %v829_v14 = vld [vmem:[#allocation2 + $0xa4] sm:$0x1] }
 0x19d   : > { %v2362_v12 = vpop.permute.xlu0 %2361  ;;  %1280 = vst [vmem:[#allocation2 + $0x90] sm:$0xf] %v1279_v24  ;;  %v1282_v63 = vld [vmem:[#allocation2 + $0x98] sm:$0x1]  ;;  %v830_v20 = vsel %vm5449_vm5, 0, %v829_v14  ;;  %v1662_v24 = vrot.slane %v1661_v0, 4 }
 0x19e   : > { %2450 = vst.msk [vmem:[#allocation3 + $0x20] sm:$0xf] %vm2441_vm7, %v2362_v12  ;;  %v6279_v25 = vpop.permute.xlu2 %3261  ;;  %v1074_v38 = vshrl.u32 %v867_v35, 16  ;;  %v1077_v40 = vshll.u32 %v867_v35, 16  ;;  %v1678_v12 = vshll.u32 %v1408_v49, 16  ;;  %v1666_v35 = vrot.slane %v1664_v1, 5 }
 0x19f   : > { %3011 = vst.msk [vmem:[#allocation3 + $0x20] sm:$0xf] %vm3002_vm9, %v2923_v32  ;;  %v2731_v32 = vor.u32 %v2730_v30, %v2726_v55  ;;  %v574_v61 = vpop.f32.mrf.mxu0  ;;  %v1682_v55 = vshrl.u32 %v1408_v49, 16  ;;  %v1409_v30 = vld [vmem:[#allocation2 + $0x80] sm:$0x1] }
 0x1a0   : > { %2938 = vrot.lane.b32.xlu1 %v2727_v33, %s5356_s26  ;;  %v1076_v44 = vrot.slane %v1074_v38, 7  ;;  %831 = vst [vmem:[#allocation2 + $0xa4] sm:$0x1] %v830_v20  ;;  %v1333_v33 = vld [vmem:[#allocation2 + $0x78] sm:$0xf]  ;;  %v6326_v4 = vrot.slane %v1678_v12, 5 }
 0x1a1   : > { %v2732_v5 = vrot.slane %v2731_v32, 4  ;;  %v1684_v21 = vrot.slane %v1682_v55, 4  ;;  %1365 = vst.msk [vmem:[#allocation3 + $0x50] sm:$0xf] %vm722_vm2, %v1333_v33  ;;  %v1285_v60 = vld [vmem:[#allocation2 + $0x9c] sm:$0xf] }
 0x1a2   : > { %v2921_v42 = vpop.permute.xlu1 %2920  ;;  %v1079_v50 = vor.u32 %v1077_v40, %v1076_v44  ;;  %v1081_v52 = vrot.slane %v1076_v44, 4  ;;  %v1674_v44 = vrot.slane %v1672_v18, 5  ;;  %v2300_v1 = vld [vmem:[#allocation2 + $0x7c] sm:$0xf]  ;;  %v2505_v18 = vld [vmem:[#allocation2 + $0x88] sm:$0xf] }
 0x1a3   : > { %2190 = vrot.lane.b32.xlu0 %v2109_v17, %s5353_s19  ;;  %3010 = vst.msk [vmem:[#allocation3 + $0x1c] sm:$0xf] %vm3002_vm9, %v2921_v42  ;;  %v2737_v40 = vsel %vm5477_vm13, %v2732_v5, %v2736_v11  ;;  %v672_v42 = vpop.f32.mrf.mxu1 }
 0x1a4   : > { %3347 = vst.msk [vmem:[#allocation3 + $0x1c] sm:$0xf] %vm3339_vm11, %v6249_v10  ;;  %2188 = vrot.lane.b32.xlu2 %v2106_v13, %s5353_s19  ;;  %v1080_v62 = vsel %vm5530_vm3, %v1072_v28, %v1079_v50  ;;  %v1283_v9 = vsel %vm5470_vm10, %v1081_v52, %v1282_v63  ;;  %v575_v10 = vadd.f32 %v6161_v22, %v574_v61  ;;  %v1671_v28 = vrot.slane %v1669_v57, 4  ;;  %v2503_v61 = vld [vmem:[#allocation2 + $0x80] sm:$0x1] }
 0x1a5   : > { %v1831_v3 = vpop.permute.xlu0 %1830  ;;  %1281 = vst.msk [vmem:[#allocation2 + $0x94] sm:$0xf] %vm722_vm2, %v1080_v62  ;;  %v1688_v63 = vshll.u32 %v1409_v30, 16  ;;  %v673_v36 = vadd.f32 %v6169_v2, %v672_v42  ;;  %v1667_v52 = vsel %vm5477_vm13, %v1662_v24, %v1666_v35  ;;  %v2112_v13 = vrot.slane %v1972_v41, 5 }
 0x1a6   : > { %1918 = vst.msk [vmem:[#allocation3 + $0x24] sm:$0xf] %vm1908_vm4, %v1831_v3  ;;  %v6310_v8 = vpop.permute.xlu2 %2365  ;;  %v714_v47 = vmax.f32 %v575_v10, %v671_v53  ;;  %v1971_v3 = vld [vmem:[#allocation2 + $0x78] sm:$0xe]  ;;  %v1685_v10 = vor.u32 %v1684_v21, %v6326_v4  ;;  %v1675_v37 = vor.u32 %v1674_v44, %v1671_v28  ;;  %v2758_v11 = vshll.u32 %v2503_v61, 16 }
 0x1a7   : > { %2258 = vst.msk [vmem:[#allocation3 + $0x24] sm:$0xf] %vm2248_vm6, %v6231_v56  ;;  %v2751_v56 = vsel %vm5477_vm13, %v2746_v59, %v6306_v43  ;;  %v576_v17 = vpop.f32.mrf.mxu0  ;;  %v2754_v59 = vrot.slane %v2752_v58, 4  ;;  %v5125_v51 = vrot.slane %v1971_v3, 9  ;;  %v1690_v53 = vrot.slane %v1688_v63, 5 }
 0x1a8   : > { %2381 = vrot.lane.b32.xlu1 %v2299_v54, %s5355_s25  ;;  %1284 = vst [vmem:[#allocation2 + $0x98] sm:$0x1] %v1283_v9  ;;  %v868_v29 = vpack.c.bf16 %v714_v47, %v714_v47  ;;  %v577_v46 = vadd.f32 %v6161_v22, %v576_v17  ;;  %v6339_v9 = vld [vmem:[#allocation2 + $0x80] sm:$0x1]  ;;  %v6348_v12 = vrot.slane %v2112_v13, 4  ;;  %v1686_v20 = vrot.slane %v1685_v10, 4 }
 0x1a9   : > { %v2115_v47 = vrot.slane %v6339_v9, 5  ;;  %v1676_v58 = vrot.slane %v1675_v37, 4  ;;  %v2776_v21 = vshrl.u32 %v2505_v18, 16  ;;  %v2504_v28 = vld [vmem:[#allocation2 + $0x84] sm:$0xf] }
 0x1aa   : > { %v2364_v19 = vpop.permute.xlu1 %2363  ;;  %v1083_v34 = vshrl.u32 %v868_v29, 16  ;;  %v1086_v16 = vshll.u32 %v868_v29, 16  ;;  %v715_v49 = vmax.f32 %v577_v46, %v673_v36  ;;  %v1334_v29 = vld [vmem:[#allocation2 + $0x7c] sm:$0xf]  ;;  %v1691_v42 = vsel %vm5477_vm13, %v1686_v20, %v1690_v53  ;;  %v1289_v48 = vld [vmem:[#allocation2 + $0xa4] sm:$0x1] }
 0x1ab   : > { %2942 = vrot.lane.b32.xlu0 %v2751_v56, %s5356_s26  ;;  %2451 = vst.msk [vmem:[#allocation3 + $0x24] sm:$0xf] %vm2441_vm7, %v2364_v19  ;;  %v2755_v56 = vor.u32 %v2754_v59, %v6306_v43  ;;  %v776_v19 = vld [vmem:[#allocation2 + $0xa8] sm:$0x1]  ;;  %v2113_v43 = vsel %vm5458_vm8, %v5125_v51, %v2112_v13  ;;  %v675_v46 = vpop.f32.mrf.mxu1  ;;  %v1410_v3 = vld [vmem:[#allocation2 + $0x84] sm:$0xf] }
 0x1ac   : > { %2940 = vrot.lane.b32.xlu2 %v2737_v40, %s5356_s26  ;;  %v6330_v32 = vrot.slane %v1083_v34, 7  ;;  %v869_v5 = vpack.c.bf16 %v715_v49, %v715_v49  ;;  %v777_v35 = vsel %vm5470_vm10, 0, %v776_v19  ;;  %v2760_v40 = vrot.slane %v2758_v11, 5  ;;  %1366 = vst.msk [vmem:[#allocation3 + $0x54] sm:$0xf] %vm722_vm2, %v1334_v29 }
 0x1ad   : > { %v6322_v38 = vpop.permute.xlu0 %2172  ;;  %v2756_v33 = vrot.slane %v2755_v56, 4  ;;  %v2772_v34 = vshll.u32 %v2505_v18, 16  ;;  %778 = vst [vmem:[#allocation2 + $0xa8] sm:$0x1] %v777_v35  ;;  %v676_v63 = vadd.f32 %v6169_v2, %v675_v46  ;;  %v2778_v49 = vrot.slane %v2776_v21, 4 }
 0x1ae   : > { %v1835_v50 = vpop.permute.xlu2 %1834  ;;  %v1088_v62 = vor.u32 %v1086_v16, %v6330_v32  ;;  %v1091_v55 = vshrl.u32 %v869_v5, 16  ;;  %v1094_v57 = vshll.u32 %v869_v5, 16  ;;  %v1089_v41 = vrot.slane %v6330_v32, 4  ;;  %v1974_v16 = vld [vmem:[#allocation2 + $0x84] sm:$0xe] }
 0x1af   : > { %1920 = vst.msk [vmem:[#allocation3 + $0x2c] sm:$0xf] %vm1908_vm4, %v1835_v50  ;;  %v579_v44 = vpop.f32.mrf.mxu0  ;;  %v1336_v32 = vld [vmem:[#allocation2 + $0x88] sm:$0xf]  ;;  %v1681_v50 = vsel %vm5477_vm13, %v1676_v58, %v6326_v4  ;;  %v5126_v13 = vrot.slane %v1974_v16, 9  ;;  %v2763_v10 = vshrl.u32 %v2504_v28, 16 }
 0x1b0   : > { %1850 = vrot.lane.b32.xlu1 %v1667_v52, %s5354_s20  ;;  %v1286_v54 = vsel %vm5519_vm14, %v1088_v62, %v1285_v60  ;;  %v1093_v24 = vrot.slane %v1091_v55, 7  ;;  %v6372_v52 = vld [vmem:[#allocation2 + $0x88] sm:$0xf]  ;;  %1368 = vst.msk [vmem:[#allocation3 + $0x5c] sm:$0xf] %vm722_vm2, %v1336_v32  ;;  %v6378_v60 = vrot.slane %v2772_v34, 5 }
 0x1b1   : > { %1287 = vst [vmem:[#allocation2 + $0x9c] sm:$0xf] %v1286_v54  ;;  %v2766_v37 = vshll.u32 %v2504_v28, 16  ;;  %v1693_v51 = vshrl.u32 %v1410_v3, 16  ;;  %v832_v54 = vld [vmem:[#allocation2 + $0xb0] sm:$0x1]  ;;  %v2116_v28 = vsel %vm5458_vm8, %v6348_v12, %v2115_v47 }
 0x1b2   : > { %v3260_v0 = vpop.permute.xlu1 %3259  ;;  %v1098_v17 = vrot.slane %v1093_v24, 4  ;;  %v1335_v5 = vld [vmem:[#allocation2 + $0x84] sm:$0xf]  ;;  %v1696_v11 = vshll.u32 %v1410_v3, 16  ;;  %v2765_v20 = vrot.slane %v2763_v10, 4 }
 0x1b3   : > { %2385 = vrot.lane.b32.xlu0 %v2301_v45, %s5355_s25  ;;  %3348 = vst.msk [vmem:[#allocation3 + $0x20] sm:$0xf] %vm3339_vm11, %v3260_v0  ;;  %v580_v45 = vadd.f32 %v6161_v22, %v579_v44  ;;  %v2119_v0 = vrot.slane %v6372_v52, 5  ;;  %v2768_v58 = vrot.slane %v2766_v37, 5  ;;  %v1695_v34 = vrot.slane %v1693_v51, 4 }
 0x1b4   : > { %2383 = vrot.lane.b32.xlu2 %v2300_v1, %s5355_s25  ;;  %v1290_v4 = vsel %vm5470_vm10, %v1098_v17, %v1289_v48  ;;  %v2506_v1 = vld [vmem:[#allocation2 + $0x8c] sm:$0x1]  ;;  %1367 = vst.msk [vmem:[#allocation3 + $0x58] sm:$0xf] %vm722_vm2, %v1335_v5  ;;  %v1698_v16 = vrot.slane %v1696_v11, 5 }
 0x1b5   : > { %v2925_v14 = vpop.permute.xlu0 %2924  ;;  %v716_v61 = vmax.f32 %v580_v45, %v676_v63  ;;  %1291 = vst [vmem:[#allocation2 + $0xa4] sm:$0x1] %v1290_v4  ;;  %v2782_v18 = vshll.u32 %v2506_v1, 16  ;;  %v1411_v48 = vld [vmem:[#allocation2 + $0x88] sm:$0xf] }
 0x1b6   : > { %3012 = vst.msk [vmem:[#allocation3 + $0x24] sm:$0xf] %vm3002_vm9, %v2925_v14  ;;  %v6359_v30 = vpop.permute.xlu2 %2176  ;;  %v1413_v32 = vld [vmem:[#allocation2 + $0x90] sm:$0xf]  ;;  %v2302_v9 = vld [vmem:[#allocation2 + $0x88] sm:$0xf] }
 0x1b7   : > { %3349 = vst.msk [vmem:[#allocation3 + $0x24] sm:$0xf] %vm3339_vm11, %v6279_v25  ;;  %v1096_v25 = vor.u32 %v1094_v57, %v1093_v24  ;;  %v870_v53 = vpack.c.bf16 %v716_v61, %v716_v61  ;;  %v2779_v57 = vor.u32 %v2778_v49, %v6378_v60  ;;  %v581_v19 = vpop.f32.mrf.mxu0  ;;  %v2120_v24 = vsel %vm5458_vm8, %v5126_v13, %v2119_v0  ;;  %v1976_v11 = vld [vmem:[#allocation2 + $0x8c] sm:$0x1] }
 0x1b8   : > { %2192 = vrot.lane.b32.xlu1 %v2113_v43, %s5353_s19  ;;  %v677_v43 = vpop.f32.mrf.mxu1  ;;  %v582_v29 = vadd.f32 %v6161_v22, %v581_v19  ;;  %v2784_v46 = vrot.slane %v2782_v18, 5  ;;  %v1720_v4 = vshll.u32 %v1413_v32, 16  ;;  %v1706_v37 = vshrl.u32 %v1411_v48, 16 }
 0x1b9   : > { %v1097_v59 = vsel %vm5530_vm3, %v1089_v41, %v1096_v25  ;;  %v1100_v14 = vshrl.u32 %v870_v53, 16  ;;  %v1103_v55 = vshll.u32 %v870_v53, 16  ;;  %v1292_v41 = vld [vmem:[#allocation2 + $0xa8] sm:$0xf]  ;;  %v2780_v44 = vrot.slane %v2779_v57, 4 }
 0x1ba   : > { %v1833_v36 = vpop.permute.xlu1 %1832  ;;  %1288 = vst.msk [vmem:[#allocation2 + $0xa0] sm:$0xf] %vm722_vm2, %v1097_v59  ;;  %v1702_v59 = vshll.u32 %v1411_v48, 16  ;;  %v1412_v57 = vld [vmem:[#allocation2 + $0x8c] sm:$0x1] }
 0x1bb   : > { %1854 = vrot.lane.b32.xlu0 %v1691_v42, %s5354_s20  ;;  %1919 = vst.msk [vmem:[#allocation3 + $0x28] sm:$0xf] %vm1908_vm4, %v1833_v36  ;;  %v1102_v35 = vrot.slane %v1100_v14, 7  ;;  %v2769_v42 = vor.u32 %v2768_v58, %v2765_v20  ;;  %v2785_v47 = vsel %vm5477_vm13, %v2780_v44, %v2784_v46  ;;  %v2507_v14 = vld [vmem:[#allocation2 + $0x90] sm:$0xf]  ;;  %v1708_v58 = vrot.slane %v1706_v37, 4 }
 0x1bc   : > { %2259 = vst.msk [vmem:[#allocation3 + $0x28] sm:$0xf] %vm2248_vm6, %v6322_v38  ;;  %1852 = vrot.lane.b32.xlu2 %v1681_v50, %s5354_s20  ;;  %v2761_v38 = vsel %vm5477_vm13, %v2756_v33, %v2760_v40  ;;  %v678_v33 = vadd.f32 %v6169_v2, %v677_v43  ;;  %v1699_v50 = vor.u32 %v1698_v16, %v1695_v34  ;;  %v1337_v44 = vld [vmem:[#allocation2 + $0x90] sm:$0xf] }
 0x1bd   : > { %v2368_v62 = vpop.permute.xlu0 %2367  ;;  %2452 = vst.msk [vmem:[#allocation3 + $0x28] sm:$0xf] %vm2441_vm7, %v6310_v8  ;;  %v833_v8 = vsel %vm5449_vm5, 0, %v832_v54  ;;  %v1105_v25 = vor.u32 %v1103_v55, %v1102_v35  ;;  %v2770_v13 = vrot.slane %v2769_v42, 4  ;;  %v1106_v61 = vrot.slane %v1102_v35, 4 }
 0x1be   : > { %v2929_v56 = vpop.permute.xlu2 %2928  ;;  %834 = vst [vmem:[#allocation2 + $0xb0] sm:$0x1] %v833_v8  ;;  %v717_v17 = vmax.f32 %v582_v29, %v678_v33  ;;  %v1700_v51 = vrot.slane %v1699_v50, 4  ;;  %v1722_v8 = vrot.slane %v1720_v4, 5  ;;  %v2790_v35 = vshll.u32 %v2507_v14, 16 }
 0x1bf   : > { %v1293_v45 = vsel %vm5519_vm14, %v1105_v25, %v1292_v41  ;;  %v2775_v5 = vsel %vm5477_vm13, %v2770_v13, %v6378_v60  ;;  %v6433_v60 = vld [vmem:[#allocation2 + $0x94] sm:$0xf]  ;;  %v584_v29 = vpop.f32.mrf.mxu0  ;;  %v2122_v25 = vrot.slane %v1976_v11, 5  ;;  %1369 = vst.msk [vmem:[#allocation3 + $0x60] sm:$0xf] %vm722_vm2, %v1337_v44 }
 0x1c0   : > { %2944 = vrot.lane.b32.xlu1 %v2761_v38, %s5356_s26  ;;  %v871_v63 = vpack.c.bf16 %v717_v17, %v717_v17  ;;  %1294 = vst [vmem:[#allocation2 + $0xa8] sm:$0xf] %v1293_v45  ;;  %v779_v33 = vld [vmem:[#allocation2 + $0xb4] sm:$0x1]  ;;  %v585_v41 = vadd.f32 %v6161_v22, %v584_v29  ;;  %v680_v34 = vpop.f32.mrf.mxu1  ;;  %v1726_v52 = vshll.u32 %v6433_v60, 16  ;;  %v2792_v45 = vrot.slane %v2790_v35, 5 }
 0x1c1   : > { %v780_v16 = vsel %vm5470_vm10, 0, %v779_v33  ;;  %v2508_v42 = vld [vmem:[#allocation2 + $0x94] sm:$0xf]  ;;  %v2510_v13 = vld [vmem:[#allocation2 + $0x9c] sm:$0xf] }
 0x1c2   : > { %v2175_v40 = vpop.permute.xlu1 %2174  ;;  %v1108_v3 = vshrl.u32 %v871_v63, 16  ;;  %v1111_v12 = vshll.u32 %v871_v63, 16  ;;  %781 = vst [vmem:[#allocation2 + $0xb4] sm:$0x1] %v780_v16  ;;  %v2796_v4 = vshll.u32 %v2508_v42, 16  ;;  %v2811_v11 = vshrl.u32 %v2510_v13, 16 }
 0x1c3   : > { %2196 = vrot.lane.b32.xlu0 %v2120_v24, %s5353_s19  ;;  %2260 = vst.msk [vmem:[#allocation3 + $0x2c] sm:$0xf] %vm2248_vm6, %v2175_v40  ;;  %v2787_v24 = vshrl.u32 %v2507_v14, 16  ;;  %v2304_v40 = vld [vmem:[#allocation2 + $0x94] sm:$0xf]  ;;  %v2814_v14 = vshll.u32 %v2510_v13, 16 }
 0x1c4   : > { %2453 = vst.msk [vmem:[#allocation3 + $0x2c] sm:$0xf] %vm2441_vm7, %v2368_v62  ;;  %2194 = vrot.lane.b32.xlu2 %v2116_v28, %s5353_s19  ;;  %v1717_v62 = vshrl.u32 %v1413_v32, 16  ;;  %v1110_v49 = vrot.slane %v1108_v3, 7  ;;  %v681_v28 = vadd.f32 %v6169_v2, %v680_v34  ;;  %v1977_v33 = vld [vmem:[#allocation2 + $0x90] sm:$0xe] }
 0x1c5   : > { %v3264_v21 = vpop.permute.xlu0 %3263  ;;  %3014 = vst.msk [vmem:[#allocation3 + $0x2c] sm:$0xf] %vm3002_vm9, %v2929_v56  ;;  %v1296_v1 = vld [vmem:[#allocation2 + $0xb0] sm:$0x1]  ;;  %v1704_v56 = vrot.slane %v1702_v59, 5  ;;  %v2789_v48 = vrot.slane %v2787_v24, 4 }
 0x1c6   : > { %v6414_v36 = vpop.permute.xlu2 %2371  ;;  %v1113_v53 = vor.u32 %v1111_v12, %v1110_v49  ;;  %v1115_v38 = vrot.slane %v1110_v49, 4  ;;  %v1719_v55 = vrot.slane %v1717_v62, 4  ;;  %v718_v63 = vmax.f32 %v585_v41, %v681_v28 }
 0x1c7   : > { %v1705_v43 = vsel %vm5477_vm13, %v1700_v51, %v1704_v56  ;;  %v2800_v49 = vshrl.u32 %v2508_v42, 16  ;;  %v1979_v51 = vld [vmem:[#allocation2 + $0x98] sm:$0x1]  ;;  %v2798_v24 = vrot.slane %v2796_v4, 5  ;;  %v2816_v16 = vrot.slane %v2814_v14, 5 }
 0x1c8   : > { %2387 = vrot.lane.b32.xlu1 %v2302_v9, %s5355_s25  ;;  %v1114_v18 = vsel %vm5530_vm3, %v1106_v61, %v1113_v53  ;;  %v1297_v20 = vsel %vm5470_vm10, %v1115_v38, %v1296_v1  ;;  %v1723_v17 = vor.u32 %v1722_v8, %v1719_v55  ;;  %v2303_v9 = vld [vmem:[#allocation2 + $0x90] sm:$0xf]  ;;  %v872_v59 = vpack.c.bf16 %v718_v63, %v718_v63  ;;  %v682_v8 = vpop.f32.mrf.mxu1  ;;  %v1338_v63 = vld [vmem:[#allocation2 + $0x94] sm:$0xf]  ;;  %v1417_v14 = vld [vmem:[#allocation2 + $0xa0] sm:$0xf] }
 0x1c9   : > { %1295 = vst.msk [vmem:[#allocation2 + $0xac] sm:$0xf] %vm722_vm2, %v1114_v18  ;;  %v6458_v61 = vrot.slane %v1726_v52, 5  ;;  %v2793_v1 = vor.u32 %v2792_v45, %v2789_v48  ;;  %v1299_v35 = vld [vmem:[#allocation2 + $0xb4] sm:$0xf]  ;;  %v2129_v29 = vrot.slane %v1979_v51, 5 }
 0x1ca   : > { %v2927_v10 = vpop.permute.xlu1 %2926  ;;  %1298 = vst [vmem:[#allocation2 + $0xb0] sm:$0x1] %v1297_v20  ;;  %v1724_v3 = vrot.slane %v1723_v17, 4  ;;  %v1117_v53 = vshrl.u32 %v872_v59, 16  ;;  %v1120_v38 = vshll.u32 %v872_v59, 16  ;;  %v683_v20 = vadd.f32 %v6169_v2, %v682_v8 }
 0x1cb   : > { %2948 = vrot.lane.b32.xlu0 %v2785_v47, %s5356_s26  ;;  %3013 = vst.msk [vmem:[#allocation3 + $0x28] sm:$0xf] %vm3002_vm9, %v2927_v10  ;;  %v6456_v47 = vld [vmem:[#allocation2 + $0x94] sm:$0xf]  ;;  %v835_v10 = vld [vmem:[#allocation2 + $0xbc] sm:$0x1] }
 0x1cc   : > { %3350 = vst.msk [vmem:[#allocation3 + $0x28] sm:$0xf] %vm3339_vm11, %v3264_v21  ;;  %2946 = vrot.lane.b32.xlu2 %v2775_v5, %s5356_s26  ;;  %v1712_v21 = vshll.u32 %v1412_v57, 16  ;;  %v836_v5 = vsel %vm5449_vm5, 0, %v835_v10  ;;  %v1729_v57 = vsel %vm5477_vm13, %v1724_v3, %v6458_v61  ;;  %v6469_v18 = vrot.slane %v1117_v53, 7 }
 0x1cd   : > { %v1837_v54 = vpop.permute.xlu0 %1836  ;;  %837 = vst [vmem:[#allocation2 + $0xbc] sm:$0x1] %v836_v5  ;;  %v2813_v2 = vrot.slane %v2811_v11, 4  ;;  %v6479_v17 = vld [vmem:[#allocation2 + $0xa0] sm:$0xf]  ;;  %v5127_v52 = vrot.slane %v1977_v33, 9 }
 0x1ce   : > { %1921 = vst.msk [vmem:[#allocation3 + $0x30] sm:$0xf] %vm1908_vm4, %v1837_v54  ;;  %v6435_v19 = vpop.permute.xlu2 %3267  ;;  %v1714_v12 = vrot.slane %v1712_v21, 5  ;;  %v586_v54 = vpop.f32.mrf.mxu0  ;;  %v2509_v21 = vld [vmem:[#allocation2 + $0x98] sm:$0x1] }
 0x1cf   : > { %2261 = vst.msk [vmem:[#allocation3 + $0x30] sm:$0xf] %vm2248_vm6, %v6359_v30  ;;  %v2121_v30 = vrot.slane %v2119_v0, 4  ;;  %v1709_v0 = vor.u32 %v1708_v58, %v1704_v56  ;;  %v2126_v56 = vrot.slane %v6456_v47, 5  ;;  %v587_v55 = vadd.f32 %v6161_v22, %v586_v54  ;;  %v2305_v5 = vld [vmem:[#allocation2 + $0x9c] sm:$0xf] }
 0x1d0   : > { %1856 = vrot.lane.b32.xlu1 %v1705_v43, %s5354_s20  ;;  %v2794_v22 = vrot.slane %v2793_v1, 4  ;;  %1370 = vst.msk [vmem:[#allocation3 + $0x64] sm:$0xf] %vm722_vm2, %v1338_v63 }
 0x1d1   : > { %v2123_v50 = vsel %vm5458_vm8, %v2121_v30, %v2122_v25  ;;  %v1710_v62 = vrot.slane %v1709_v0, 4  ;;  %v719_v30 = vmax.f32 %v587_v55, %v683_v20  ;;  %v2128_v34 = vrot.slane %v2126_v56, 4  ;;  %v6514_v55 = vld [vmem:[%s7381_s7] ss:$0 sm:$0xff] }
 0x1d2   : > { %v3266_v46 = vpop.permute.xlu1 %3265  ;;  %v2802_v25 = vrot.slane %v2800_v49, 4  ;;  %v2799_v42 = vsel %vm5477_vm13, %v2794_v22, %v2798_v24  ;;  %v2127_v4 = vsel %vm5458_vm8, %v5127_v52, %v2126_v56  ;;  %v1415_v49 = vld [vmem:[#allocation2 + $0x98] sm:$0x1]  ;;  %v6523_v20 = vld [vmem:[%s7382_s8] ss:$0 sm:$0xff]  ;;  %v685_v33 = vpop.f32.mrf.mxu1 }
 0x1d3   : > { %2391 = vrot.lane.b32.xlu0 %v2304_v40, %s5355_s25  ;;  %3351 = vst.msk [vmem:[#allocation3 + $0x2c] sm:$0xf] %vm3339_vm11, %v3266_v46  ;;  %v1715_v43 = vsel %vm5477_vm13, %v1710_v62, %v1714_v12  ;;  %v1122_v40 = vor.u32 %v1120_v38, %v6469_v18  ;;  %v873_v44 = vpack.c.bf16 %v719_v30, %v719_v30  ;;  %v1730_v46 = vshrl.u32 %v6433_v60, 16  ;;  %v5340_v22 = vld [vmem:[%s7377_s3] ss:$0 sm:$0xff] }
 0x1d4   : > { %2389 = vrot.lane.b32.xlu2 %v2303_v9, %s5355_s25  ;;  %v2817_v9 = vor.u32 %v2816_v16, %v2813_v2  ;;  %v2803_v3 = vor.u32 %v2802_v25, %v2798_v24  ;;  %v2806_v60 = vshll.u32 %v2509_v21, 16  ;;  %v1123_v12 = vrot.slane %v6469_v18, 4  ;;  %v1303_v62 = vld [vmem:[#allocation2 + $0xbc] sm:$0x1]  ;;  %v5341_v30 = vld [vmem:[%s7378_s4] ss:$0 sm:$0xff] }
 0x1d5   : > { %v6451_v32 = vpop.permute.xlu0 %2178  ;;  %v1300_v28 = vsel %vm5519_vm14, %v1122_v40, %v1299_v35  ;;  %v1125_v48 = vshrl.u32 %v873_v44, 16  ;;  %v1128_v45 = vshll.u32 %v873_v44, 16  ;;  %v1732_v59 = vrot.slane %v1730_v46, 4 }
 0x1d6   : > { %v1841_v37 = vpop.permute.xlu2 %1840  ;;  %1301 = vst [vmem:[#allocation2 + $0xb4] sm:$0xf] %v1300_v28  ;;  %v2818_v51 = vrot.slane %v2817_v9, 4  ;;  %v2804_v38 = vrot.slane %v2803_v3, 4  ;;  %v2808_v54 = vrot.slane %v2806_v60, 5  ;;  %v1750_v24 = vshll.u32 %v1417_v14, 16 }
 0x1d7   : > { %1923 = vst.msk [vmem:[#allocation3 + $0x38] sm:$0xf] %vm1908_vm4, %v1841_v37  ;;  %v1127_v47 = vrot.slane %v1125_v48, 7  ;;  %v1733_v8 = vor.u32 %v1732_v59, %v6458_v61  ;;  %v1754_v35 = vshrl.u32 %v1417_v14, 16  ;;  %v1416_v61 = vld [vmem:[#allocation2 + $0x9c] sm:$0xf] }
 0x1d8   : > { %2198 = vrot.lane.b32.xlu1 %v2123_v50, %s5353_s19  ;;  %v2820_v50 = vshll.u32 %v6479_v17, 16  ;;  %v1741_v46 = vshrl.u32 %v1416_v61, 16  ;;  %v1744_v52 = vshll.u32 %v1416_v61, 16  ;;  %v6548_v63 = vrot.slane %v1750_v24, 5  ;;  %v1418_v3 = vld [vmem:[#allocation2 + $0xa4] sm:$0x1] }
 0x1d9   : > { %v1130_v10 = vor.u32 %v1128_v45, %v1127_v47  ;;  %v1132_v37 = vrot.slane %v1127_v47, 4  ;;  %v1734_v25 = vrot.slane %v1733_v8, 4  ;;  %v2809_v45 = vsel %vm5477_vm13, %v2804_v38, %v2808_v54  ;;  %v1980_v47 = vld [vmem:[#allocation2 + $0x9c] sm:$0xe]  ;;  %v2512_v61 = vld [vmem:[#allocation2 + $0xa4] sm:$0x1] }
 0x1da   : > { %v2370_v58 = vpop.permute.xlu1 %2369  ;;  %v6502_v53 = vrot.slane %v2820_v50, 5  ;;  %v1756_v9 = vrot.slane %v1754_v35, 4  ;;  %v2307_v50 = vld [vmem:[#allocation2 + $0xa8] sm:$0xf]  ;;  %v687_v54 = vpop.f32.mrf.mxu1 }
 0x1db   : > { %1860 = vrot.lane.b32.xlu0 %v1729_v57, %s5354_s20  ;;  %2454 = vst.msk [vmem:[#allocation3 + $0x30] sm:$0xf] %vm2441_vm7, %v2370_v58  ;;  %v1131_v56 = vsel %vm5530_vm3, %v1123_v12, %v1130_v10  ;;  %v1304_v11 = vsel %vm5470_vm10, %v1132_v37, %v1303_v62  ;;  %v1736_v57 = vshll.u32 %v1415_v49, 16  ;;  %v589_v58 = vpop.f32.mrf.mxu0  ;;  %v1743_v62 = vrot.slane %v1741_v46, 4  ;;  %v2514_v46 = vld [vmem:[#allocation2 + $0xac] sm:$0xf] }
 0x1dc   : > { %1858 = vrot.lane.b32.xlu2 %v1715_v43, %s5354_s20  ;;  %1302 = vst.msk [vmem:[#allocation2 + $0xb8] sm:$0xf] %vm722_vm2, %v1131_v56  ;;  %v1339_v43 = vld [vmem:[#allocation2 + $0x9c] sm:$0xf]  ;;  %v2823_v40 = vsel %vm5477_vm13, %v2818_v51, %v6502_v53  ;;  %v1760_v51 = vshll.u32 %v1418_v3, 16  ;;  %v5128_v56 = vrot.slane %v1980_v47, 9  ;;  %v688_v14 = vadd.f32 %v5341_v30, %v687_v54 }
 0x1dd   : > { %v2931_v41 = vpop.permute.xlu0 %2930  ;;  %1305 = vst [vmem:[#allocation2 + $0xbc] sm:$0x1] %v1304_v11  ;;  %v1738_v21 = vrot.slane %v1736_v57, 5  ;;  %v6596_v3 = vld [vmem:[#allocation2 + $0xac] sm:$0xf]  ;;  %v2848_v47 = vshrl.u32 %v2514_v46, 16 }
 0x1de   : > { %3015 = vst.msk [vmem:[#allocation3 + $0x30] sm:$0xf] %vm3002_vm9, %v2931_v41  ;;  %v6486_v0 = vpop.permute.xlu2 %2182  ;;  %v686_v41 = vadd.f32 %v5341_v30, %v685_v33  ;;  %v2306_v30 = vld [vmem:[#allocation2 + $0xa0] sm:$0xf] }
 0x1df   : > { %3352 = vst.msk [vmem:[#allocation3 + $0x30] sm:$0xf] %vm3339_vm11, %v6435_v19  ;;  %v2130_v19 = vsel %vm5458_vm8, %v2128_v34, %v2129_v29  ;;  %v590_v29 = vadd.f32 %v5340_v22, %v589_v58  ;;  %v2824_v34 = vshrl.u32 %v6479_v17, 16  ;;  %v1739_v12 = vsel %vm5477_vm13, %v1734_v25, %v1738_v21 }
 0x1e0   : > { %2950 = vrot.lane.b32.xlu1 %v2799_v42, %s5356_s26  ;;  %1371 = vst.msk [vmem:[#allocation3 + $0x68] sm:$0xf] %vm722_vm2, %v1339_v43 }
 0x1e1   : > { %v720_v42 = vmax.f32 %v590_v29, %v686_v41 }
 0x1e2   : > { %v1839_v13 = vpop.permute.xlu1 %1838 }
 0x1e3   : > { %2202 = vrot.lane.b32.xlu0 %v2130_v19, %s5353_s19  ;;  %1922 = vst.msk [vmem:[#allocation3 + $0x34] sm:$0xf] %vm1908_vm4, %v1839_v13  ;;  %v874_v60 = vpack.c.bf16 %v720_v42, %v720_v42  ;;  %v6557_v13 = vld [vmem:[#allocation2 + $0xa0] sm:$0xf]  ;;  %v591_v37 = vpop.f32.mrf.mxu0 }
 0x1e4   : > { %2262 = vst.msk [vmem:[#allocation3 + $0x34] sm:$0xf] %vm2248_vm6, %v6451_v32  ;;  %2200 = vrot.lane.b32.xlu2 %v2127_v4, %s5353_s19  ;;  %v782_v32 = vld [vmem:[#allocation2 + $0xc0] sm:$0x1]  ;;  %v1746_v4 = vrot.slane %v1744_v52, 5  ;;  %v592_v38 = vadd.f32 %v5340_v22, %v591_v37 }
 0x1e5   : > { %v2374_v1 = vpop.permute.xlu0 %2373  ;;  %2455 = vst.msk [vmem:[#allocation3 + $0x34] sm:$0xf] %vm2441_vm7, %v6414_v36  ;;  %v783_v36 = vsel %vm5470_vm10, 0, %v782_v32  ;;  %v1134_v49 = vshrl.u32 %v874_v60, 16  ;;  %v1137_v10 = vshll.u32 %v874_v60, 16 }
 0x1e6   : > { %v2935_v18 = vpop.permute.xlu2 %2934  ;;  %784 = vst [vmem:[#allocation2 + $0xc0] sm:$0x1] %v783_v36  ;;  %v1340_v32 = vld [vmem:[#allocation2 + $0xa0] sm:$0xf]  ;;  %v2133_v36 = vrot.slane %v6557_v13, 5  ;;  %v1747_v35 = vor.u32 %v1746_v4, %v1743_v62  ;;  %v721_v29 = vmax.f32 %v592_v38, %v688_v14 }
 0x1e7   : > { %v6565_v11 = vrot.slane %v1134_v49, 7  ;;  %1372 = vst.msk [vmem:[#allocation3 + $0x6c] sm:$0xf] %vm722_vm2, %v1340_v32  ;;  %v2513_v62 = vld [vmem:[#allocation2 + $0xa8] sm:$0xf] }
 0x1e8   : > { %2393 = vrot.lane.b32.xlu1 %v2305_v5, %s5355_s25  ;;  %v838_v5 = vld [vmem:[#allocation2 + $0xc8] sm:$0x1]  ;;  %v2134_v21 = vsel %vm5458_vm8, %v5128_v56, %v2133_v36  ;;  %v1748_v42 = vrot.slane %v1747_v35, 4  ;;  %v2140_v56 = vrot.slane %v6596_v3, 5  ;;  %v2838_v14 = vshll.u32 %v2513_v62, 16 }
 0x1e9   : > { %v1139_v22 = vor.u32 %v1137_v10, %v6565_v11  ;;  %v1140_v60 = vrot.slane %v6565_v11, 4  ;;  %v2835_v11 = vshrl.u32 %v2513_v62, 16  ;;  %v1982_v32 = vld [vmem:[#allocation2 + $0xa4] sm:$0x1] }
 0x1ea   : > { %v2181_v2 = vpop.permute.xlu1 %2180  ;;  %v4666_v16 = vpop.f32.mrf.mxu2  ;;  %v1753_v37 = vsel %vm5477_vm13, %v1748_v42, %v6548_v63  ;;  %v2136_v23 = vrot.slane %v1982_v32, 5 }
 0x1eb   : > { %2954 = vrot.lane.b32.xlu0 %v2823_v40, %s5356_s26  ;;  %2263 = vst.msk [vmem:[#allocation3 + $0x38] sm:$0xf] %vm2248_vm6, %v2181_v2  ;;  %v6540_v28 = vadd.f32 %v6514_v55, %v4666_v16  ;;  %v4777_v44 = vpop.f32.mrf.mxu3  ;;  %v875_v16 = vpack.c.bf16 %v721_v29, %v721_v29  ;;  %v2135_v29 = vrot.slane %v2133_v36, 4 }
 0x1ec   : > { %2456 = vst.msk [vmem:[#allocation3 + $0x38] sm:$0xf] %vm2441_vm7, %v2374_v1  ;;  %v6544_v17 = vadd.f32 %v6523_v20, %v4777_v44  ;;  %2952 = vrot.lane.b32.xlu2 %v2809_v45, %s5356_s26  ;;  %v1757_v1 = vor.u32 %v1756_v9, %v6548_v63  ;;  %v2830_v44 = vshll.u32 %v2512_v61, 16 }
 0x1ed   : > { %v1843_v48 = vpop.permute.xlu0 %1842  ;;  %3017 = vst.msk [vmem:[#allocation3 + $0x38] sm:$0xf] %vm3002_vm9, %v2935_v18  ;;  %v2826_v18 = vrot.slane %v2824_v34, 4  ;;  %v1306_v58 = vld [vmem:[#allocation2 + $0xc0] sm:$0xf]  ;;  %v1762_v34 = vrot.slane %v1760_v51, 5  ;;  %v2137_v36 = vsel %vm5458_vm8, %v2135_v29, %v2136_v23 }
 0x1ee   : > { %v4857_v19 = vmax.f32 %v6540_v28, %v6544_v17  ;;  %1924 = vst.msk [vmem:[#allocation3 + $0x3c] sm:$0xf] %vm1908_vm4, %v1843_v48  ;;  %v6561_v59 = vpop.permute.xlu2 %2377  ;;  %v1758_v41 = vrot.slane %v1757_v1, 4  ;;  %v1307_v2 = vsel %vm5519_vm14, %v1139_v22, %v1306_v58  ;;  %v1142_v45 = vshrl.u32 %v875_v16, 16  ;;  %v2515_v58 = vld [vmem:[#allocation2 + $0xb0] sm:$0x1]  ;;  %vm7399_vm14 = vmmov %vm7397_vm1 }
 0x1ef   : > { %2264 = vst.msk [vmem:[#allocation3 + $0x3c] sm:$0xf] %vm2248_vm6, %v6486_v0  ;;  %v839_v0 = vsel %vm5449_vm5, 0, %v838_v5  ;;  %v2827_v48 = vor.u32 %v2826_v18, %v6502_v53  ;;  %v1145_v9 = vshll.u32 %v875_v16, 16  ;;  %v2832_v49 = vrot.slane %v2830_v44, 5 }
 0x1f0   : > { %1862 = vrot.lane.b32.xlu1 %v1739_v12, %s5354_s20  ;;  %840 = vst [vmem:[#allocation2 + $0xc8] sm:$0x1] %v839_v0  ;;  %v1763_v6 = vsel %vm5477_vm13, %v1758_v41, %v1762_v34  ;;  %v2844_v12 = vshll.u32 %v2514_v46, 16  ;;  %v1144_v4 = vrot.slane %v1142_v45, 7  ;;  %v1419_v0 = vld [vmem:[#allocation2 + $0xa8] sm:$0xf] }
 0x1f1   : > { %1308 = vst [vmem:[#allocation2 + $0xc0] sm:$0xf] %v1307_v2  ;;  %v2828_v1 = vrot.slane %v2827_v48, 4  ;;  %v1765_v61 = vshrl.u32 %v1419_v0, 16  ;;  %v1768_v22 = vshll.u32 %v1419_v0, 16  ;;  %v2840_v41 = vrot.slane %v2838_v14, 5 }
 0x1f2   : > { %v2933_v8 = vpop.permute.xlu1 %2932  ;;  %v4668_v57 = vpop.f32.mrf.mxu2  ;;  %v1147_v51 = vor.u32 %v1145_v9, %v1144_v4  ;;  %v1149_v38 = vrot.slane %v1144_v4, 4  ;;  %v2854_v16 = vshll.u32 %v2515_v58, 16  ;;  %v1342_v45 = vld [vmem:[#allocation2 + $0xac] sm:$0xf]  ;;  %v1985_v0 = vld [vmem:[#allocation2 + $0xb0] sm:$0x1] }
 0x1f3   : > { %2397 = vrot.lane.b32.xlu0 %v2307_v50, %s5355_s25  ;;  %3016 = vst.msk [vmem:[#allocation3 + $0x34] sm:$0xf] %vm3002_vm9, %v2933_v8  ;;  %v6573_v43 = vadd.f32 %v6514_v55, %v4668_v57  ;;  %v4779_v24 = vpop.f32.mrf.mxu3  ;;  %v1983_v50 = vld [vmem:[#allocation2 + $0xa8] sm:$0xe]  ;;  %v2846_v8 = vrot.slane %v2844_v12, 5  ;;  %v2850_v57 = vrot.slane %v2848_v47, 4  ;;  %v2833_v35 = vsel %vm5477_vm13, %v2828_v1, %v2832_v49 }
 0x1f4   : > { %v6577_v33 = vadd.f32 %v6523_v20, %v4779_v24  ;;  %2395 = vrot.lane.b32.xlu2 %v2306_v30, %s5355_s25  ;;  %v5129_v5 = vrot.slane %v1983_v50, 9  ;;  %v1148_v63 = vsel %vm5530_vm3, %v1140_v60, %v1147_v51  ;;  %v2837_v30 = vrot.slane %v2835_v11, 4  ;;  %v1420_v9 = vld [vmem:[#allocation2 + $0xac] sm:$0xf]  ;;  %1374 = vst.msk [vmem:[#allocation3 + $0x74] sm:$0xf] %vm722_vm2, %v1342_v45  ;;  %vm7400_vm3 = vmmov %vm7397_vm1 }
 0x1f5   : > { %v6579_v40 = vpop.permute.xlu0 %2184  ;;  %1309 = vst.msk [vmem:[#allocation2 + $0xc4] sm:$0xf] %vm722_vm2, %v1148_v63  ;;  %v2851_v2 = vor.u32 %v2850_v57, %v2846_v8  ;;  %v1767_v44 = vrot.slane %v1765_v61, 4  ;;  %v1770_v46 = vrot.slane %v1768_v22, 5  ;;  %v2856_v48 = vrot.slane %v2854_v16, 5 }
 0x1f6   : > { %v4858_v25 = vmax.f32 %v6573_v43, %v6577_v33  ;;  %v1847_v52 = vpop.permute.xlu2 %1846  ;;  %v2141_v34 = vsel %vm5458_vm8, %v5129_v5, %v2140_v56  ;;  %v2308_v60 = vld [vmem:[#allocation2 + $0xac] sm:$0xf]  ;;  %v1774_v62 = vshll.u32 %v1420_v9, 16  ;;  %v1778_v1 = vshrl.u32 %v1420_v9, 16  ;;  %v2516_v51 = vld [vmem:[#allocation2 + $0xb4] sm:$0xf] }
 0x1f7   : > { %1926 = vst.msk [vmem:[#allocation3 + $0x44] sm:$0xf] %vm1908_vm4, %v1847_v52  ;;  %v1310_v10 = vld [vmem:[#allocation2 + $0xc8] sm:$0x1]  ;;  %v2841_v52 = vor.u32 %v2840_v41, %v2837_v30  ;;  %v2852_v42 = vrot.slane %v2851_v2, 4  ;;  %v2859_v32 = vshrl.u32 %v2516_v51, 16 }
 0x1f8   : > { %2204 = vrot.lane.b32.xlu1 %v2134_v21, %s5353_s19  ;;  %v1311_v18 = vsel %vm5470_vm10, %v1149_v38, %v1310_v10  ;;  %v1776_v38 = vrot.slane %v1774_v62, 5  ;;  %v6648_v57 = vld [vmem:[#allocation2 + $0xb8] sm:$0xf]  ;;  %v1780_v63 = vrot.slane %v1778_v1, 4  ;;  %v2142_v22 = vrot.slane %v2140_v56, 4 }
 0x1f9   : > { %1312 = vst [vmem:[#allocation2 + $0xc8] sm:$0x1] %v1311_v18  ;;  %v2842_v12 = vrot.slane %v2841_v52, 4  ;;  %v2857_v47 = vsel %vm5477_vm13, %v2852_v42, %v2856_v48  ;;  %v2310_v18 = vld [vmem:[#allocation2 + $0xb8] sm:$0xf]  ;;  %v2143_v29 = vrot.slane %v1985_v0, 5 }
 0x1fa   : > { %v2376_v53 = vpop.permute.xlu1 %2375  ;;  %v1341_v23 = vld [vmem:[#allocation2 + $0xa8] sm:$0xf]  ;;  %v2861_v2 = vrot.slane %v2859_v32, 4  ;;  %v1987_v52 = vld [vmem:[#allocation2 + $0xb8] sm:$0xf] }
 0x1fb   : > { %1866 = vrot.lane.b32.xlu0 %v1763_v6, %s5354_s20  ;;  %2457 = vst.msk [vmem:[#allocation3 + $0x3c] sm:$0xf] %vm2441_vm7, %v2376_v53  ;;  %v1422_v6 = vld [vmem:[#allocation2 + $0xb4] sm:$0xf]  ;;  %v2144_v48 = vsel %vm5458_vm8, %v2142_v22, %v2143_v29  ;;  %v1424_v29 = vld [vmem:[#allocation2 + $0xbc] sm:$0x1] }
 0x1fc   : > { %1864 = vrot.lane.b32.xlu2 %v1753_v37, %s5354_s20  ;;  %v1792_v4 = vshll.u32 %v1422_v6, 16  ;;  %v2847_v37 = vsel %vm5477_vm13, %v2842_v12, %v2846_v8  ;;  %v2862_v8 = vshll.u32 %v2516_v51, 16  ;;  %1373 = vst.msk [vmem:[#allocation3 + $0x70] sm:$0xf] %vm722_vm2, %v1341_v23  ;;  %v2147_v12 = vrot.slane %v1987_v52, 5 }
 0x1fd   : > { %v2937_v54 = vpop.permute.xlu0 %2936  ;;  %v1986_v1 = vld [vmem:[#allocation2 + $0xb4] sm:$0xe]  ;;  %v2519_v51 = vld [vmem:[#allocation2 + $0xc0] sm:$0xf] }
 0x1fe   : > { %3018 = vst.msk [vmem:[#allocation3 + $0x3c] sm:$0xf] %vm3002_vm9, %v2937_v54  ;;  %v2189_v24 = vpop.permute.xlu2 %2188  ;;  %v1794_v5 = vrot.slane %v1792_v4, 5  ;;  %v2864_v16 = vrot.slane %v2862_v8, 5  ;;  %v5130_v0 = vrot.slane %v1986_v1, 9 }
 0x1ff   : > { %v2518_v8 = vld [vmem:[#allocation2 + $0xbc] sm:$0x1]  ;;  %v1343_v1 = vld [vmem:[#allocation2 + $0xb4] sm:$0xf] }
 0x200   : > { %2956 = vrot.lane.b32.xlu1 %v2833_v35, %s5356_s26  ;;  %v1421_v35 = vld [vmem:[#allocation2 + $0xb0] sm:$0x1]  ;;  %v2865_v45 = vor.u32 %v2864_v16, %v2861_v2  ;;  %v2878_v22 = vshll.u32 %v2518_v8, 16  ;;  %1375 = vst.msk [vmem:[#allocation3 + $0x78] sm:$0xf] %vm722_vm2, %v1343_v1 }
 0x201   : > { %v1784_v3 = vshll.u32 %v1421_v35, 16 }
 0x202   : > { %v1845_v21 = vpop.permute.xlu1 %1844  ;;  %v2866_v62 = vrot.slane %v2865_v45, 4 }
 0x203   : > { %2208 = vrot.lane.b32.xlu0 %v2141_v34, %s5353_s19  ;;  %1925 = vst.msk [vmem:[#allocation3 + $0x40] sm:$0xf] %vm1908_vm4, %v1845_v21  ;;  %v1798_v34 = vshll.u32 %v6648_v57, 16 }
 0x204   : > { %2265 = vst.msk [vmem:[#allocation3 + $0x40] sm:$0xf] %vm2248_vm6, %v6579_v40  ;;  %2206 = vrot.lane.b32.xlu2 %v2137_v36, %s5353_s19  ;;  %v1771_v40 = vor.u32 %v1770_v46, %v1767_v44  ;;  %v2309_v46 = vld [vmem:[#allocation2 + $0xb4] sm:$0xf]  ;;  %v2517_v36 = vld [vmem:[#allocation2 + $0xb8] sm:$0xf] }
 0x205   : > { %v2380_v13 = vpop.permute.xlu0 %2379  ;;  %2458 = vst.msk [vmem:[#allocation3 + $0x40] sm:$0xf] %vm2441_vm7, %v6561_v59  ;;  %v1789_v59 = vshrl.u32 %v1422_v6, 16  ;;  %v1786_v6 = vrot.slane %v1784_v3, 5  ;;  %v2880_v3 = vrot.slane %v2878_v22, 5 }
 0x206   : > { %v2941_v50 = vpop.permute.xlu2 %2940  ;;  %v1772_v49 = vrot.slane %v1771_v40, 4  ;;  %v1988_v40 = vld [vmem:[#allocation2 + $0xbc] sm:$0x1]  ;;  %v3378_v22 = vld [vmem:[#allocation2 + $0x34] sm:$0xf] }
 0x207   : > { %v1791_v54 = vrot.slane %v1789_v59, 4 }
 0x208   : > { %2399 = vrot.lane.b32.xlu1 %v2308_v60, %s5355_s25  ;;  %v1777_v14 = vsel %vm5477_vm13, %v1772_v49, %v1776_v38  ;;  %v2868_v60 = vshll.u32 %v2517_v36, 16  ;;  %v2150_v49 = vrot.slane %v1988_v40, 5 }
 0x209   : > { %v1795_v58 = vor.u32 %v1794_v5, %v1791_v54 }
 0x20a   : > { %v2187_v53 = vpop.permute.xlu1 %2186 }
 0x20b   : > { %2960 = vrot.lane.b32.xlu0 %v2857_v47, %s5356_s26  ;;  %2266 = vst.msk [vmem:[#allocation3 + $0x44] sm:$0xf] %vm2248_vm6, %v2187_v53  ;;  %v1796_v56 = vrot.slane %v1795_v58, 4  ;;  %v2872_v53 = vshrl.u32 %v2517_v36, 16  ;;  %v3377_v36 = vld [vmem:[#allocation2 + $0x30] sm:$0xf] }
 0x20c   : > { %2459 = vst.msk [vmem:[#allocation3 + $0x44] sm:$0xf] %vm2441_vm7, %v2380_v13  ;;  %2958 = vrot.lane.b32.xlu2 %v2847_v37, %s5356_s26  ;;  %v1781_v13 = vor.u32 %v1780_v63, %v1776_v38  ;;  %v2149_v37 = vrot.slane %v2147_v12, 4  ;;  %v1802_v38 = vshrl.u32 %v6648_v57, 16  ;;  %v2883_v63 = vshrl.u32 %v2519_v51, 16 }
 0x20d   : > { %v1849_v10 = vpop.permute.xlu0 %1848  ;;  %3020 = vst.msk [vmem:[#allocation3 + $0x44] sm:$0xf] %vm3002_vm9, %v2941_v50 }
 0x20e   : > { %1927 = vst.msk [vmem:[#allocation3 + $0x48] sm:$0xf] %vm1908_vm4, %v1849_v10  ;;  %v6643_v11 = vpop.permute.xlu2 %2383  ;;  %v1782_v9 = vrot.slane %v1781_v13, 4  ;;  %v2870_v10 = vrot.slane %v2868_v60, 5  ;;  %v2151_v32 = vsel %vm5458_vm8, %v2149_v37, %v2150_v49  ;;  %v1804_v35 = vrot.slane %v1802_v38, 4 }
 0x20f   : > { %2267 = vst.msk [vmem:[#allocation3 + $0x48] sm:$0xf] %vm2248_vm6, %v2189_v24  ;;  %v2885_v23 = vrot.slane %v2883_v63, 4  ;;  %v1808_v13 = vshll.u32 %v1424_v29, 16  ;;  %v2312_v63 = vld [vmem:[#allocation2 + $0xc4] sm:$0xf] }
 0x210   : > { %1868 = vrot.lane.b32.xlu1 %v1777_v14, %s5354_s20  ;;  %v1787_v4 = vsel %vm5477_vm13, %v1782_v9, %v1786_v6  ;;  %v2871_v5 = vsel %vm5477_vm13, %v2866_v62, %v2870_v10  ;;  %v2874_v14 = vrot.slane %v2872_v53, 4 }
 0x212   : > { %v2939_v61 = vpop.permute.xlu1 %2938  ;;  %v4671_v24 = vpop.f32.mrf.mxu2  ;;  %v2875_v57 = vor.u32 %v2874_v14, %v2870_v10 }
 0x213   : > { %2403 = vrot.lane.b32.xlu0 %v2310_v18, %s5355_s25  ;;  %3019 = vst.msk [vmem:[#allocation3 + $0x40] sm:$0xf] %vm3002_vm9, %v2939_v61  ;;  %v6655_v30 = vadd.f32 %v6514_v55, %v4671_v24  ;;  %v4782_v41 = vpop.f32.mrf.mxu3  ;;  %v2886_v18 = vshll.u32 %v2519_v51, 16  ;;  %v2148_v24 = vsel %vm5458_vm8, %v5130_v0, %v2147_v12 }
 0x214   : > { %v6659_v21 = vadd.f32 %v6523_v20, %v4782_v41  ;;  %2401 = vrot.lane.b32.xlu2 %v2309_v46, %s5355_s25  ;;  %v6667_v20 = vrot.slane %v1798_v34, 5  ;;  %v3573_v34 = vld [vmem:[#allocation2 + $0x34] sm:$0xf]  ;;  %v2311_v46 = vld [vmem:[#allocation2 + $0xc0] sm:$0xf] }
 0x215   : > { %v2191_v44 = vpop.permute.xlu0 %2190  ;;  %v2888_v41 = vrot.slane %v2886_v18, 5 }
 0x216   : > { %v4859_v55 = vmax.f32 %v6655_v30, %v6659_v21  ;;  %v1853_v42 = vpop.permute.xlu2 %1852  ;;  %v1801_v50 = vsel %vm5477_vm13, %v1796_v56, %v6667_v20  ;;  %v1805_v2 = vor.u32 %v1804_v35, %v6667_v20  ;;  %v2520_v56 = vld [vmem:[#allocation2 + $0xc4] sm:$0xf]  ;;  %v1810_v20 = vrot.slane %v1808_v13, 5  ;;  %v3575_v13 = vld [vmem:[#allocation2 + $0x3c] sm:$0xf] }
 0x217   : > { %1929 = vst.msk [vmem:[#allocation3 + $0x50] sm:$0xf] %vm1908_vm4, %v1853_v42  ;;  %v2889_v52 = vor.u32 %v2888_v41, %v2885_v23  ;;  %v3672_v42 = vshll.u32 %v3573_v34, 16  ;;  %v2892_v6 = vshll.u32 %v2520_v56, 16  ;;  %v2896_v37 = vshrl.u32 %v2520_v56, 16 }
 0x218   : > { %2210 = vrot.lane.b32.xlu1 %v2144_v48, %s5353_s19  ;;  %v3676_v48 = vshrl.u32 %v3573_v34, 16  ;;  %v1806_v9 = vrot.slane %v1805_v2, 4  ;;  %v4134_v2 = vld [vmem:[#allocation2 + $0x34] sm:$0xf] }
 0x219   : > { %v3674_v62 = vrot.slane %v3672_v42, 5  ;;  %v2894_v10 = vrot.slane %v2892_v6, 5  ;;  %v4239_v42 = vrot.slane %v4134_v2, 5  ;;  %v3577_v6 = vld [vmem:[#allocation2 + $0x44] sm:$0x1] }
 0x21a   : > { %v2382_v47 = vpop.permute.xlu1 %2381  ;;  %v1811_v49 = vsel %vm5477_vm13, %v1806_v9, %v1810_v20  ;;  %v4138_v2 = vld [vmem:[#allocation2 + $0x44] sm:$0x1] }
 0x21b   : > { %1872 = vrot.lane.b32.xlu0 %v1801_v50, %s5354_s20  ;;  %2460 = vst.msk [vmem:[#allocation3 + $0x48] sm:$0xf] %vm2441_vm7, %v2382_v47  ;;  %v2890_v47 = vrot.slane %v2889_v52, 4 }
 0x21c   : > { %1870 = vrot.lane.b32.xlu2 %v1787_v4, %s5354_s20  ;;  %v3574_v4 = vld [vmem:[#allocation2 + $0x38] sm:$0x1] }
 0x21d   : > { %v2943_v59 = vpop.permute.xlu0 %2942  ;;  %v3682_v0 = vshll.u32 %v3574_v4, 16  ;;  %v3379_v4 = vld [vmem:[#allocation2 + $0x3c] sm:$0xf] }
 0x21e   : > { %3021 = vst.msk [vmem:[#allocation3 + $0x48] sm:$0xf] %vm3002_vm9, %v2943_v59  ;;  %v2195_v54 = vpop.permute.xlu2 %2194  ;;  %v3678_v59 = vrot.slane %v3676_v48, 4  ;;  %v3687_v48 = vshrl.u32 %v3575_v13, 16 }
 0x220   : > { %2962 = vrot.lane.b32.xlu1 %v2871_v5, %s5356_s26  ;;  %v2895_v5 = vsel %vm5477_vm13, %v2890_v47, %v2894_v10  ;;  %v3679_v14 = vor.u32 %v3678_v59, %v3674_v62  ;;  %v4133_v47 = vld [vmem:[#allocation2 + $0x30] sm:$0xe] }
 0x221   : > { %v5149_v1 = vrot.slane %v4133_v47, 9 }
 0x222   : > { %v1851_v58 = vpop.permute.xlu1 %1850  ;;  %v3680_v35 = vrot.slane %v3679_v14, 4  ;;  %v1344_v14 = vld [vmem:[#allocation2 + $0xb8] sm:$0xf] }
 0x223   : > { %2214 = vrot.lane.b32.xlu0 %v2151_v32, %s5353_s19  ;;  %1928 = vst.msk [vmem:[#allocation3 + $0x4c] sm:$0xf] %vm1908_vm4, %v1851_v58  ;;  %v2898_v32 = vrot.slane %v2896_v37, 4  ;;  %v2521_v58 = vld [vmem:[#allocation2 + $0xc8] sm:$0x1] }
 0x224   : > { %2268 = vst.msk [vmem:[#allocation3 + $0x4c] sm:$0xf] %vm2248_vm6, %v2191_v44  ;;  %2212 = vrot.lane.b32.xlu2 %v2148_v24, %s5353_s19  ;;  %v2876_v44 = vrot.slane %v2875_v57, 4  ;;  %v3684_v57 = vrot.slane %v3682_v0, 5  ;;  %v2902_v23 = vshll.u32 %v2521_v58, 16 }
 0x225   : > { %v2386_v61 = vpop.permute.xlu0 %2385  ;;  %2461 = vst.msk [vmem:[#allocation3 + $0x4c] sm:$0xf] %vm2441_vm7, %v6643_v11  ;;  %v3572_v11 = vld [vmem:[#allocation2 + $0x30] sm:$0xf]  ;;  %v2899_v29 = vor.u32 %v2898_v32, %v2894_v10  ;;  %v3706_v10 = vshll.u32 %v3577_v6, 16 }
 0x226   : > { %v2947_v16 = vpop.permute.xlu2 %2946  ;;  %v2881_v60 = vsel %vm5477_vm13, %v2876_v44, %v2880_v3  ;;  %v3663_v40 = vshrl.u32 %v3572_v11, 16  ;;  %v3666_v12 = vshll.u32 %v3572_v11, 16  ;;  %v3685_v34 = vsel %vm5477_vm13, %v3680_v35, %v3684_v57  ;;  %v3579_v32 = vld [vmem:[#allocation2 + $0x4c] sm:$0xf]  ;;  %1376 = vst.msk [vmem:[#allocation3 + $0x7c] sm:$0xf] %vm722_vm2, %v1344_v14  ;;  %vm7398_vm2 = vmmov %vm7397_vm1 }
 0x227   : > { %v2900_v3 = vrot.slane %v2899_v29, 4  ;;  %v2904_v56 = vrot.slane %v2902_v23, 5  ;;  %v3690_v11 = vshll.u32 %v3575_v13, 16  ;;  %v4137_v35 = vld [vmem:[#allocation2 + $0x40] sm:$0xf]  ;;  %v3720_v57 = vshll.u32 %v3579_v32, 16 }
 0x228   : > { %2405 = vrot.lane.b32.xlu1 %v2311_v46, %s5355_s25  ;;  %v3665_v51 = vrot.slane %v3663_v40, 4  ;;  %v3668_v38 = vrot.slane %v3666_v12, 5  ;;  %v4241_v40 = vrot.slane %v4239_v42, 4  ;;  %v4246_v23 = vrot.slane %v4137_v35, 5  ;;  %v3580_v13 = vld [vmem:[#allocation2 + $0x50] sm:$0x1] }
 0x229   : > { %v3692_v59 = vrot.slane %v3690_v11, 5  ;;  %v3381_v11 = vld [vmem:[#allocation2 + $0x48] sm:$0xf]  ;;  %v3583_v35 = vld [vmem:[#allocation2 + $0x5c] sm:$0x1] }
 0x22a   : > { %v2193_v45 = vpop.permute.xlu1 %2192  ;;  %v3669_v18 = vor.u32 %v3668_v38, %v3665_v51 }
 0x22b   : > { %3445 = vrot.lane.b32.xlu0 %v3377_v36, %s5358_s28  ;;  %2269 = vst.msk [vmem:[#allocation3 + $0x50] sm:$0xf] %vm2248_vm6, %v2193_v45  ;;  %v4135_v45 = vld [vmem:[#allocation2 + $0x38] sm:$0x1] }
 0x22c   : > { %2462 = vst.msk [vmem:[#allocation3 + $0x50] sm:$0xf] %vm2441_vm7, %v2386_v61  ;;  %2964 = vrot.lane.b32.xlu2 %v2881_v60, %s5356_s26  ;;  %v3576_v61 = vld [vmem:[#allocation2 + $0x40] sm:$0xf]  ;;  %v3670_v41 = vrot.slane %v3669_v18, 4  ;;  %v2905_v60 = vsel %vm5477_vm13, %v2900_v3, %v2904_v56  ;;  %v4242_v12 = vrot.slane %v4135_v45, 5 }
 0x22d   : > { %v1855_v50 = vpop.permute.xlu0 %1854  ;;  %3023 = vst.msk [vmem:[#allocation3 + $0x50] sm:$0xf] %vm3002_vm9, %v2947_v16  ;;  %v3696_v16 = vshll.u32 %v3576_v61, 16  ;;  %v3700_v46 = vshrl.u32 %v3576_v61, 16  ;;  %v3578_v61 = vld [vmem:[#allocation2 + $0x48] sm:$0xf] }
 0x22e   : > { %1930 = vst.msk [vmem:[#allocation3 + $0x54] sm:$0xf] %vm1908_vm4, %v1855_v50  ;;  %v6705_v53 = vpop.permute.xlu2 %2389  ;;  %v3675_v52 = vsel %vm5477_vm13, %v3670_v41, %v3674_v62  ;;  %v3689_v62 = vrot.slane %v3687_v48, 4  ;;  %v4243_v38 = vsel %vm5458_vm8, %v4241_v40, %v4242_v12  ;;  %v3711_v41 = vshrl.u32 %v3578_v61, 16  ;;  %v3380_v3 = vld [vmem:[#allocation2 + $0x40] sm:$0xf] }
 0x22f   : > { %2270 = vst.msk [vmem:[#allocation3 + $0x54] sm:$0xf] %vm2248_vm6, %v2195_v54  ;;  %v3698_v9 = vrot.slane %v3696_v16, 5  ;;  %v3702_v20 = vrot.slane %v3700_v46, 4  ;;  %v3722_v16 = vrot.slane %v3720_v57, 5  ;;  %v4248_v56 = vrot.slane %v4246_v23, 4 }
 0x230   : > { %1874 = vrot.lane.b32.xlu1 %v1811_v49, %s5354_s20 }
 0x231   : > { %v3703_v49 = vor.u32 %v3702_v20, %v3698_v9 }
 0x232   : > { %v2945_v54 = vpop.permute.xlu1 %2944 }
 0x233   : > { %2966 = vrot.lane.b32.xlu0 %v2895_v5, %s5356_s26  ;;  %3022 = vst.msk [vmem:[#allocation3 + $0x4c] sm:$0xf] %vm3002_vm9, %v2945_v54  ;;  %v3693_v5 = vor.u32 %v3692_v59, %v3689_v62  ;;  %v3704_v0 = vrot.slane %v3703_v49, 4  ;;  %v3708_v54 = vrot.slane %v3706_v10, 5  ;;  %v3582_v62 = vld [vmem:[#allocation2 + $0x58] sm:$0xf] }
 0x234   : > { %2407 = vrot.lane.b32.xlu2 %v2312_v63, %s5355_s25 }
 0x235   : > { %v2197_v8 = vpop.permute.xlu0 %2196  ;;  %v3694_v18 = vrot.slane %v3693_v5, 4  ;;  %v3709_v58 = vsel %vm5477_vm13, %v3704_v0, %v3708_v54 }
 0x236   : > { %v1859_v24 = vpop.permute.xlu2 %1858 }
 0x237   : > { %1932 = vst.msk [vmem:[#allocation3 + $0x5c] sm:$0xf] %vm1908_vm4, %v1859_v24  ;;  %v3699_v29 = vsel %vm5477_vm13, %v3694_v18, %v3698_v9  ;;  %v3730_v9 = vshll.u32 %v3580_v13, 16 }
 0x238   : > { %3447 = vrot.lane.b32.xlu1 %v3378_v22, %s5358_s28 }
 0x239   : > { %v3732_v47 = vrot.slane %v3730_v9, 5 }
 0x23a   : > { %v2388_v44 = vpop.permute.xlu1 %2387 }
 0x23b   : > { %4008 = vrot.lane.b32.xlu0 %v3685_v34, %s5359_s29  ;;  %2463 = vst.msk [vmem:[#allocation3 + $0x54] sm:$0xf] %vm2441_vm7, %v2388_v44  ;;  %v3714_v34 = vshll.u32 %v3578_v61, 16 }
 0x23c   : > { %4006 = vrot.lane.b32.xlu2 %v3675_v52, %s5359_s29  ;;  %v4136_v52 = vld [vmem:[#allocation2 + $0x3c] sm:$0xe] }
 0x23d   : > { %v2949_v36 = vpop.permute.xlu0 %2948  ;;  %v3716_v48 = vrot.slane %v3714_v34, 5  ;;  %v5150_v6 = vrot.slane %v4136_v52, 9 }
 0x23e   : > { %3024 = vst.msk [vmem:[#allocation3 + $0x54] sm:$0xf] %vm3002_vm9, %v2949_v36  ;;  %v2201_v50 = vpop.permute.xlu2 %2200  ;;  %v4249_v36 = vrot.slane %v4138_v2, 5  ;;  %v3754_v2 = vshll.u32 %v3583_v35, 16 }
 0x240   : > { %2968 = vrot.lane.b32.xlu1 %v2905_v60, %s5356_s26  ;;  %v4250_v60 = vsel %vm5458_vm8, %v4248_v56, %v4249_v36  ;;  %v3756_v52 = vrot.slane %v3754_v2, 5  ;;  %v3386_v2 = vld [vmem:[#allocation2 + $0x64] sm:$0xf] }
 0x242   : > { %v1857_v37 = vpop.permute.xlu1 %1856 }
 0x243   : > { %3449 = vrot.lane.b32.xlu0 %v3379_v4, %s5358_s28  ;;  %1931 = vst.msk [vmem:[#allocation3 + $0x58] sm:$0xf] %vm1908_vm4, %v1857_v37  ;;  %v4247_v4 = vsel %vm5458_vm8, %v5150_v6, %v4246_v23  ;;  %v4140_v37 = vld [vmem:[#allocation2 + $0x4c] sm:$0xf] }
 0x244   : > { %2271 = vst.msk [vmem:[#allocation3 + $0x58] sm:$0xf] %vm2248_vm6, %v2197_v8  ;;  %4345 = vrot.lane.b32.xlu2 %v4243_v38, %s5360_s11  ;;  %v4240_v8 = vsel %vm5458_vm8, %v5149_v1, %v4239_v42  ;;  %v3713_v42 = vrot.slane %v3711_v41, 4  ;;  %v3744_v1 = vshll.u32 %v3582_v62, 16  ;;  %v3581_v38 = vld [vmem:[#allocation2 + $0x54] sm:$0xf] }
 0x245   : > { %v2392_v51 = vpop.permute.xlu0 %2391  ;;  %2464 = vst.msk [vmem:[#allocation3 + $0x58] sm:$0xf] %vm2441_vm7, %v6705_v53  ;;  %v3724_v53 = vshrl.u32 %v3579_v32, 16  ;;  %v4253_v54 = vrot.slane %v4140_v37, 5  ;;  %v3735_v32 = vshrl.u32 %v3581_v38, 16 }
 0x246   : > { %v2953_v63 = vpop.permute.xlu2 %2952  ;;  %v3717_v40 = vor.u32 %v3716_v48, %v3713_v42  ;;  %v3746_v18 = vrot.slane %v3744_v1, 5  ;;  %v3383_v41 = vld [vmem:[#allocation2 + $0x54] sm:$0xf]  ;;  %v3584_v42 = vld [vmem:[#allocation2 + $0x60] sm:$0xf] }
 0x247   : > { %v3726_v46 = vrot.slane %v3724_v53, 4  ;;  %v3382_v53 = vld [vmem:[#allocation2 + $0x4c] sm:$0xf]  ;;  %v4255_v61 = vrot.slane %v4253_v54, 4  ;;  %v3759_v6 = vshrl.u32 %v3584_v42, 16 }
 0x248   : > { %4343 = vrot.lane.b32.xlu1 %v4240_v8, %s5360_s11  ;;  %v3718_v49 = vrot.slane %v3717_v40, 4  ;;  %v4141_v8 = vld [vmem:[#allocation2 + $0x50] sm:$0x1]  ;;  %v3384_v1 = vld [vmem:[#allocation2 + $0x58] sm:$0xf] }
 0x249   : > { %v3727_v45 = vor.u32 %v3726_v46, %v3722_v16 }
 0x24a   : > { %v2199_v24 = vpop.permute.xlu1 %2198  ;;  %v3723_v0 = vsel %vm5477_vm13, %v3718_v49, %v3722_v16  ;;  %v3761_v49 = vrot.slane %v3759_v6, 4 }
 0x24b   : > { %4012 = vrot.lane.b32.xlu0 %v3709_v58, %s5359_s29  ;;  %2272 = vst.msk [vmem:[#allocation3 + $0x5c] sm:$0xf] %vm2248_vm6, %v2199_v24  ;;  %v3728_v12 = vrot.slane %v3727_v45, 4  ;;  %v4256_v24 = vrot.slane %v4141_v8, 5 }
 0x24c   : > { %2465 = vst.msk [vmem:[#allocation3 + $0x5c] sm:$0xf] %vm2441_vm7, %v2392_v51  ;;  %4010 = vrot.lane.b32.xlu2 %v3699_v29, %s5359_s29  ;;  %v3748_v51 = vshrl.u32 %v3582_v62, 16  ;;  %v3737_v29 = vrot.slane %v3735_v32, 4 }
 0x24d   : > { %v1861_v22 = vpop.permute.xlu0 %1860  ;;  %3026 = vst.msk [vmem:[#allocation3 + $0x5c] sm:$0xf] %vm3002_vm9, %v2953_v63  ;;  %v3733_v10 = vsel %vm5477_vm13, %v3728_v12, %v3732_v47  ;;  %v3738_v63 = vshll.u32 %v3581_v38, 16  ;;  %v4144_v47 = vld [vmem:[#allocation2 + $0x5c] sm:$0x1] }
 0x24e   : > { %1933 = vst.msk [vmem:[#allocation3 + $0x60] sm:$0xf] %vm1908_vm4, %v1861_v22  ;;  %v6752_v44 = vpop.permute.xlu2 %2395  ;;  %v3750_v58 = vrot.slane %v3748_v51, 4  ;;  %v4139_v22 = vld [vmem:[#allocation2 + $0x48] sm:$0xe]  ;;  %v4263_v38 = vrot.slane %v4144_v47, 5 }
 0x24f   : > { %2273 = vst.msk [vmem:[#allocation3 + $0x60] sm:$0xf] %vm2248_vm6, %v2201_v50  ;;  %v3740_v23 = vrot.slane %v3738_v63, 5  ;;  %v5151_v46 = vrot.slane %v4139_v22, 9 }
 0x250   : > { %3451 = vrot.lane.b32.xlu1 %v3380_v3, %s5358_s28  ;;  %v3751_v34 = vor.u32 %v3750_v58, %v3746_v18  ;;  %v4257_v3 = vsel %vm5458_vm8, %v4255_v61, %v4256_v24  ;;  %v4146_v58 = vld [vmem:[#allocation2 + $0x64] sm:$0xf] }
 0x251   : > { %v3741_v56 = vor.u32 %v3740_v23, %v3737_v29  ;;  %v4267_v22 = vrot.slane %v4146_v58, 5  ;;  %v4147_v23 = vld [vmem:[#allocation2 + $0x68] sm:$0x1] }
 0x252   : > { %v2951_v20 = vpop.permute.xlu1 %2950  ;;  %v3752_v36 = vrot.slane %v3751_v34, 4 }
 0x253   : > { %3453 = vrot.lane.b32.xlu0 %v3381_v11, %s5358_s28  ;;  %3025 = vst.msk [vmem:[#allocation3 + $0x58] sm:$0xf] %vm3002_vm9, %v2951_v20  ;;  %v4254_v11 = vsel %vm5458_vm8, %v5151_v46, %v4253_v54  ;;  %v3742_v45 = vrot.slane %v3741_v56, 4  ;;  %v4143_v20 = vld [vmem:[#allocation2 + $0x58] sm:$0xf]  ;;  %v4269_v46 = vrot.slane %v4267_v22, 4 }
 0x254   : > { %4349 = vrot.lane.b32.xlu2 %v4250_v60, %s5360_s11  ;;  %v3757_v9 = vsel %vm5477_vm13, %v3752_v36, %v3756_v52  ;;  %v3055_v60 = vld [vmem:[#allocation2 + $0x5c] sm:$0x1]  ;;  %v4260_v62 = vrot.slane %v4143_v20, 5  ;;  %v3588_v56 = vld [vmem:[#allocation2 + $0x70] sm:$0xf] }
 0x255   : > { %v2203_v50 = vpop.permute.xlu0 %2202  ;;  %v3747_v12 = vsel %vm5477_vm13, %v3742_v45, %v3746_v18  ;;  %v3385_v52 = vld [vmem:[#allocation2 + $0x60] sm:$0xf]  ;;  %v3792_v20 = vshll.u32 %v3588_v56, 16  ;;  %v3796_v6 = vshrl.u32 %v3588_v56, 16 }
 0x256   : > { %v1865_v59 = vpop.permute.xlu2 %1864  ;;  %v4262_v51 = vrot.slane %v4260_v62, 4 }
 0x257   : > { %1935 = vst.msk [vmem:[#allocation3 + $0x68] sm:$0xf] %vm1908_vm4, %v1865_v59  ;;  %v3177_v59 = vrot.slane %v3175_v39, 4 }
 0x258   : > { %4347 = vrot.lane.b32.xlu1 %v4247_v4, %s5360_s11  ;;  %v3178_v4 = vrot.slane %v3055_v60, 5  ;;  %v4264_v8 = vsel %vm5458_vm8, %v4262_v51, %v4263_v38  ;;  %v3589_v51 = vld [vmem:[#allocation2 + $0x74] sm:$0x1] }
 0x25a   : > { %v2394_v5 = vpop.permute.xlu1 %2393  ;;  %v3179_v26 = vsel %vm5458_vm8, %v3177_v59, %v3178_v4 }
 0x25b   : > { %4016 = vrot.lane.b32.xlu0 %v3733_v10, %s5359_s29  ;;  %2466 = vst.msk [vmem:[#allocation3 + $0x60] sm:$0xf] %vm2441_vm7, %v2394_v5  ;;  %v4142_v5 = vld [vmem:[#allocation2 + $0x54] sm:$0xe] }
 0x25c   : > { %4014 = vrot.lane.b32.xlu2 %v3723_v0, %s5359_s29  ;;  %v5152_v54 = vrot.slane %v4142_v5, 9 }
 0x25d   : > { %v2955_v14 = vpop.permute.xlu0 %2954 }
 0x25e   : > { %3027 = vst.msk [vmem:[#allocation3 + $0x60] sm:$0xf] %vm3002_vm9, %v2955_v14  ;;  %v2207_v57 = vpop.permute.xlu2 %2206  ;;  %v3585_v14 = vld [vmem:[#allocation2 + $0x64] sm:$0xf] }
 0x25f   : > { %v3768_v32 = vshll.u32 %v3585_v14, 16  ;;  %v3772_v61 = vshrl.u32 %v3585_v14, 16 }
 0x260   : > { %3455 = vrot.lane.b32.xlu1 %v3382_v53, %s5358_s28 }
 0x261   : > { %v3770_v53 = vrot.slane %v3768_v32, 5  ;;  %v3387_v32 = vld [vmem:[#allocation2 + $0x6c] sm:$0xf] }
 0x262   : > { %v1863_v16 = vpop.permute.xlu1 %1862 }
 0x263   : > { %3457 = vrot.lane.b32.xlu0 %v3383_v41, %s5358_s28  ;;  %1934 = vst.msk [vmem:[#allocation3 + $0x64] sm:$0xf] %vm1908_vm4, %v1863_v16  ;;  %v3774_v41 = vrot.slane %v3772_v61, 4  ;;  %v3586_v16 = vld [vmem:[#allocation2 + $0x68] sm:$0x1] }
 0x264   : > { %2274 = vst.msk [vmem:[#allocation3 + $0x64] sm:$0xf] %vm2248_vm6, %v2203_v50  ;;  %4353 = vrot.lane.b32.xlu2 %v4257_v3, %s5360_s11  ;;  %v3762_v50 = vshll.u32 %v3584_v42, 16  ;;  %v4145_v3 = vld [vmem:[#allocation2 + $0x60] sm:$0xe] }
 0x265   : > { %v2398_v13 = vpop.permute.xlu0 %2397  ;;  %2467 = vst.msk [vmem:[#allocation3 + $0x64] sm:$0xf] %vm2441_vm7, %v6752_v44  ;;  %v3775_v42 = vor.u32 %v3774_v41, %v3770_v53  ;;  %v4149_v41 = vld [vmem:[#allocation2 + $0x70] sm:$0xf] }
 0x266   : > { %v2959_v48 = vpop.permute.xlu2 %2958  ;;  %v3764_v10 = vrot.slane %v3762_v50, 5  ;;  %v3587_v50 = vld [vmem:[#allocation2 + $0x6c] sm:$0xf] }
 0x267   : > { %v3776_v60 = vrot.slane %v3775_v42, 4  ;;  %v3783_v59 = vshrl.u32 %v3587_v50, 16  ;;  %v3786_v4 = vshll.u32 %v3587_v50, 16 }
 0x268   : > { %4351 = vrot.lane.b32.xlu1 %v4254_v11, %s5360_s11  ;;  %v3765_v39 = vor.u32 %v3764_v10, %v3761_v49  ;;  %v5153_v11 = vrot.slane %v4145_v3, 9  ;;  %v3058_v49 = vld [vmem:[#allocation2 + $0x68] sm:$0x1]  ;;  %v3794_v10 = vrot.slane %v3792_v20, 5  ;;  %v4274_v3 = vrot.slane %v4149_v41, 5 }
 0x26a   : > { %v2205_v44 = vpop.permute.xlu1 %2204  ;;  %v3766_v18 = vrot.slane %v3765_v39, 4  ;;  %v4268_v47 = vsel %vm5458_vm8, %v5153_v11, %v4267_v22  ;;  %v3056_v39 = vld [vmem:[#allocation2 + $0x60] sm:$0xe]  ;;  %v4276_v11 = vrot.slane %v4274_v3, 4 }
 0x26b   : > { %4020 = vrot.lane.b32.xlu0 %v3757_v9, %s5359_s29  ;;  %2275 = vst.msk [vmem:[#allocation3 + $0x68] sm:$0xf] %vm2248_vm6, %v2205_v44  ;;  %v3057_v9 = vld [vmem:[#allocation2 + $0x64] sm:$0xf] }
 0x26c   : > { %2468 = vst.msk [vmem:[#allocation3 + $0x68] sm:$0xf] %vm2441_vm7, %v2398_v13  ;;  %4018 = vrot.lane.b32.xlu2 %v3747_v12, %s5359_s29  ;;  %v3771_v24 = vsel %vm5477_vm13, %v3766_v18, %v3770_v53  ;;  %v4270_v13 = vrot.slane %v4147_v23, 5  ;;  %v5138_v18 = vrot.slane %v3056_v39, 9  ;;  %v4151_v39 = vld [vmem:[#allocation2 + $0x78] sm:$0xe] }
 0x26d   : > { %v1867_v40 = vpop.permute.xlu0 %1866  ;;  %3029 = vst.msk [vmem:[#allocation3 + $0x68] sm:$0xf] %vm3002_vm9, %v2959_v48  ;;  %v3778_v48 = vshll.u32 %v3586_v16, 16  ;;  %v3060_v16 = vld [vmem:[#allocation2 + $0x70] sm:$0xf] }
 0x26e   : > { %1936 = vst.msk [vmem:[#allocation3 + $0x6c] sm:$0xf] %vm1908_vm4, %v1867_v40  ;;  %v6797_v37 = vpop.permute.xlu2 %2401  ;;  %v4271_v45 = vsel %vm5458_vm8, %v4269_v46, %v4270_v13 }
 0x26f   : > { %2276 = vst.msk [vmem:[#allocation3 + $0x6c] sm:$0xf] %vm2248_vm6, %v2207_v57  ;;  %v4261_v57 = vsel %vm5458_vm8, %v5152_v54, %v4260_v62  ;;  %v3780_v40 = vrot.slane %v3778_v48, 5  ;;  %v3182_v62 = vrot.slane %v3057_v9, 5  ;;  %v3788_v54 = vrot.slane %v3786_v4, 5 }
 0x270   : > { %3459 = vrot.lane.b32.xlu1 %v3384_v1, %s5358_s28  ;;  %v3798_v1 = vrot.slane %v3796_v6, 4  ;;  %v3388_v48 = vld [vmem:[#allocation2 + $0x70] sm:$0xf]  ;;  %v4148_v9 = vld [vmem:[#allocation2 + $0x6c] sm:$0xe] }
 0x271   : > { %v3781_v5 = vsel %vm5477_vm13, %v3776_v60, %v3780_v40  ;;  %v3184_v14 = vrot.slane %v3182_v62, 4  ;;  %v3183_v22 = vsel %vm5458_vm8, %v5138_v18, %v3182_v62  ;;  %v3591_v6 = vld [vmem:[#allocation2 + $0x7c] sm:$0xf]  ;;  %v3590_v62 = vld [vmem:[#allocation2 + $0x78] sm:$0xf] }
 0x272   : > { %v2957_v0 = vpop.permute.xlu1 %2956  ;;  %v3389_v18 = vld [vmem:[#allocation2 + $0x78] sm:$0xf] }
 0x273   : > { %3269 = vrot.lane.b32.xlu0 %v3179_v26, %s5357_s27  ;;  %3028 = vst.msk [vmem:[#allocation3 + $0x64] sm:$0xf] %vm3002_vm9, %v2957_v0  ;;  %v3185_v26 = vrot.slane %v3058_v49, 5  ;;  %v3785_v0 = vrot.slane %v3783_v59, 4  ;;  %v3807_v49 = vshrl.u32 %v3590_v62, 16 }
 0x274   : > { %4357 = vrot.lane.b32.xlu2 %v4264_v8, %s5360_s11 }
 0x275   : > { %v2209_v63 = vpop.permute.xlu0 %2208 }
 0x276   : > { %v1871_v35 = vpop.permute.xlu2 %1870 }
 0x277   : > { %1938 = vst.msk [vmem:[#allocation3 + $0x74] sm:$0xf] %vm1908_vm4, %v1871_v35  ;;  %v3186_v35 = vsel %vm5458_vm8, %v3184_v14, %v3185_v26  ;;  %v3592_v14 = vld [vmem:[#allocation2 + $0x80] sm:$0x1] }
 0x278   : > { %4355 = vrot.lane.b32.xlu1 %v4261_v57, %s5360_s11  ;;  %v3789_v57 = vor.u32 %v3788_v54, %v3785_v0  ;;  %v4152_v0 = vld [vmem:[#allocation2 + $0x7c] sm:$0xf] }
 0x27a   : > { %v2400_v29 = vpop.permute.xlu1 %2399 }
 0x27b   : > { %4022 = vrot.lane.b32.xlu0 %v3771_v24, %s5359_s29  ;;  %2469 = vst.msk [vmem:[#allocation3 + $0x6c] sm:$0xf] %vm2441_vm7, %v2400_v29  ;;  %v3790_v29 = vrot.slane %v3789_v57, 4  ;;  %v5155_v57 = vrot.slane %v4151_v39, 9 }
 0x27c   : > { %3463 = vrot.lane.b32.xlu2 %v3386_v2, %s5358_s28  ;;  %v3059_v2 = vld [vmem:[#allocation2 + $0x6c] sm:$0xe] }
 0x27d   : > { %v2961_v34 = vpop.permute.xlu0 %2960  ;;  %v3795_v13 = vsel %vm5477_vm13, %v3790_v29, %v3794_v10  ;;  %v5139_v56 = vrot.slane %v3059_v2, 9 }
 0x27e   : > { %3030 = vst.msk [vmem:[#allocation3 + $0x6c] sm:$0xf] %vm3002_vm9, %v2961_v34  ;;  %v2213_v36 = vpop.permute.xlu2 %2212 }
 0x280   : > { %3461 = vrot.lane.b32.xlu1 %v3385_v52, %s5358_s28  ;;  %v4150_v52 = vld [vmem:[#allocation2 + $0x74] sm:$0x1] }
 0x282   : > { %v1869_v44 = vpop.permute.xlu1 %1868 }
 0x283   : > { %4361 = vrot.lane.b32.xlu0 %v4271_v45, %s5360_s11  ;;  %1937 = vst.msk [vmem:[#allocation3 + $0x70] sm:$0xf] %vm1908_vm4, %v1869_v44  ;;  %v4277_v45 = vrot.slane %v4150_v52, 5  ;;  %v5154_v44 = vrot.slane %v4148_v9, 9 }
 0x284   : > { %2277 = vst.msk [vmem:[#allocation3 + $0x70] sm:$0xf] %vm2248_vm6, %v2209_v63  ;;  %4359 = vrot.lane.b32.xlu2 %v4268_v47, %s5360_s11  ;;  %v3799_v63 = vor.u32 %v3798_v1, %v3794_v10  ;;  %v3820_v47 = vshrl.u32 %v3591_v6, 16  ;;  %v3810_v10 = vshll.u32 %v3590_v62, 16  ;;  %v3061_v1 = vld [vmem:[#allocation2 + $0x74] sm:$0x1] }
 0x285   : > { %v2404_v12 = vpop.permute.xlu0 %2403  ;;  %2470 = vst.msk [vmem:[#allocation3 + $0x70] sm:$0xf] %vm2441_vm7, %v6797_v37  ;;  %v3802_v37 = vshll.u32 %v3589_v51, 16  ;;  %v4278_v40 = vsel %vm5458_vm8, %v4276_v11, %v4277_v45  ;;  %v4275_v4 = vsel %vm5458_vm8, %v5154_v44, %v4274_v3 }
 0x286   : > { %v2965_v38 = vpop.permute.xlu2 %2964  ;;  %v3800_v53 = vrot.slane %v3799_v63, 4  ;;  %v3809_v63 = vrot.slane %v3807_v49, 4 }
 0x287   : > { %v3804_v61 = vrot.slane %v3802_v37, 5  ;;  %v3812_v37 = vrot.slane %v3810_v10, 5 }
 0x288   : > { %4024 = vrot.lane.b32.xlu1 %v3781_v5, %s5359_s29  ;;  %v3390_v5 = vld [vmem:[#allocation2 + $0x7c] sm:$0xf] }
 0x289   : > { %v3805_v23 = vsel %vm5477_vm13, %v3800_v53, %v3804_v61  ;;  %v4281_v53 = vrot.slane %v4152_v0, 5  ;;  %v3063_v61 = vld [vmem:[#allocation2 + $0x7c] sm:$0xf]  ;;  %v3813_v41 = vor.u32 %v3812_v37, %v3809_v63  ;;  %v4156_v63 = vld [vmem:[#allocation2 + $0x8c] sm:$0x1] }
 0x28a   : > { %v2211_v8 = vpop.permute.xlu1 %2210 }
 0x28b   : > { %3465 = vrot.lane.b32.xlu0 %v3387_v32, %s5358_s28  ;;  %2278 = vst.msk [vmem:[#allocation3 + $0x74] sm:$0xf] %vm2248_vm6, %v2211_v8  ;;  %v3192_v32 = vrot.slane %v3061_v1, 5 }
 0x28c   : > { %2471 = vst.msk [vmem:[#allocation3 + $0x74] sm:$0xf] %vm2441_vm7, %v2404_v12  ;;  %3273 = vrot.lane.b32.xlu2 %v3186_v35, %s5357_s27  ;;  %v3816_v12 = vshll.u32 %v3591_v6, 16  ;;  %v3826_v35 = vshll.u32 %v3592_v14, 16 }
 0x28d   : > { %v1873_v58 = vpop.permute.xlu0 %1872  ;;  %3032 = vst.msk [vmem:[#allocation3 + $0x74] sm:$0xf] %vm3002_vm9, %v2965_v38  ;;  %v3822_v38 = vrot.slane %v3820_v47, 4 }
 0x28e   : > { %1939 = vst.msk [vmem:[#allocation3 + $0x78] sm:$0xf] %vm1908_vm4, %v1873_v58  ;;  %v2408_v24 = vpop.permute.xlu2 %2407  ;;  %v3818_v51 = vrot.slane %v3816_v12, 5  ;;  %v3828_v2 = vrot.slane %v3826_v35, 5 }
 0x28f   : > { %2279 = vst.msk [vmem:[#allocation3 + $0x78] sm:$0xf] %vm2248_vm6, %v2213_v36  ;;  %v3189_v36 = vrot.slane %v3060_v16, 5  ;;  %v3196_v16 = vrot.slane %v3063_v61, 5  ;;  %v3597_v61 = vld [vmem:[#allocation2 + $0x94] sm:$0xf] }
 0x290   : > { %3271 = vrot.lane.b32.xlu1 %v3183_v22, %s5357_s27  ;;  %v3823_v58 = vor.u32 %v3822_v38, %v3818_v51  ;;  %v3593_v22 = vld [vmem:[#allocation2 + $0x84] sm:$0xf]  ;;  %v4155_v38 = vld [vmem:[#allocation2 + $0x88] sm:$0xf] }
 0x291   : > { %v3190_v20 = vsel %vm5458_vm8, %v5139_v56, %v3189_v36  ;;  %v3191_v54 = vrot.slane %v3189_v36, 4  ;;  %v3064_v56 = vld [vmem:[#allocation2 + $0x80] sm:$0x1]  ;;  %v3814_v36 = vrot.slane %v3813_v41, 4  ;;  %v3198_v11 = vrot.slane %v3196_v16, 4 }
 0x292   : > { %v2963_v34 = vpop.permute.xlu1 %2962  ;;  %v3199_v45 = vrot.slane %v3064_v56, 5 }
 0x293   : > { %4028 = vrot.lane.b32.xlu0 %v3805_v23, %s5359_s29  ;;  %3031 = vst.msk [vmem:[#allocation3 + $0x70] sm:$0xf] %vm3002_vm9, %v2963_v34  ;;  %v3193_v23 = vsel %vm5458_vm8, %v3191_v54, %v3192_v32  ;;  %v3824_v34 = vrot.slane %v3823_v58, 4  ;;  %v4288_v54 = vrot.slane %v4155_v38, 5  ;;  %v3595_v58 = vld [vmem:[#allocation2 + $0x8c] sm:$0x1] }
 0x294   : > { %4026 = vrot.lane.b32.xlu2 %v3795_v13, %s5359_s29  ;;  %v3834_v13 = vshll.u32 %v3593_v22, 16  ;;  %v3200_v12 = vsel %vm5458_vm8, %v3198_v11, %v3199_v45  ;;  %v3850_v41 = vshll.u32 %v3595_v58, 16 }
 0x295   : > { %v2215_v46 = vpop.permute.xlu0 %2214  ;;  %v4290_v35 = vrot.slane %v4288_v54, 4 }
 0x296   : > { %v4007_v42 = vpop.permute.xlu2 %4006 }
 0x298   : > { %3467 = vrot.lane.b32.xlu1 %v3388_v48, %s5358_s28  ;;  %v3062_v48 = vld [vmem:[#allocation2 + $0x78] sm:$0xe] }
 0x299   : > { %v5140_v44 = vrot.slane %v3062_v48, 9 }
 0x29a   : > { %v2406_v50 = vpop.permute.xlu1 %2405 }
 0x29b   : > { %3275 = vrot.lane.b32.xlu0 %v3190_v20, %s5357_s27  ;;  %2472 = vst.msk [vmem:[#allocation3 + $0x78] sm:$0xf] %vm2441_vm7, %v2406_v50  ;;  %v3836_v20 = vrot.slane %v3834_v13, 5  ;;  %v3819_v50 = vsel %vm5477_vm13, %v3814_v36, %v3818_v51  ;;  %v3197_v1 = vsel %vm5458_vm8, %v5140_v44, %v3196_v16  ;;  %v3864_v16 = vshll.u32 %v3597_v61, 16  ;;  %v3596_v13 = vld [vmem:[#allocation2 + $0x90] sm:$0xf] }
 0x29c   : > { %4365 = vrot.lane.b32.xlu2 %v4278_v40, %s5360_s11  ;;  %v3594_v40 = vld [vmem:[#allocation2 + $0x88] sm:$0xf]  ;;  %v3855_v45 = vshrl.u32 %v3596_v13, 16 }
 0x29d   : > { %v3446_v60 = vpop.permute.xlu0 %3445  ;;  %v3840_v49 = vshll.u32 %v3594_v40, 16  ;;  %v3844_v39 = vshrl.u32 %v3594_v40, 16 }
 0x29e   : > { %3538 = vst.msk [vmem:[#allocation3 + $0x10] sm:$0xf] %vm3533_vm12, %v3446_v60  ;;  %v4346_v59 = vpop.permute.xlu2 %4345  ;;  %v4153_v60 = vld [vmem:[#allocation2 + $0x80] sm:$0x1] }
 0x29f   : > { %4099 = vst.msk [vmem:[#allocation3 + $0x10] sm:$0xf] %vm7398_vm2, %v4007_v42  ;;  %v3829_v42 = vsel %vm5477_vm13, %v3824_v34, %v3828_v2  ;;  %v3846_v37 = vrot.slane %v3844_v39, 4  ;;  %vm7405_vm2 = vmmov %vm7397_vm1 }
 0x2a0   : > { %4363 = vrot.lane.b32.xlu1 %v4275_v4, %s5360_s11  ;;  %v4284_v4 = vrot.slane %v4153_v60, 5  ;;  %v3598_v60 = vld [vmem:[#allocation2 + $0x98] sm:$0x1] }
 0x2a2   : > { %v1875_v26 = vpop.permute.xlu1 %1874 }
 0x2a3   : > { %3471 = vrot.lane.b32.xlu0 %v3390_v5, %s5358_s28  ;;  %1940 = vst.msk [vmem:[#allocation3 + $0x7c] sm:$0xf] %vm1908_vm4, %v1875_v26  ;;  %v3842_v26 = vrot.slane %v3840_v49, 5  ;;  %vm7401_vm4 = vmmov %vm7397_vm1  ;;  %v3393_v49 = vld [vmem:[#allocation2 + $0x90] sm:$0xf] }
 0x2a4   : > { %2280 = vst.msk [vmem:[#allocation3 + $0x7c] sm:$0xf] %vm2248_vm6, %v2215_v46  ;;  %3469 = vrot.lane.b32.xlu2 %v3389_v18, %s5358_s28  ;;  %v3831_v46 = vshrl.u32 %v3593_v22, 16  ;;  %v3392_v18 = vld [vmem:[#allocation2 + $0x88] sm:$0xf]  ;;  %vm7402_vm6 = vmmov %vm7397_vm1 }
 0x2a5   : > { %v2967_v8 = vpop.permute.xlu0 %2966  ;;  %2473 = vst.msk [vmem:[#allocation3 + $0x7c] sm:$0xf] %vm2441_vm7, %v2408_v24  ;;  %v4282_v24 = vsel %vm5458_vm8, %v5155_v57, %v4281_v53  ;;  %v4291_v57 = vrot.slane %v4156_v63, 5  ;;  %vm7403_vm7 = vmmov %vm7397_vm1 }
 0x2a6   : > { %3033 = vst.msk [vmem:[#allocation3 + $0x78] sm:$0xf] %vm3002_vm9, %v2967_v8  ;;  %v4011_v29 = vpop.permute.xlu2 %4010  ;;  %v3833_v9 = vrot.slane %v3831_v46, 4  ;;  %v3868_v46 = vshrl.u32 %v3597_v61, 16 }
 0x2a7   : > { %v4292_v2 = vsel %vm5458_vm8, %v4290_v35, %v4291_v57  ;;  %v3068_v35 = vld [vmem:[#allocation2 + $0x90] sm:$0xe]  ;;  %v3069_v57 = vld [vmem:[#allocation2 + $0x94] sm:$0xf] }
 0x2a8   : > { %3277 = vrot.lane.b32.xlu1 %v3193_v23, %s5357_s27  ;;  %v3837_v47 = vor.u32 %v3836_v20, %v3833_v9  ;;  %v3847_v23 = vor.u32 %v3846_v37, %v3842_v26  ;;  %v3858_v9 = vshll.u32 %v3596_v13, 16  ;;  %v3067_v20 = vld [vmem:[#allocation2 + $0x8c] sm:$0x1]  ;;  %v3870_v44 = vrot.slane %v3868_v46, 4  ;;  %v4157_v13 = vld [vmem:[#allocation2 + $0x90] sm:$0xe] }
 0x2aa   : > { %v3448_v3 = vpop.permute.xlu1 %3447  ;;  %v3838_v51 = vrot.slane %v3837_v47, 4  ;;  %v3848_v36 = vrot.slane %v3847_v23, 4  ;;  %v5142_v23 = vrot.slane %v3068_v35, 9 }
 0x2ab   : > { %4367 = vrot.lane.b32.xlu0 %v4282_v24, %s5360_s11  ;;  %3539 = vst.msk [vmem:[#allocation3 + $0x14] sm:$0xf] %vm3533_vm12, %v3448_v3  ;;  %v3066_v24 = vld [vmem:[#allocation2 + $0x88] sm:$0xf] }
 0x2ac   : > { %4032 = vrot.lane.b32.xlu2 %v3829_v42, %s5359_s29  ;;  %v3843_v0 = vsel %vm5477_vm13, %v3838_v51, %v3842_v26  ;;  %v3203_v11 = vrot.slane %v3066_v24, 5  ;;  %v3394_v24 = vld [vmem:[#allocation2 + $0x94] sm:$0xf] }
 0x2ad   : > { %v4009_v52 = vpop.permute.xlu0 %4008 }
 0x2ae   : > { %4100 = vst.msk [vmem:[#allocation3 + $0x14] sm:$0xf] %vm7399_vm14, %v4009_v52  ;;  %v6881_v6 = vpop.permute.xlu2 %4349  ;;  %v3852_v52 = vrot.slane %v3850_v41, 5  ;;  %v3205_v47 = vrot.slane %v3203_v11, 4  ;;  %v3210_v41 = vrot.slane %v3069_v57, 5  ;;  %vm7406_vm14 = vmmov %vm7397_vm1 }
 0x2af   : > { %4437 = vst.msk [vmem:[#allocation3 + $0x14] sm:$0xf] %vm4431_vm0, %v4346_v59  ;;  %v4283_v59 = vrot.slane %v4281_v53, 4  ;;  %v4154_v53 = vld [vmem:[#allocation2 + $0x84] sm:$0xe] }
 0x2b0   : > { %4030 = vrot.lane.b32.xlu1 %v3819_v50, %s5359_s29  ;;  %v5156_v34 = vrot.slane %v4154_v53, 9  ;;  %v3866_v50 = vrot.slane %v3864_v16, 5 }
 0x2b1   : > { %v4285_v14 = vsel %vm5458_vm8, %v4283_v59, %v4284_v4  ;;  %v3065_v59 = vld [vmem:[#allocation2 + $0x84] sm:$0xe]  ;;  %v3860_v4 = vrot.slane %v3858_v9, 5 }
 0x2b2   : > { %v2969_v62 = vpop.permute.xlu1 %2968  ;;  %v4289_v48 = vsel %vm5458_vm8, %v5156_v34, %v4288_v54  ;;  %v5141_v38 = vrot.slane %v3065_v59, 9  ;;  %v4159_v34 = vld [vmem:[#allocation2 + $0x98] sm:$0x1] }
 0x2b3   : > { %3281 = vrot.lane.b32.xlu0 %v3200_v12, %s5357_s27  ;;  %3034 = vst.msk [vmem:[#allocation3 + $0x7c] sm:$0xf] %vm3002_vm9, %v2969_v62  ;;  %v3853_v12 = vsel %vm5477_vm13, %v3848_v36, %v3852_v52  ;;  %v3206_v62 = vrot.slane %v3067_v20, 5  ;;  %vm7404_vm9 = vmmov %vm7397_vm1  ;;  %v4298_v46 = vrot.slane %v4159_v34, 5  ;;  %v5157_v36 = vrot.slane %v4157_v13, 9 }
 0x2b4   : > { %3279 = vrot.lane.b32.xlu2 %v3197_v1, %s5357_s27  ;;  %v3874_v1 = vshll.u32 %v3598_v60, 16  ;;  %v3070_v60 = vld [vmem:[#allocation2 + $0x98] sm:$0x1]  ;;  %v3071_v13 = vld [vmem:[#allocation2 + $0x9c] sm:$0xe] }
 0x2b5   : > { %v3450_v10 = vpop.permute.xlu0 %3449 }
 0x2b6   : > { %3540 = vst.msk [vmem:[#allocation3 + $0x18] sm:$0xf] %vm3533_vm12, %v3450_v10  ;;  %v4015_v5 = vpop.permute.xlu2 %4014  ;;  %v3871_v10 = vor.u32 %v3870_v44, %v3866_v50 }
 0x2b7   : > { %4101 = vst.msk [vmem:[#allocation3 + $0x18] sm:$0xf] %vm7400_vm3, %v4011_v29  ;;  %v3391_v29 = vld [vmem:[#allocation2 + $0x84] sm:$0xf]  ;;  %vm7407_vm3 = vmmov %vm7397_vm1 }
 0x2b8   : > { %4369 = vrot.lane.b32.xlu1 %v4285_v14, %s5360_s11  ;;  %v3207_v14 = vsel %vm5458_vm8, %v3205_v47, %v3206_v62  ;;  %v3872_v39 = vrot.slane %v3871_v10, 4  ;;  %v3396_v47 = vld [vmem:[#allocation2 + $0xa0] sm:$0xf]  ;;  %v3601_v62 = vld [vmem:[#allocation2 + $0xa4] sm:$0x1]  ;;  %v3212_v10 = vrot.slane %v3210_v41, 4 }
 0x2ba   : > { %v4344_v32 = vpop.permute.xlu1 %4343 }
 0x2bb   : > { %4034 = vrot.lane.b32.xlu0 %v3843_v0, %s5359_s29  ;;  %4436 = vst.msk [vmem:[#allocation3 + $0x10] sm:$0xf] %vm4431_vm0, %v4344_v32  ;;  %v3876_v0 = vrot.slane %v3874_v1, 5  ;;  %v3204_v32 = vsel %vm5458_vm8, %v5141_v38, %v3203_v11  ;;  %v3213_v1 = vrot.slane %v3070_v60, 5 }
 0x2bc   : > { %3475 = vrot.lane.b32.xlu2 %v3392_v18, %s5358_s28 }
 0x2bd   : > { %v4013_v8 = vpop.permute.xlu0 %4012  ;;  %v3877_v37 = vsel %vm5477_vm13, %v3872_v39, %v3876_v0  ;;  %v3898_v39 = vshll.u32 %v3601_v62, 16 }
 0x2be   : > { %v6903_v22 = vpop.permute.xlu2 %4353 }
 0x2bf   : > { %v3900_v35 = vrot.slane %v3898_v39, 5  ;;  %v3604_v39 = vld [vmem:[#allocation2 + $0xb0] sm:$0x1] }
 0x2c0   : > { %3473 = vrot.lane.b32.xlu1 %v3391_v29, %s5358_s28 }
 0x2c2   : > { %v3452_v3 = vpop.permute.xlu1 %3451  ;;  %v5297_v56 = vld [vmem:[#allocation3 + $0x10] sm:$0xff] }
 0x2c3   : > { %4373 = vrot.lane.b32.xlu0 %v4292_v2, %s5360_s11  ;;  %3541 = vst.msk [vmem:[#allocation3 + $0x1c] sm:$0xf] %vm3533_vm12, %v3452_v3  ;;  %5237 = vmatmul.msk.bf16.gmra.mxu2 %vm4605_vm15, %v5297_v56  ;;  %v3211_v3 = vsel %vm5458_vm8, %v5142_v23, %v3210_v41  ;;  %v3073_v41 = vld [vmem:[#allocation2 + $0xa4] sm:$0x1] }
 0x2c4   : > { %4102 = vst.msk [vmem:[#allocation3 + $0x1c] sm:$0xf] %vm7401_vm4, %v4013_v8  ;;  %5261 = vmatmul.msk.bf16.gmra.mxu3 %vm4605_vm15, %v5297_v56  ;;  %4371 = vrot.lane.b32.xlu2 %v4289_v48, %s5360_s11  ;;  %v4158_v8 = vld [vmem:[#allocation2 + $0x94] sm:$0xf]  ;;  %vm7408_vm4 = vmmov %vm7397_vm1 }
 0x2c5   : > { %v3454_v42 = vpop.permute.xlu0 %3453  ;;  %4439 = vst.msk [vmem:[#allocation3 + $0x1c] sm:$0xf] %vm4431_vm0, %v6881_v6  ;;  %v3857_v6 = vrot.slane %v3855_v45, 4  ;;  %v4295_v29 = vrot.slane %v4158_v8, 5  ;;  %v3599_v45 = vld [vmem:[#allocation2 + $0x9c] sm:$0xf] }
 0x2c6   : > { %3542 = vst.msk [vmem:[#allocation3 + $0x20] sm:$0xf] %vm3533_vm12, %v3454_v42  ;;  %v4019_v40 = vpop.permute.xlu2 %4018  ;;  %v3882_v44 = vshll.u32 %v3599_v45, 16 }
 0x2c7   : > { %4103 = vst.msk [vmem:[#allocation3 + $0x20] sm:$0xf] %vm7402_vm6, %v4015_v5  ;;  %v3861_v26 = vor.u32 %v3860_v4, %v3857_v6  ;;  %v4297_v16 = vrot.slane %v4295_v29, 4  ;;  %v4296_v20 = vsel %vm5458_vm8, %v5157_v36, %v4295_v29  ;;  %v4160_v4 = vld [vmem:[#allocation2 + $0x9c] sm:$0xe]  ;;  %vm7409_vm6 = vmmov %vm7397_vm1 }
 0x2c8   : > { %4036 = vrot.lane.b32.xlu1 %v3853_v12, %s5359_s29  ;;  %v3884_v38 = vrot.slane %v3882_v44, 5  ;;  %v5158_v0 = vrot.slane %v4160_v4, 9 }
 0x2c9   : > { %v3862_v63 = vrot.slane %v3861_v26, 4  ;;  %v4299_v42 = vsel %vm5458_vm8, %v4297_v16, %v4298_v46  ;;  %v3220_v46 = vrot.slane %v3073_v41, 5 }
 0x2ca   : > { %v4348_v51 = vpop.permute.xlu1 %4347 }
 0x2cb   : > { %3477 = vrot.lane.b32.xlu0 %v3393_v49, %s5358_s28  ;;  %4438 = vst.msk [vmem:[#allocation3 + $0x18] sm:$0xf] %vm4431_vm0, %v4348_v51  ;;  %v3867_v61 = vsel %vm5477_vm13, %v3862_v63, %v3866_v50  ;;  %v3879_v50 = vshrl.u32 %v3599_v45, 16  ;;  %v4161_v49 = vld [vmem:[#allocation2 + $0xa0] sm:$0xf] }
 0x2cc   : > { %3285 = vrot.lane.b32.xlu2 %v3207_v14, %s5357_s27  ;;  %v3395_v14 = vld [vmem:[#allocation2 + $0x9c] sm:$0xf]  ;;  %v3072_v63 = vld [vmem:[#allocation2 + $0xa0] sm:$0xf] }
 0x2cd   : > { %v4017_v5 = vpop.permute.xlu0 %4016  ;;  %v3881_v51 = vrot.slane %v3879_v50, 4 }
 0x2ce   : > { %v6928_v54 = vpop.permute.xlu2 %4357 }
 0x2d0   : > { %3283 = vrot.lane.b32.xlu1 %v3204_v32, %s5357_s27  ;;  %v4302_v32 = vrot.slane %v4161_v49, 5 }
 0x2d2   : > { %v3456_v18 = vpop.permute.xlu1 %3455  ;;  %v5298_v58 = vld [vmem:[#allocation3 + $0x18] sm:$0xff]  ;;  %v4303_v57 = vsel %vm5458_vm8, %v5158_v0, %v4302_v32  ;;  %v4304_v44 = vrot.slane %v4302_v32, 4 }
 0x2d3   : > { %4040 = vrot.lane.b32.xlu0 %v3877_v37, %s5359_s29  ;;  %3543 = vst.msk [vmem:[#allocation3 + $0x24] sm:$0xf] %vm3533_vm12, %v3456_v18  ;;  %5238 = vmatmul.msk.bf16.gmra.mxu2 %vm4605_vm15, %v5298_v58  ;;  %v3602_v37 = vld [vmem:[#allocation2 + $0xa8] sm:$0xf]  ;;  %v3214_v18 = vsel %vm5458_vm8, %v3212_v10, %v3213_v1 }
 0x2d4   : > { %4104 = vst.msk [vmem:[#allocation3 + $0x24] sm:$0xf] %vm7403_vm7, %v4017_v5  ;;  %5262 = vmatmul.msk.bf16.gmra.mxu3 %vm4605_vm15, %v5298_v58  ;;  %4038 = vrot.lane.b32.xlu2 %v3867_v61, %s5359_s29  ;;  %v3885_v58 = vor.u32 %v3884_v38, %v3881_v51  ;;  %v3903_v61 = vshrl.u32 %v3602_v37, 16  ;;  %v3906_v29 = vshll.u32 %v3602_v37, 16  ;;  %v4165_v38 = vld [vmem:[#allocation2 + $0xb0] sm:$0x1]  ;;  %vm7410_vm7 = vmmov %vm7397_vm1 }
 0x2d5   : > { %v3458_v53 = vpop.permute.xlu0 %3457  ;;  %4441 = vst.msk [vmem:[#allocation3 + $0x24] sm:$0xf] %vm4431_vm0, %v6903_v22  ;;  %v3600_v22 = vld [vmem:[#allocation2 + $0xa0] sm:$0xf]  ;;  %v4312_v32 = vrot.slane %v4165_v38, 5 }
 0x2d6   : > { %3544 = vst.msk [vmem:[#allocation3 + $0x28] sm:$0xf] %vm3533_vm12, %v3458_v53  ;;  %v3464_v2 = vpop.permute.xlu2 %3463  ;;  %v3888_v48 = vshll.u32 %v3600_v22, 16  ;;  %v3892_v11 = vshrl.u32 %v3600_v22, 16  ;;  %v3217_v53 = vrot.slane %v3072_v63, 5  ;;  %v3886_v34 = vrot.slane %v3885_v58, 4 }
 0x2d7   : > { %4105 = vst.msk [vmem:[#allocation3 + $0x28] sm:$0xf] %vm7404_vm9, %v4019_v40  ;;  %v3908_v22 = vrot.slane %v3906_v29, 5  ;;  %v4163_v63 = vld [vmem:[#allocation2 + $0xa8] sm:$0xe]  ;;  %vm7413_vm9 = vmmov %vm7397_vm1 }
 0x2d8   : > { %3479 = vrot.lane.b32.xlu1 %v3394_v24, %s5358_s28  ;;  %v3890_v40 = vrot.slane %v3888_v48, 5  ;;  %v3894_v12 = vrot.slane %v3892_v11, 4  ;;  %v3219_v16 = vrot.slane %v3217_v53, 4  ;;  %v3603_v48 = vld [vmem:[#allocation2 + $0xac] sm:$0xf] }
 0x2d9   : > { %v3916_v10 = vshrl.u32 %v3603_v48, 16  ;;  %v3606_v37 = vld [vmem:[#allocation2 + $0xb8] sm:$0xf] }
 0x2da   : > { %v4352_v56 = vpop.permute.xlu1 %4351  ;;  %v3895_v26 = vor.u32 %v3894_v12, %v3890_v40  ;;  %v3891_v36 = vsel %vm5477_vm13, %v3886_v34, %v3890_v40  ;;  %v3221_v11 = vsel %vm5458_vm8, %v3219_v16, %v3220_v46  ;;  %v3912_v12 = vshll.u32 %v3603_v48, 16  ;;  %v3607_v48 = vld [vmem:[#allocation2 + $0xbc] sm:$0x1] }
 0x2db   : > { %3287 = vrot.lane.b32.xlu0 %v3211_v3, %s5357_s27  ;;  %4440 = vst.msk [vmem:[#allocation3 + $0x20] sm:$0xf] %vm4431_vm0, %v4352_v56  ;;  %v3905_v3 = vrot.slane %v3903_v61, 4  ;;  %v3936_v61 = vshll.u32 %v3606_v37, 16  ;;  %v3940_v29 = vshrl.u32 %v3606_v37, 16 }
 0x2dc   : > { %4377 = vrot.lane.b32.xlu2 %v4299_v42, %s5360_s11  ;;  %v4162_v42 = vld [vmem:[#allocation2 + $0xa4] sm:$0x1]  ;;  %v3914_v49 = vrot.slane %v3912_v12, 5  ;;  %v3399_v12 = vld [vmem:[#allocation2 + $0xb4] sm:$0xf] }
 0x2dd   : > { %v4021_v52 = vpop.permute.xlu0 %4020  ;;  %v3909_v45 = vor.u32 %v3908_v22, %v3905_v3  ;;  %v4305_v60 = vrot.slane %v4162_v42, 5  ;;  %v3942_v42 = vrot.slane %v3940_v29, 4 }
 0x2de   : > { %v6955_v9 = vpop.permute.xlu2 %4359 }
 0x2df   : > { %v3910_v62 = vrot.slane %v3909_v45, 4  ;;  %v4306_v4 = vsel %vm5458_vm8, %v4304_v44, %v4305_v60 }
 0x2e0   : > { %4375 = vrot.lane.b32.xlu1 %v4296_v20, %s5360_s11 }
 0x2e1   : > { %v3915_v1 = vsel %vm5477_vm13, %v3910_v62, %v3914_v49 }
 0x2e2   : > { %v3460_v59 = vpop.permute.xlu1 %3459  ;;  %v5299_v6 = vld [vmem:[#allocation3 + $0x20] sm:$0xff] }
 0x2e3   : > { %3483 = vrot.lane.b32.xlu0 %v3396_v47, %s5358_s28  ;;  %3545 = vst.msk [vmem:[#allocation3 + $0x2c] sm:$0xf] %vm3533_vm12, %v3460_v59  ;;  %5239 = vmatmul.msk.bf16.gmra.mxu2 %vm4605_vm15, %v5299_v6  ;;  %v4164_v59 = vld [vmem:[#allocation2 + $0xac] sm:$0xf] }
 0x2e4   : > { %4106 = vst.msk [vmem:[#allocation3 + $0x2c] sm:$0xf] %vm7397_vm1, %v4021_v52  ;;  %5263 = vmatmul.msk.bf16.gmra.mxu3 %vm4605_vm15, %v5299_v6  ;;  %3481 = vrot.lane.b32.xlu2 %v3395_v14, %s5358_s28  ;;  %v5143_v52 = vrot.slane %v3071_v13, 9  ;;  %v4309_v51 = vrot.slane %v4164_v59, 5 }
 0x2e5   : > { %v3270_v5 = vpop.permute.xlu0 %3269  ;;  %4443 = vst.msk [vmem:[#allocation3 + $0x2c] sm:$0xf] %vm4431_vm0, %v6928_v54  ;;  %v3896_v54 = vrot.slane %v3895_v26, 4  ;;  %v3398_v26 = vld [vmem:[#allocation2 + $0xac] sm:$0xf] }
 0x2e6   : > { %3353 = vst.msk [vmem:[#allocation3 + $0x34] sm:$0xf] %vm3339_vm11, %v3270_v5  ;;  %v3274_v8 = vpop.permute.xlu2 %3273  ;;  %v3218_v47 = vsel %vm5458_vm8, %v5143_v52, %v3217_v53  ;;  %v3918_v5 = vrot.slane %v3916_v10, 4  ;;  %v4311_v0 = vrot.slane %v4309_v51, 4  ;;  %v3075_v53 = vld [vmem:[#allocation2 + $0xac] sm:$0xf] }
 0x2e7   : > { %3547 = vst.msk [vmem:[#allocation3 + $0x34] sm:$0xf] %vm3533_vm12, %v3464_v2  ;;  %v3901_v24 = vsel %vm5477_vm13, %v3896_v54, %v3900_v35  ;;  %v3922_v54 = vshll.u32 %v3604_v39, 16  ;;  %v5159_v35 = vrot.slane %v4163_v63, 9  ;;  %v3224_v13 = vrot.slane %v3075_v53, 5 }
 0x2e8   : > { %3355 = vst.msk [vmem:[#allocation3 + $0x3c] sm:$0xf] %vm3339_vm11, %v3274_v8  ;;  %3289 = vrot.lane.b32.xlu1 %v3214_v18, %s5357_s27  ;;  %v3397_v18 = vld [vmem:[#allocation2 + $0xa8] sm:$0xf]  ;;  %v3919_v58 = vor.u32 %v3918_v5, %v3914_v49  ;;  %v3938_v52 = vrot.slane %v3936_v61, 5 }
 0x2e9   : > { %v4310_v46 = vsel %vm5458_vm8, %v5159_v35, %v4309_v51  ;;  %v3077_v39 = vld [vmem:[#allocation2 + $0xb4] sm:$0xe]  ;;  %v3400_v35 = vld [vmem:[#allocation2 + $0xb8] sm:$0xf] }
 0x2ea   : > { %v4356_v23 = vpop.permute.xlu1 %4355  ;;  %v4166_v61 = vld [vmem:[#allocation2 + $0xb4] sm:$0xe] }
 0x2eb   : > { %4379 = vrot.lane.b32.xlu0 %v4303_v57, %s5360_s11  ;;  %4442 = vst.msk [vmem:[#allocation3 + $0x28] sm:$0xf] %vm4431_vm0, %v4356_v23  ;;  %v4313_v57 = vsel %vm5458_vm8, %v4311_v0, %v4312_v32  ;;  %v3605_v23 = vld [vmem:[#allocation2 + $0xb4] sm:$0xf]  ;;  %v3078_v0 = vld [vmem:[#allocation2 + $0xb8] sm:$0xf] }
 0x2ec   : > { %4044 = vrot.lane.b32.xlu2 %v3901_v24, %s5359_s29  ;;  %v3924_v24 = vrot.slane %v3922_v54, 5  ;;  %v3927_v3 = vshrl.u32 %v3605_v23, 16  ;;  %v3930_v22 = vshll.u32 %v3605_v23, 16  ;;  %v3609_v23 = vld [vmem:[#allocation2 + $0xc4] sm:$0xf] }
 0x2ed   : > { %v4023_v2 = vpop.permute.xlu0 %4022 }
 0x2ee   : > { %v6981_v56 = vpop.permute.xlu2 %4026  ;;  %v3929_v44 = vrot.slane %v3927_v3, 4  ;;  %v3932_v60 = vrot.slane %v3930_v22, 5  ;;  %v3608_v3 = vld [vmem:[#allocation2 + $0xc0] sm:$0xf]  ;;  %v3079_v22 = vld [vmem:[#allocation2 + $0xbc] sm:$0x1] }
 0x2f0   : > { %4042 = vrot.lane.b32.xlu1 %v3891_v36, %s5359_s29  ;;  %v3076_v36 = vld [vmem:[#allocation2 + $0xb0] sm:$0x1]  ;;  %v3933_v10 = vor.u32 %v3932_v60, %v3929_v44  ;;  %v4170_v60 = vld [vmem:[#allocation2 + $0xc4] sm:$0xf] }
 0x2f2   : > { %v3462_v20 = vpop.permute.xlu1 %3461  ;;  %v5300_v50 = vld [vmem:[#allocation3 + $0x28] sm:$0xff]  ;;  %v3934_v5 = vrot.slane %v3933_v10, 4 }
 0x2f3   : > { %3293 = vrot.lane.b32.xlu0 %v3221_v11, %s5357_s27  ;;  %3546 = vst.msk [vmem:[#allocation3 + $0x30] sm:$0xf] %vm3533_vm12, %v3462_v20  ;;  %5240 = vmatmul.msk.bf16.gmra.mxu2 %vm4605_vm15, %v5300_v50  ;;  %v3226_v20 = vrot.slane %v3224_v13, 4 }
 0x2f4   : > { %4107 = vst.msk [vmem:[#allocation3 + $0x30] sm:$0xf] %vm7405_vm2, %v4023_v2  ;;  %5264 = vmatmul.msk.bf16.gmra.mxu3 %vm4605_vm15, %v5300_v50  ;;  %3291 = vrot.lane.b32.xlu2 %v3218_v47, %s5357_s27  ;;  %v3920_v2 = vrot.slane %v3919_v58, 4  ;;  %v3227_v50 = vrot.slane %v3076_v36, 5  ;;  %v3946_v47 = vshll.u32 %v3607_v48, 16  ;;  %v3939_v63 = vsel %vm5477_vm13, %v3934_v5, %v3938_v52  ;;  %vm7416_vm2 = vmmov %vm7397_vm1 }
 0x2f5   : > { %v4362_v40 = vpop.permute.xlu0 %4361  ;;  %4444 = vst.msk [vmem:[#allocation3 + $0x30] sm:$0xf] %vm4431_vm0, %v6955_v9  ;;  %v4168_v58 = vld [vmem:[#allocation2 + $0xbc] sm:$0x1]  ;;  %v3951_v48 = vshrl.u32 %v3608_v3, 16 }
 0x2f6   : > { %v6998_v6 = vpop.permute.xlu2 %4365  ;;  %v3925_v45 = vsel %vm5477_vm13, %v3920_v2, %v3924_v24  ;;  %v3228_v49 = vsel %vm5458_vm8, %v3226_v20, %v3227_v50  ;;  %v3948_v51 = vrot.slane %v3946_v47, 5  ;;  %v4319_v53 = vrot.slane %v4168_v58, 5  ;;  %v785_v20 = vld [vmem:[#allocation2 + $0xcc] sm:$0x1]  ;;  %v4169_v50 = vld [vmem:[#allocation2 + $0xc0] sm:$0xe] }
 0x2f7   : > { %v5160_v2 = vrot.slane %v4166_v61, 9 }
 0x2f8   : > { %4381 = vrot.lane.b32.xlu1 %v4306_v4, %s5360_s11 }
 0x2fa   : > { %v4025_v9 = vpop.permute.xlu1 %4024 }
 0x2fb   : > { %4046 = vrot.lane.b32.xlu0 %v3915_v1, %s5359_s29  ;;  %4108 = vst.msk [vmem:[#allocation3 + $0x34] sm:$0xf] %vm7406_vm14, %v4025_v9  ;;  %vm7417_vm14 = vmmov %vm7397_vm1 }
 0x2fc   : > { %4445 = vst.msk [vmem:[#allocation3 + $0x34] sm:$0xf] %vm4431_vm0, %v4362_v40  ;;  %3487 = vrot.lane.b32.xlu2 %v3398_v26, %s5358_s28  ;;  %v3943_v40 = vor.u32 %v3942_v42, %v3938_v52  ;;  %v3402_v42 = vld [vmem:[#allocation2 + $0xc4] sm:$0xf] }
 0x2fd   : > { %v3466_v14 = vpop.permute.xlu0 %3465 }
 0x2fe   : > { %v3470_v8 = vpop.permute.xlu2 %3469  ;;  %v3944_v1 = vrot.slane %v3943_v40, 4 }
 0x300   : > { %3485 = vrot.lane.b32.xlu1 %v3397_v18, %s5358_s28  ;;  %v3231_v18 = vrot.slane %v3078_v0, 5 }
 0x302   : > { %v3272_v41 = vpop.permute.xlu1 %3271  ;;  %v3233_v47 = vrot.slane %v3231_v18, 4 }
 0x303   : > { %4385 = vrot.lane.b32.xlu0 %v4313_v57, %s5360_s11  ;;  %3354 = vst.msk [vmem:[#allocation3 + $0x38] sm:$0xf] %vm3339_vm11, %v3272_v41  ;;  %v5301_v34 = vld [vmem:[#allocation3 + $0x30] sm:$0xff] }
 0x304   : > { %3548 = vst.msk [vmem:[#allocation3 + $0x38] sm:$0xf] %vm3533_vm12, %v3466_v14  ;;  %4383 = vrot.lane.b32.xlu2 %v4310_v46, %s5360_s11  ;;  %5241 = vmatmul.msk.bf16.gmra.mxu2 %vm4605_vm15, %v5301_v34  ;;  %v4167_v14 = vld [vmem:[#allocation2 + $0xb8] sm:$0xf]  ;;  %v3960_v46 = vshll.u32 %v3609_v23, 16 }
 0x305   : > { %v4029_v16 = vpop.permute.xlu0 %4028  ;;  %4109 = vst.msk [vmem:[#allocation3 + $0x38] sm:$0xf] %vm7407_vm3, %v6981_v56  ;;  %5265 = vmatmul.msk.bf16.gmra.mxu3 %vm4605_vm15, %v5301_v34  ;;  %v3074_v56 = vld [vmem:[#allocation2 + $0xa8] sm:$0xe]  ;;  %v4316_v37 = vrot.slane %v4167_v14, 5  ;;  %vm7418_vm3 = vmmov %vm7397_vm1 }
 0x306   : > { %v7022_v11 = vpop.permute.xlu2 %4032  ;;  %v5144_v59 = vrot.slane %v3074_v56, 9  ;;  %v3962_v56 = vrot.slane %v3960_v46, 5 }
 0x307   : > { %v4318_v57 = vrot.slane %v4316_v37, 4  ;;  %v4317_v52 = vsel %vm5458_vm8, %v5160_v2, %v4316_v37  ;;  %v3080_v2 = vld [vmem:[#allocation2 + $0xc0] sm:$0xe] }
 0x308   : > { %4048 = vrot.lane.b32.xlu1 %v3925_v45, %s5359_s29  ;;  %v3225_v38 = vsel %vm5458_vm8, %v5144_v59, %v3224_v13  ;;  %v3964_v13 = vshrl.u32 %v3609_v23, 16  ;;  %v3954_v45 = vshll.u32 %v3608_v3, 16  ;;  %v3401_v59 = vld [vmem:[#allocation2 + $0xc0] sm:$0xf]  ;;  %v5146_v3 = vrot.slane %v3080_v2, 9 }
 0x30a   : > { %v3468_v62 = vpop.permute.xlu1 %3467  ;;  %v3966_v44 = vrot.slane %v3964_v13, 4 }
 0x30b   : > { %3489 = vrot.lane.b32.xlu0 %v3399_v12, %s5358_s28  ;;  %3549 = vst.msk [vmem:[#allocation3 + $0x3c] sm:$0xf] %vm3533_vm12, %v3468_v62  ;;  %v3610_v12 = vld [vmem:[#allocation2 + $0xc8] sm:$0x1]  ;;  %v3234_v62 = vrot.slane %v3079_v22, 5 }
 0x30c   : > { %4110 = vst.msk [vmem:[#allocation3 + $0x3c] sm:$0xf] %vm7408_vm4, %v4029_v16  ;;  %3297 = vrot.lane.b32.xlu2 %v3228_v49, %s5357_s27  ;;  %v4320_v16 = vsel %vm5458_vm8, %v4318_v57, %v4319_v53  ;;  %v3956_v49 = vrot.slane %v3954_v45, 5  ;;  %v3967_v27 = vor.u32 %v3966_v44, %v3962_v56  ;;  %v4171_v22 = vld [vmem:[#allocation2 + $0xc8] sm:$0x1]  ;;  %vm7419_vm4 = vmmov %vm7397_vm1 }
 0x30d   : > { %v3276_v4 = vpop.permute.xlu0 %3275  ;;  %4447 = vst.msk [vmem:[#allocation3 + $0x3c] sm:$0xf] %vm4431_vm0, %v6998_v6  ;;  %v3949_v6 = vsel %vm5477_vm13, %v3944_v1, %v3948_v51  ;;  %v5161_v1 = vrot.slane %v4169_v50, 9  ;;  %v4323_v51 = vrot.slane %v4170_v60, 5  ;;  %v4173_v60 = vld [vmem:[#allocation2 + $0xd0] sm:$0xf] }
 0x30e   : > { %3356 = vst.msk [vmem:[#allocation3 + $0x40] sm:$0xf] %vm3339_vm11, %v3276_v4  ;;  %v3280_v9 = vpop.permute.xlu2 %3279  ;;  %v3953_v4 = vrot.slane %v3951_v48, 4  ;;  %v3968_v0 = vrot.slane %v3967_v27, 4  ;;  %v3404_v27 = vld [vmem:[#allocation2 + $0xd0] sm:$0xf] }
 0x30f   : > { %3550 = vst.msk [vmem:[#allocation3 + $0x40] sm:$0xf] %vm3533_vm12, %v3470_v8  ;;  %v5145_v8 = vrot.slane %v3077_v39, 9  ;;  %v4324_v39 = vsel %vm5458_vm8, %v5161_v1, %v4323_v51  ;;  %v4325_v45 = vrot.slane %v4323_v51, 4 }
 0x310   : > { %3358 = vst.msk [vmem:[#allocation3 + $0x48] sm:$0xf] %vm3339_vm11, %v3280_v9  ;;  %3295 = vrot.lane.b32.xlu1 %v3225_v38, %s5357_s27  ;;  %v3970_v9 = vshll.u32 %v3610_v12, 16  ;;  %v3081_v38 = vld [vmem:[#allocation2 + $0xc4] sm:$0xf]  ;;  %v3957_v14 = vor.u32 %v3956_v49, %v3953_v4 }
 0x311   : > { %v3232_v29 = vsel %vm5458_vm8, %v5145_v8, %v3231_v18  ;;  %v3238_v37 = vrot.slane %v3081_v38, 5 }
 0x312   : > { %v4364_v26 = vpop.permute.xlu1 %4363  ;;  %v3958_v57 = vrot.slane %v3957_v14, 4  ;;  %v7111_v14 = vpop.f32.mrf.mxu2 }
 0x313   : > { %4052 = vrot.lane.b32.xlu0 %v3949_v6, %s5359_s29  ;;  %4446 = vst.msk [vmem:[#allocation3 + $0x38] sm:$0xf] %vm4431_vm0, %v4364_v26  ;;  %v3235_v6 = vsel %vm5458_vm8, %v3233_v47, %v3234_v62  ;;  %v841_v26 = vld [vmem:[#allocation2 + $0xd4] sm:$0x1] }
 0x314   : > { %4050 = vrot.lane.b32.xlu2 %v3939_v63, %s5359_s29  ;;  %v842_v58 = vsel %vm5449_vm5, 0, %v841_v26  ;;  %vm7411_vm5 = vmmov %vm7397_vm1 }
 0x315   : > { %v3472_v32 = vpop.permute.xlu0 %3471  ;;  %843 = vst [vmem:[#allocation2 + $0xd4] sm:$0x1] %v842_v58 }
 0x316   : > { %v3476_v54 = vpop.permute.xlu2 %3475 }
 0x318   : > { %3491 = vrot.lane.b32.xlu1 %v3400_v35, %s5358_s28  ;;  %v3082_v35 = vld [vmem:[#allocation2 + $0xc8] sm:$0x1] }
 0x319   : > { %v3241_v7 = vrot.slane %v3082_v35, 5 }
 0x31a   : > { %v3278_v41 = vpop.permute.xlu1 %3277  ;;  %v5302_v34 = vld [vmem:[#allocation3 + $0x38] sm:$0xff] }
 0x31b   : > { %3299 = vrot.lane.b32.xlu0 %v3232_v29, %s5357_s27  ;;  %3357 = vst.msk [vmem:[#allocation3 + $0x44] sm:$0xf] %vm3339_vm11, %v3278_v41  ;;  %5242 = vmatmul.msk.bf16.gmra.mxu2 %vm4605_vm15, %v5302_v34  ;;  %v3612_v41 = vld [vmem:[#allocation2 + $0xd0] sm:$0xf] }
 0x31c   : > { %3551 = vst.msk [vmem:[#allocation3 + $0x44] sm:$0xf] %vm3533_vm12, %v3472_v32  ;;  %5266 = vmatmul.msk.bf16.gmra.mxu3 %vm4605_vm15, %v5302_v34  ;;  %4389 = vrot.lane.b32.xlu2 %v4320_v16, %s5360_s11  ;;  %v3972_v32 = vrot.slane %v3970_v9, 5  ;;  %v3240_v34 = vrot.slane %v3238_v37, 4  ;;  %v3963_v16 = vsel %vm5477_vm13, %v3958_v57, %v3962_v56  ;;  %v3984_v13 = vshll.u32 %v3612_v41, 16 }
 0x31d   : > { %v4368_v24 = vpop.permute.xlu0 %4367  ;;  %4112 = vst.msk [vmem:[#allocation3 + $0x44] sm:$0xf] %vm7409_vm6, %v7022_v11  ;;  %v786_v11 = vsel %vm5470_vm10, 0, %v785_v20  ;;  %v4326_v20 = vrot.slane %v4171_v22, 5  ;;  %v3988_v12 = vshrl.u32 %v3612_v41, 16  ;;  %vm7412_vm10 = vmmov %vm7397_vm1 }
 0x31e   : > { %v7061_v36 = vpop.permute.xlu2 %4371  ;;  %787 = vst [vmem:[#allocation2 + $0xcc] sm:$0x1] %v786_v11  ;;  %v3973_v23 = vsel %vm5477_vm13, %v3968_v0, %v3972_v32  ;;  %v3986_v44 = vrot.slane %v3984_v13, 5  ;;  %v3239_v11 = vsel %vm5458_vm8, %v5146_v3, %v3238_v37  ;;  %v4174_v4 = vld [vmem:[#allocation2 + $0xd4] sm:$0x1]  ;;  %v7115_v0 = vpop.f32.mrf.mxu3  ;;  %vm7420_vm6 = vmmov %vm7397_vm1 }
 0x31f   : > { %v4327_v47 = vsel %vm5458_vm8, %v4325_v45, %v4326_v20  ;;  %v3990_v49 = vrot.slane %v3988_v12, 4  ;;  %v3613_v1 = vld [vmem:[#allocation2 + $0xd4] sm:$0x1]  ;;  %v4333_v51 = vrot.slane %v4174_v4, 5 }
 0x320   : > { %4387 = vrot.lane.b32.xlu1 %v4317_v52, %s5360_s11  ;;  %v3242_v52 = vsel %vm5458_vm8, %v3240_v34, %v3241_v7 }
 0x322   : > { %v4031_v40 = vpop.permute.xlu1 %4030 }
 0x323   : > { %3495 = vrot.lane.b32.xlu0 %v3402_v42, %s5358_s28  ;;  %4111 = vst.msk [vmem:[#allocation3 + $0x40] sm:$0xf] %vm7410_vm7, %v4031_v40  ;;  %vm7421_vm7 = vmmov %vm7397_vm1 }
 0x324   : > { %4448 = vst.msk [vmem:[#allocation3 + $0x40] sm:$0xf] %vm4431_vm0, %v4368_v24  ;;  %3493 = vrot.lane.b32.xlu2 %v3401_v59, %s5358_s28  ;;  %v4330_v59 = vrot.slane %v4173_v60, 5 }
 0x325   : > { %v3282_v10 = vpop.permute.xlu0 %3281  ;;  %v3611_v63 = vld [vmem:[#allocation2 + $0xcc] sm:$0xf] }
 0x326   : > { %3359 = vst.msk [vmem:[#allocation3 + $0x4c] sm:$0xf] %vm3339_vm11, %v3282_v10  ;;  %v3286_v5 = vpop.permute.xlu2 %3285  ;;  %v3975_v8 = vshrl.u32 %v3611_v63, 16  ;;  %v3978_v18 = vshll.u32 %v3611_v63, 16  ;;  %v3403_v38 = vld [vmem:[#allocation2 + $0xcc] sm:$0xf] }
 0x327   : > { %3553 = vst.msk [vmem:[#allocation3 + $0x4c] sm:$0xf] %vm3533_vm12, %v3476_v54 }
 0x328   : > { %3361 = vst.msk [vmem:[#allocation3 + $0x54] sm:$0xf] %vm3339_vm11, %v3286_v5  ;;  %3301 = vrot.lane.b32.xlu1 %v3235_v6, %s5357_s27  ;;  %v3977_v53 = vrot.slane %v3975_v8, 4  ;;  %v3980_v61 = vrot.slane %v3978_v18, 5  ;;  %v3991_v5 = vor.u32 %v3990_v49, %v3986_v44  ;;  %v3994_v6 = vshll.u32 %v3613_v1, 16 }
 0x329   : > { %v4172_v18 = vld [vmem:[#allocation2 + $0xcc] sm:$0xe] }
 0x32a   : > { %v4370_v54 = vpop.permute.xlu1 %4369  ;;  %v3981_v46 = vor.u32 %v3980_v61, %v3977_v53  ;;  %v3992_v32 = vrot.slane %v3991_v5, 4  ;;  %v3996_v63 = vrot.slane %v3994_v6, 5 }
 0x32b   : > { %4391 = vrot.lane.b32.xlu0 %v4324_v39, %s5360_s11  ;;  %4449 = vst.msk [vmem:[#allocation3 + $0x44] sm:$0xf] %vm4431_vm0, %v4370_v54  ;;  %v5162_v54 = vrot.slane %v4172_v18, 9 }
 0x32c   : > { %4056 = vrot.lane.b32.xlu2 %v3973_v23, %s5359_s29  ;;  %v3982_v50 = vrot.slane %v3981_v46, 4  ;;  %v3997_v35 = vsel %vm5477_vm13, %v3992_v32, %v3996_v63 }
 0x32d   : > { %v4035_v29 = vpop.permute.xlu0 %4034  ;;  %v4331_v57 = vsel %vm5458_vm8, %v5162_v54, %v4330_v59 }
 0x32e   : > { %v4039_v24 = vpop.permute.xlu2 %4038  ;;  %v3987_v62 = vsel %vm5477_vm13, %v3982_v50, %v3986_v44  ;;  %vm7415_vm13 = vmmov %vm7397_vm1 }
 0x330   : > { %4054 = vrot.lane.b32.xlu1 %v3963_v16, %s5359_s29 }
 0x332   : > { %v3474_v42 = vpop.permute.xlu1 %3473  ;;  %v5303_v48 = vld [vmem:[#allocation3 + $0x40] sm:$0xff] }
 0x333   : > { %3305 = vrot.lane.b32.xlu0 %v3242_v52, %s5357_s27  ;;  %3552 = vst.msk [vmem:[#allocation3 + $0x48] sm:$0xf] %vm3533_vm12, %v3474_v42  ;;  %5243 = vmatmul.msk.bf16.gmra.mxu2 %vm4605_vm15, %v5303_v48 }
 0x334   : > { %4113 = vst.msk [vmem:[#allocation3 + $0x48] sm:$0xf] %vm7411_vm5, %v4035_v29  ;;  %5267 = vmatmul.msk.bf16.gmra.mxu3 %vm4605_vm15, %v5303_v48  ;;  %3303 = vrot.lane.b32.xlu2 %v3239_v11, %s5357_s27  ;;  %v7133_v29 = vld [vmem:[%s7381_s7] ss:$0 sm:$0xff]  ;;  %vm7423_vm5 = vmmov %vm7397_vm1  ;;  %s5278_s27 = sshll.u32 %s7425_s10, 4 }
 0x335   : > { %v4374_v56 = vpop.permute.xlu0 %4373  ;;  %4450 = vst.msk [vmem:[#allocation3 + $0x48] sm:$0xf] %vm4431_vm0, %v7061_v36  ;;  %v4332_v36 = vrot.slane %v4330_v59, 4 }
 0x336   : > { %v4378_v40 = vpop.permute.xlu2 %4377 }
 0x337   : > { %v4334_v39 = vsel %vm5458_vm8, %v4332_v36, %v4333_v51  ;;  %vm7414_vm8 = vmmov %vm7397_vm1 }
 0x338   : > { %4393 = vrot.lane.b32.xlu1 %v4327_v47, %s5360_s11 }
 0x33a   : > { %v4037_v10 = vpop.permute.xlu1 %4036 }
 0x33b   : > { %4058 = vrot.lane.b32.xlu0 %v3987_v62, %s5359_s29  ;;  %4114 = vst.msk [vmem:[#allocation3 + $0x4c] sm:$0xf] %vm7412_vm10, %v4037_v10 }
 0x33c   : > { %4451 = vst.msk [vmem:[#allocation3 + $0x4c] sm:$0xf] %vm4431_vm0, %v4374_v56  ;;  %3499 = vrot.lane.b32.xlu2 %v3404_v27, %s5358_s28 }
 0x33d   : > { %v3478_v9 = vpop.permute.xlu0 %3477 }
 0x33e   : > { %v3482_v26 = vpop.permute.xlu2 %3481 }
 0x340   : > { %3497 = vrot.lane.b32.xlu1 %v3403_v38, %s5358_s28 }
 0x342   : > { %v3284_v37 = vpop.permute.xlu1 %3283 }
 0x343   : > { %4397 = vrot.lane.b32.xlu0 %v4334_v39, %s5360_s11  ;;  %3360 = vst.msk [vmem:[#allocation3 + $0x50] sm:$0xf] %vm3339_vm11, %v3284_v37  ;;  %v5304_v8 = vld [vmem:[#allocation3 + $0x48] sm:$0xff] }
 0x344   : > { %3554 = vst.msk [vmem:[#allocation3 + $0x50] sm:$0xf] %vm3533_vm12, %v3478_v9  ;;  %5244 = vmatmul.msk.bf16.gmra.mxu2 %vm4605_vm15, %v5304_v8  ;;  %5268 = vmatmul.msk.bf16.gmra.mxu3 %vm4605_vm15, %v5304_v8 }
 0x345   : > { %v4041_v58 = vpop.permute.xlu0 %4040  ;;  %4115 = vst.msk [vmem:[#allocation3 + $0x50] sm:$0xf] %vm7413_vm9, %v4039_v24  ;;  %4395 = vrot.lane.b32.xlu2 %v4331_v57, %s5360_s11  ;;  %s332_s11 = scalar_lea.vmem %s7383_s9, %s5278_s27 }
 0x346   : > { %v4045_v53 = vpop.permute.xlu2 %4044  ;;  %v4676_v61 = vpop.f32.mrf.mxu2 }
 0x347   : > { %v7136_v23 = vadd.f32 %v7133_v29, %v4676_v61  ;;  %v4787_v41 = vpop.f32.mrf.mxu3 }
 0x348   : > { %4060 = vrot.lane.b32.xlu1 %v3997_v35, %s5359_s29  ;;  %v7144_v31 = vadd.f32 %v7141_v15, %v4787_v41 }
 0x34a   : > { %v3480_v34 = vpop.permute.xlu1 %3479  ;;  %v4861_v7 = vmax.f32 %v7136_v23, %v7144_v31 }
 0x34b   : > { %3555 = vst.msk [vmem:[#allocation3 + $0x54] sm:$0xf] %vm3533_vm12, %v3480_v34 }
 0x34c   : > { %4116 = vst.msk [vmem:[#allocation3 + $0x54] sm:$0xf] %vm7414_vm8, %v4041_v58 }
 0x34d   : > { %v3288_v2 = vpop.permute.xlu0 %3287  ;;  %4453 = vst.msk [vmem:[#allocation3 + $0x54] sm:$0xf] %vm4431_vm0, %v4378_v40 }
 0x34e   : > { %3362 = vst.msk [vmem:[#allocation3 + $0x58] sm:$0xf] %vm3339_vm11, %v3288_v2  ;;  %v3292_v24 = vpop.permute.xlu2 %3291  ;;  %v7153_v16 = vpop.f32.mrf.mxu2 }
 0x34f   : > { %3556 = vst.msk [vmem:[#allocation3 + $0x58] sm:$0xf] %vm3533_vm12, %v3482_v26  ;;  %v7156_v46 = vpop.f32.mrf.mxu3 }
 0x350   : > { %3364 = vst.msk [vmem:[#allocation3 + $0x60] sm:$0xf] %vm3339_vm11, %v3292_v24 }
 0x352   : > { %v4376_v13 = vpop.permute.xlu1 %4375 }
 0x353   : > { %4452 = vst.msk [vmem:[#allocation3 + $0x50] sm:$0xf] %vm4431_vm0, %v4376_v13 }
 0x355   : > { %v3484_v3 = vpop.permute.xlu0 %3483 }
 0x356   : > { %v3488_v22 = vpop.permute.xlu2 %3487  ;;  %v4681_v52 = vpop.f32.mrf.mxu2 }
 0x357   : > { %v7160_v42 = vadd.f32 %v7133_v29, %v4681_v52  ;;  %v4792_v48 = vpop.f32.mrf.mxu3 }
 0x358   : > { %v7163_v45 = vadd.f32 %v7141_v15, %v4792_v48 }
 0x35a   : > { %v3290_v20 = vpop.permute.xlu1 %3289  ;;  %v5305_v50 = vld [vmem:[#allocation3 + $0x50] sm:$0xff]  ;;  %v4863_v44 = vmax.f32 %v7160_v42, %v7163_v45 }
 0x35b   : > { %3363 = vst.msk [vmem:[#allocation3 + $0x5c] sm:$0xf] %vm3339_vm11, %v3290_v20  ;;  %5245 = vmatmul.msk.bf16.gmra.mxu2 %vm4605_vm15, %v5305_v50  ;;  %5269 = vmatmul.msk.bf16.gmra.mxu3 %vm4605_vm15, %v5305_v50 }
 0x35c   : > { %3557 = vst.msk [vmem:[#allocation3 + $0x5c] sm:$0xf] %vm3533_vm12, %v3484_v3 }
 0x35d   : > { %v4380_v56 = vpop.permute.xlu0 %4379  ;;  %4118 = vst.msk [vmem:[#allocation3 + $0x5c] sm:$0xf] %vm7415_vm13, %v4045_v53 }
 0x35e   : > { %v4384_v11 = vpop.permute.xlu2 %4383  ;;  %v7172_v60 = vpop.f32.mrf.mxu2 }
 0x35f   : > { %v7174_v12 = vpop.f32.mrf.mxu3 }
 0x362   : > { %v4043_v40 = vpop.permute.xlu1 %4042 }
 0x363   : > { %4117 = vst.msk [vmem:[#allocation3 + $0x58] sm:$0xf] %vm7397_vm1, %v4043_v40 }
 0x364   : > { %4454 = vst.msk [vmem:[#allocation3 + $0x58] sm:$0xf] %vm4431_vm0, %v4380_v56  ;;  %v4785_v56 = vadd.f32 %v7141_v15, %v7115_v0 }
 0x365   : > { %v3294_v47 = vpop.permute.xlu0 %3293 }
 0x366   : > { %3365 = vst.msk [vmem:[#allocation3 + $0x64] sm:$0xf] %vm3339_vm11, %v3294_v47  ;;  %v3298_v62 = vpop.permute.xlu2 %3297  ;;  %v4686_v59 = vpop.f32.mrf.mxu2 }
 0x367   : > { %3559 = vst.msk [vmem:[#allocation3 + $0x64] sm:$0xf] %vm3533_vm12, %v3488_v22  ;;  %v7182_v4 = vadd.f32 %v7133_v29, %v4686_v59  ;;  %v4797_v49 = vpop.f32.mrf.mxu3 }
 0x368   : > { %3367 = vst.msk [vmem:[#allocation3 + $0x6c] sm:$0xf] %vm3339_vm11, %v3298_v62  ;;  %v7185_v10 = vadd.f32 %v7141_v15, %v4797_v49 }
 0x36a   : > { %v4382_v1 = vpop.permute.xlu1 %4381  ;;  %v4865_v36 = vmax.f32 %v7182_v4, %v7185_v10 }
 0x36b   : > { %4455 = vst.msk [vmem:[#allocation3 + $0x5c] sm:$0xf] %vm4431_vm0, %v4382_v1 }
 0x36d   : > { %v4047_v51 = vpop.permute.xlu0 %4046 }
 0x36e   : > { %v4051_v27 = vpop.permute.xlu2 %4050  ;;  %v4688_v9 = vpop.f32.mrf.mxu2 }
 0x36f   : > { %v7191_v38 = vadd.f32 %v7133_v29, %v4688_v9  ;;  %v4799_v5 = vpop.f32.mrf.mxu3 }
 0x370   : > { %v7194_v6 = vadd.f32 %v7141_v15, %v4799_v5 }
 0x372   : > { %v3486_v26 = vpop.permute.xlu1 %3485  ;;  %v5306_v39 = vld [vmem:[#allocation3 + $0x58] sm:$0xff]  ;;  %v4866_v32 = vmax.f32 %v7191_v38, %v7194_v6 }
 0x373   : > { %3558 = vst.msk [vmem:[#allocation3 + $0x60] sm:$0xf] %vm3533_vm12, %v3486_v26  ;;  %5246 = vmatmul.msk.bf16.gmra.mxu2 %vm4605_vm15, %v5306_v39  ;;  %5270 = vmatmul.msk.bf16.gmra.mxu3 %vm4605_vm15, %v5306_v39 }
 0x374   : > { %4119 = vst.msk [vmem:[#allocation3 + $0x60] sm:$0xf] %vm7416_vm2, %v4047_v51  ;;  %v4679_v51 = vadd.f32 %v7133_v29, %v7153_v16 }
 0x375   : > { %v4386_v63 = vpop.permute.xlu0 %4385  ;;  %4456 = vst.msk [vmem:[#allocation3 + $0x60] sm:$0xf] %vm4431_vm0, %v4384_v11 }
 0x376   : > { %v4390_v37 = vpop.permute.xlu2 %4389  ;;  %v4691_v8 = vpop.f32.mrf.mxu2 }
 0x377   : > { %v7204_v18 = vadd.f32 %v7133_v29, %v4691_v8  ;;  %v4802_v58 = vpop.f32.mrf.mxu3 }
 0x378   : > { %v7207_v54 = vadd.f32 %v7141_v15, %v4802_v58 }
 0x37a   : > { %v4049_v35 = vpop.permute.xlu1 %4048  ;;  %v4867_v57 = vmax.f32 %v7204_v18, %v7207_v54 }
 0x37b   : > { %4120 = vst.msk [vmem:[#allocation3 + $0x64] sm:$0xf] %vm7417_vm14, %v4049_v35 }
 0x37c   : > { %4457 = vst.msk [vmem:[#allocation3 + $0x64] sm:$0xf] %vm4431_vm0, %v4386_v63 }
 0x37d   : > { %v3490_v53 = vpop.permute.xlu0 %3489  ;;  %4889 = vxpose.xlu1.b32.start [1/16] (narrow) %v4857_v19, 8 }
 0x37e   : > { %v3494_v61 = vpop.permute.xlu2 %3493  ;;  %v4693_v41 = vpop.f32.mrf.mxu2 }
 0x37f   : > { %v7217_v34 = vadd.f32 %v7133_v29, %v4693_v41  ;;  %v4804_v2 = vpop.f32.mrf.mxu3  ;;  %v4795_v41 = vadd.f32 %v7141_v15, %v7174_v12 }
 0x380   : > { %v7220_v24 = vadd.f32 %v7141_v15, %v4804_v2 }
 0x382   : > { %v3296_v13 = vpop.permute.xlu1 %3295  ;;  %v4868_v3 = vmax.f32 %v7217_v34, %v7220_v24 }
 0x383   : > { %3366 = vst.msk [vmem:[#allocation3 + $0x68] sm:$0xf] %vm3339_vm11, %v3296_v13  ;;  %v5307_v22 = vld [vmem:[#allocation3 + $0x60] sm:$0xff] }
 0x384   : > { %3560 = vst.msk [vmem:[#allocation3 + $0x68] sm:$0xf] %vm3533_vm12, %v3490_v53  ;;  %5247 = vmatmul.msk.bf16.gmra.mxu2 %vm4605_vm15, %v5307_v22  ;;  %5271 = vmatmul.msk.bf16.gmra.mxu3 %vm4605_vm15, %v5307_v22 }
 0x385   : > { %v4053_v28 = vpop.permute.xlu0 %4052  ;;  %4121 = vst.msk [vmem:[#allocation3 + $0x68] sm:$0xf] %vm7418_vm3, %v4051_v27  ;;  %4890 = vxpose.xlu1.b32.cont [2/16] (narrow) %v4858_v25, 8  ;;  %v4674_v25 = vadd.f32 %v7133_v29, %v7111_v14  ;;  %v4790_v27 = vadd.f32 %v7141_v15, %v7156_v46 }
 0x386   : > { %v4057_v17 = vpop.permute.xlu2 %4056 }
 0x387   : > { %v4696_v19 = vpop.f32.mrf.mxu2  ;;  %v4862_v23 = vmax.f32 %v4679_v51, %v4790_v27 }
 0x388   : > { %v7233_v52 = vadd.f32 %v7133_v29, %v4696_v19  ;;  %v4807_v48 = vpop.f32.mrf.mxu3 }
 0x389   : > { %v7236_v20 = vadd.f32 %v7141_v15, %v4807_v48 }
 0x38a   : > { %v3492_v50 = vpop.permute.xlu1 %3491 }
 0x38b   : > { %3561 = vst.msk [vmem:[#allocation3 + $0x6c] sm:$0xf] %vm3533_vm12, %v3492_v50  ;;  %v4869_v43 = vmax.f32 %v7233_v52, %v7236_v20 }
 0x38c   : > { %4122 = vst.msk [vmem:[#allocation3 + $0x6c] sm:$0xf] %vm7419_vm4, %v4053_v28 }
 0x38d   : > { %v3300_v33 = vpop.permute.xlu0 %3299  ;;  %4459 = vst.msk [vmem:[#allocation3 + $0x6c] sm:$0xf] %vm4431_vm0, %v4390_v37  ;;  %4891 = vxpose.xlu1.b32.cont [3/16] (narrow) %v4859_v55, 8  ;;  %v4860_v55 = vmax.f32 %v4674_v25, %v4785_v56 }
 0x38e   : > { %3368 = vst.msk [vmem:[#allocation3 + $0x70] sm:$0xf] %vm3339_vm11, %v3300_v33  ;;  %v3304_v11 = vpop.permute.xlu2 %3303 }
 0x38f   : > { %3562 = vst.msk [vmem:[#allocation3 + $0x70] sm:$0xf] %vm3533_vm12, %v3494_v61  ;;  %v4698_v40 = vpop.f32.mrf.mxu2  ;;  %v4684_v61 = vadd.f32 %v7133_v29, %v7172_v60 }
 0x390   : > { %3370 = vst.msk [vmem:[#allocation3 + $0x78] sm:$0xf] %vm3339_vm11, %v3304_v11  ;;  %v7254_v47 = vadd.f32 %v7133_v29, %v4698_v40  ;;  %v4809_v62 = vpop.f32.mrf.mxu3 }
 0x391   : > { %v7257_v30 = vadd.f32 %v7141_v15, %v4809_v62 }
 0x392   : > { %v4388_v21 = vpop.permute.xlu1 %4387 }
 0x393   : > { %4458 = vst.msk [vmem:[#allocation3 + $0x68] sm:$0xf] %vm4431_vm0, %v4388_v21  ;;  %v4870_v14 = vmax.f32 %v7254_v47, %v7257_v30 }
 0x395   : > { %v3496_v0 = vpop.permute.xlu0 %3495  ;;  %4892 = vxpose.xlu1.b32.cont [4/16] (narrow) %v4860_v55, 8 }
 0x396   : > { %v3500_v31 = vpop.permute.xlu2 %3499 }
 0x39a   : > { %v3302_v59 = vpop.permute.xlu1 %3301  ;;  %v5308_v49 = vld [vmem:[#allocation3 + $0x68] sm:$0xff] }
 0x39b   : > { %3369 = vst.msk [vmem:[#allocation3 + $0x74] sm:$0xf] %vm3339_vm11, %v3302_v59  ;;  %5248 = vmatmul.msk.bf16.gmra.mxu2 %vm4605_vm15, %v5308_v49  ;;  %5272 = vmatmul.msk.bf16.gmra.mxu3 %vm4605_vm15, %v5308_v49 }
 0x39c   : > { %3563 = vst.msk [vmem:[#allocation3 + $0x74] sm:$0xf] %vm3533_vm12, %v3496_v0 }
 0x39d   : > { %v4392_v1 = vpop.permute.xlu0 %4391  ;;  %4124 = vst.msk [vmem:[#allocation3 + $0x74] sm:$0xf] %vm7420_vm6, %v4057_v17  ;;  %4893 = vxpose.xlu1.b32.cont [5/16] (narrow) %v4861_v7, 8  ;;  %v4864_v17 = vmax.f32 %v4684_v61, %v4795_v41 }
 0x39e   : > { %v4701_v9 = vpop.f32.mrf.mxu2 }
 0x39f   : > { %v4812_v5 = vpop.f32.mrf.mxu3  ;;  %v7275_v26 = vadd.f32 %v7133_v29, %v4701_v9  ;;  %v4396_v28 = vpop.permute.xlu2 %4395 }
 0x3a0   : > { %v7278_v39 = vadd.f32 %v7141_v15, %v4812_v5 }
 0x3a2   : > { %v4871_v63 = vmax.f32 %v7275_v26, %v7278_v39  ;;  %v4055_v37 = vpop.permute.xlu1 %4054 }
 0x3a3   : > { %4123 = vst.msk [vmem:[#allocation3 + $0x70] sm:$0xf] %vm7421_vm7, %v4055_v37 }
 0x3a4   : > { %4460 = vst.msk [vmem:[#allocation3 + $0x70] sm:$0xf] %vm4431_vm0, %v4392_v1 }
 0x3a5   : > { %v3306_v7 = vpop.permute.xlu0 %3305  ;;  %4894 = vxpose.xlu1.b32.cont [6/16] (narrow) %v4862_v23, 8 }
 0x3a6   : > { %3371 = vst.msk [vmem:[#allocation3 + $0x7c] sm:$0xf] %vm3339_vm11, %v3306_v7  ;;  %v4703_v16 = vpop.f32.mrf.mxu2  ;;  %vm7422_vm11 = vmmov %vm7397_vm1 }
 0x3a7   : > { %3565 = vst.msk [vmem:[#allocation3 + $0x7c] sm:$0xf] %vm3533_vm12, %v3500_v31  ;;  %v4814_v46 = vpop.f32.mrf.mxu3  ;;  %v7287_v8 = vadd.f32 %v7133_v29, %v4703_v16 }
 0x3a8   : > { %v7290_v58 = vadd.f32 %v7141_v15, %v4814_v46 }
 0x3aa   : > { %v4872_v35 = vmax.f32 %v7287_v8, %v7290_v58  ;;  %v4394_v53 = vpop.permute.xlu1 %4393 }
 0x3ab   : > { %4461 = vst.msk [vmem:[#allocation3 + $0x74] sm:$0xf] %vm4431_vm0, %v4394_v53 }
 0x3ad   : > { %4895 = vxpose.xlu1.b32.cont [7/16] (narrow) %v4863_v44, 8  ;;  %v4059_v2 = vpop.permute.xlu0 %4058 }
 0x3b2   : > { %v3498_v13 = vpop.permute.xlu1 %3497  ;;  %v5309_v22 = vld [vmem:[#allocation3 + $0x70] sm:$0xff] }
 0x3b3   : > { %3564 = vst.msk [vmem:[#allocation3 + $0x78] sm:$0xf] %vm3533_vm12, %v3498_v13  ;;  %5249 = vmatmul.msk.bf16.gmra.mxu2 %vm4605_vm15, %v5309_v22  ;;  %5273 = vmatmul.msk.bf16.gmra.mxu3 %vm4605_vm15, %v5309_v22 }
 0x3b4   : > { %4125 = vst.msk [vmem:[#allocation3 + $0x78] sm:$0xf] %vm7422_vm11, %v4059_v2 }
 0x3b5   : > { %4896 = vxpose.xlu1.b32.cont [8/16] (narrow) %v4864_v17, 8  ;;  %4462 = vst.msk [vmem:[#allocation3 + $0x78] sm:$0xf] %vm4431_vm0, %v4396_v28  ;;  %v4398_v12 = vpop.permute.xlu0 %4397 }
 0x3b6   : > { %v4706_v42 = vpop.f32.mrf.mxu2 }
 0x3b7   : > { %v4817_v45 = vpop.f32.mrf.mxu3  ;;  %v4707_v44 = vadd.f32 %v7133_v29, %v4706_v42 }
 0x3b8   : > { %v4818_v60 = vadd.f32 %v7141_v15, %v4817_v45 }
 0x3ba   : > { %v4873_v19 = vmax.f32 %v4707_v44, %v4818_v60  ;;  %v4061_v48 = vpop.permute.xlu1 %4060 }
 0x3bb   : > { %4126 = vst.msk [vmem:[#allocation3 + $0x7c] sm:$0xf] %vm7423_vm5, %v4061_v48 }
 0x3bc   : > { %4463 = vst.msk [vmem:[#allocation3 + $0x7c] sm:$0xf] %vm4431_vm0, %v4398_v12  ;;  %4921 = vxpose.xlu2.b32.start [1/16] (narrow) %v4873_v19, 8 }
 0x3bd   : > { %4897 = vxpose.xlu1.b32.cont [9/16] (narrow) %v4865_v36, 8 }
 0x3be   : > { %v4708_v50 = vpop.f32.mrf.mxu2 }
 0x3bf   : > { %v4819_v33 = vpop.f32.mrf.mxu3  ;;  %v4709_v25 = vadd.f32 %v7133_v29, %v4708_v50 }
 0x3c0   : > { %v4820_v56 = vadd.f32 %v7141_v15, %v4819_v33 }
 0x3c2   : > { %v4874_v11 = vmax.f32 %v4709_v25, %v4820_v56 }
 0x3c3   : > { %v5310_v40 = vld [vmem:[#allocation3 + $0x78] sm:$0xff] }
 0x3c4   : > { %4922 = vxpose.xlu2.b32.cont [2/16] (narrow) %v4874_v11, 8  ;;  %5250 = vmatmul.msk.bf16.gmra.mxu2 %vm4605_vm15, %v5310_v40 }
 0x3c5   : > { %4898 = vxpose.xlu1.b32.cont [10/16] (narrow) %v4866_v32, 8  ;;  %5274 = vmatmul.msk.bf16.gmra.mxu3 %vm4605_vm15, %v5310_v40 }
 0x3c7   : > { %v4711_v62 = vpop.f32.mrf.mxu2  ;;  %v4822_v4 = vpop.f32.mrf.mxu3 }
 0x3c8   : > { %v4712_v10 = vadd.f32 %v7133_v29, %v4711_v62  ;;  %v4823_v36 = vadd.f32 %v7141_v15, %v4822_v4 }
 0x3ca   : > { %v4875_v21 = vmax.f32 %v4712_v10, %v4823_v36 }
 0x3cc   : > { %4923 = vxpose.xlu2.b32.cont [3/16] (narrow) %v4875_v21, 8 }
 0x3cd   : > { %4899 = vxpose.xlu1.b32.cont [11/16] (narrow) %v4867_v57, 8 }
 0x3cf   : > { %v4713_v55 = vpop.f32.mrf.mxu2  ;;  %v4824_v0 = vpop.f32.mrf.mxu3 }
 0x3d0   : > { %v4714_v38 = vadd.f32 %v7133_v29, %v4713_v55  ;;  %v4825_v6 = vadd.f32 %v7141_v15, %v4824_v0 }
 0x3d2   : > { %v4876_v32 = vmax.f32 %v4714_v38, %v4825_v6 }
 0x3d4   : > { %4924 = vxpose.xlu2.b32.cont [4/16] (narrow) %v4876_v32, 8 }
 0x3d5   : > { %4900 = vxpose.xlu1.b32.cont [12/16] (narrow) %v4868_v3, 8 }
 0x3dd   : > { %4901 = vxpose.xlu1.b32.cont [13/16] (narrow) %v4869_v43, 8 }
 0x3de   : > { %v4716_v59 = vpop.f32.mrf.mxu2  ;;  %v4827_v18 = vpop.f32.mrf.mxu3 }
 0x3df   : > { %v4717_v54 = vadd.f32 %v7133_v29, %v4716_v59  ;;  %v4828_v57 = vadd.f32 %v7141_v15, %v4827_v18 }
 0x3e1   : > { %v4877_v49 = vmax.f32 %v4717_v54, %v4828_v57 }
 0x3e3   : > { %4925 = vxpose.xlu2.b32.cont [5/16] (narrow) %v4877_v49, 8 }
 0x3e5   : > { %4902 = vxpose.xlu1.b32.cont [14/16] (narrow) %v4870_v14, 8 }
 0x3e6   : > { %v4718_v1 = vpop.f32.mrf.mxu2  ;;  %v4829_v34 = vpop.f32.mrf.mxu3 }
 0x3e7   : > { %v4719_v24 = vadd.f32 %v7133_v29, %v4718_v1  ;;  %v4830_v3 = vadd.f32 %v7141_v15, %v4829_v34 }
 0x3e9   : > { %v4878_v52 = vmax.f32 %v4719_v24, %v4830_v3 }
 0x3eb   : > { %4926 = vxpose.xlu2.b32.cont [6/16] (narrow) %v4878_v52, 8 }
 0x3ed   : > { %4903 = vxpose.xlu1.b32.cont [15/16] (narrow) %v4871_v63, 8 }
 0x3f5   : > { %4904 = vxpose.xlu1.b32.end [16/16] (narrow) %v4872_v35, 8 }
 0x3f6   : > { %v4721_v20 = vpop.f32.mrf.mxu2  ;;  %v4832_v43 = vpop.f32.mrf.mxu3 }
 0x3f7   : > { %v4722_v47 = vadd.f32 %v7133_v29, %v4721_v20  ;;  %v4833_v30 = vadd.f32 %v7141_v15, %v4832_v43 }
 0x3f9   : > { %v4879_v14 = vmax.f32 %v4722_v47, %v4833_v30 }
 0x3fb   : > { %4927 = vxpose.xlu2.b32.cont [7/16] (narrow) %v4879_v14, 8 }
 0x3fe   : > { %v4723_v51 = vpop.f32.mrf.mxu2  ;;  %v4834_v27 = vpop.f32.mrf.mxu3 }
 0x3ff   : > { %v4724_v9 = vadd.f32 %v7133_v29, %v4723_v51  ;;  %v4835_v5 = vadd.f32 %v7141_v15, %v4834_v27 }
 0x401   : > { %v4880_v26 = vmax.f32 %v4724_v9, %v4835_v5 }
 0x403   : > { %4928 = vxpose.xlu2.b32.cont [8/16] (narrow) %v4880_v26, 8 }
 0x407   : > { %v4726_v39 = vpop.f32.mrf.mxu2  ;;  %v4837_v37 = vpop.f32.mrf.mxu3 }
 0x408   : > { %v4727_v63 = vadd.f32 %v7133_v29, %v4726_v39  ;;  %v4838_v23 = vadd.f32 %v7141_v15, %v4837_v37 }
 0x40a   : > { %v4881_v31 = vmax.f32 %v4727_v63, %v4838_v23 }
 0x40c   : > { %4929 = vxpose.xlu2.b32.cont [9/16] (narrow) %v4881_v31, 8 }
 0x40f   : > { %v4728_v7 = vpop.f32.mrf.mxu2  ;;  %v4839_v46 = vpop.f32.mrf.mxu3 }
 0x410   : > { %v4729_v16 = vadd.f32 %v7133_v29, %v4728_v7  ;;  %v4840_v8 = vadd.f32 %v7141_v15, %v4839_v46 }
 0x412   : > { %v4882_v58 = vmax.f32 %v4729_v16, %v4840_v8 }
 0x414   : > { %4930 = vxpose.xlu2.b32.cont [10/16] (narrow) %v4882_v58, 8 }
 0x41e   : > { %v4731_v35 = vpop.f32.mrf.mxu2  ;;  %v4842_v53 = vpop.f32.mrf.mxu3 }
 0x41f   : > { %v4732_v61 = vadd.f32 %v7133_v29, %v4731_v35  ;;  %v4843_v41 = vadd.f32 %v7141_v15, %v4842_v53 }
 0x421   : > { %v4883_v2 = vmax.f32 %v4732_v61, %v4843_v41  ;;  %v4905_v6 = vpop.trf.xlu1 }
 0x422   : > { %4953 = vst [vmem:[%s332_s11] sm:$0xff] %v4905_v6 }
 0x423   : > { %4931 = vxpose.xlu2.b32.cont [11/16] (narrow) %v4883_v2, 8 }
 0x426   : > { %v4733_v13 = vpop.f32.mrf.mxu2  ;;  %v4844_v22 = vpop.f32.mrf.mxu3 }
 0x427   : > { %v4734_v28 = vadd.f32 %v7133_v29, %v4733_v13  ;;  %v4845_v17 = vadd.f32 %v7141_v15, %v4844_v22 }
 0x429   : > { %v4884_v42 = vmax.f32 %v4734_v28, %v4845_v17 }
 0x42b   : > { %4932 = vxpose.xlu2.b32.cont [12/16] (narrow) %v4884_v42, 8 }
 0x436   : > { %v4736_v45 = vpop.f32.mrf.mxu2  ;;  %v4847_v44 = vpop.f32.mrf.mxu3 }
 0x437   : > { %v4737_v60 = vadd.f32 %v7133_v29, %v4736_v45  ;;  %v4848_v12 = vadd.f32 %v7141_v15, %v4847_v44 }
 0x439   : > { %v4885_v19 = vmax.f32 %v4737_v60, %v4848_v12 }
 0x43b   : > { %4933 = vxpose.xlu2.b32.cont [13/16] (narrow) %v4885_v19, 8 }
 0x43e   : > { %v4738_v48 = vpop.f32.mrf.mxu2  ;;  %v4849_v50 = vpop.f32.mrf.mxu3 }
 0x43f   : > { %v4739_v33 = vadd.f32 %v7133_v29, %v4738_v48  ;;  %v4850_v25 = vadd.f32 %v7141_v15, %v4849_v50 }
 0x441   : > { %v4886_v56 = vmax.f32 %v4739_v33, %v4850_v25 }
 0x443   : > { %4934 = vxpose.xlu2.b32.cont [14/16] (narrow) %v4886_v56, 8 }
 0x447   : > { %v4741_v11 = vpop.f32.mrf.mxu2 }
 0x448   : > { %v4742_v40 = vadd.f32 %v7133_v29, %v4741_v11  ;;  %v4852_v62 = vpop.f32.mrf.mxu3 }
 0x449   : > { %v4853_v4 = vadd.f32 %v7141_v15, %v4852_v62 }
 0x44b   : > { %v4887_v10 = vmax.f32 %v4742_v40, %v4853_v4 }
 0x44d   : > { %4935 = vxpose.xlu2.b32.cont [15/16] (narrow) %v4887_v10, 8 }
 0x44f   : > { %v4743_v36 = vpop.f32.mrf.mxu2 }
 0x450   : > { %v4744_v21 = vadd.f32 %v7133_v29, %v4743_v36  ;;  %v4854_v55 = vpop.f32.mrf.mxu3 }
 0x451   : > { %v4855_v0 = vadd.f32 %v7141_v15, %v4854_v55 }
 0x453   : > { %v4888_v38 = vmax.f32 %v4744_v21, %v4855_v0 }
 0x455   : > { %4936 = vxpose.xlu2.b32.end [16/16] (narrow) %v4888_v38, 8 }
 0x476   : > { %v4937_v32 = vpop.trf.xlu2 }
 0x477   : > { %4954 = vst [vmem:[%s332_s11 + $0x8] sm:$0xff] %v4937_v32 }
 0x478 PF: > { %s19_s30 = sadd.s32 1, %s5350_s30  }
 0x479   : > { %p16_p4 = scmp.ge.s32.totalorder %s19_s30, 4  }
 0x47b   :  { %18 = sbr.rel (!%p16_p4) target bundleno = 1 (0x1), region = 89 }

</bundles_post_ra>
